<compile_context>
chip_gen: v7x
topology: tpu7x:2x2x1
jax: 0.10.0
libtpu: 0.0.40
codegen_flags: <defaults>
</compile_context>

<pallas_src>
import jax
import jax.numpy as jnp
import numpy as np
from jax.experimental import pallas as pl
from jax.experimental.pallas import tpu as pltpu


# ----------------------------- Pallas kernel --------------------------------

def _mm(a3, w):
    # (B, T, K) @ (K, N) -> (B, T, N) with fp32 accumulation on the MXU.
    B, T, K = a3.shape
    return jnp.dot(a3.reshape(B * T, K), w,
                   preferred_element_type=jnp.float32).reshape(B, T, w.shape[1])


def cnn_rnn_kernel(emb_ref, feat_ref,
                   w1_ref, b1_ref,
                   w2_ref, b2_ref,
                   wih1_ref, whh1_ref, bg1_ref,
                   wihh2_ref, bg2_ref,
                   wfco_ref, wfcf_ref, bfc_ref,
                   out_ref):
    emb = emb_ref[...]                       # (B, L, E)
    B, L, E = emb.shape
    T = L - 2                                # conv1 kernel=3, padding=0
    C1 = w1_ref.shape[1]
    H = whh1_ref.shape[0]

    # ---- Conv2d(1->C1, kernel=(3, E), pad=0) + sigmoid: one im2col matmul ----
    win1 = jnp.concatenate(
        [emb[:, 0:T, :], emb[:, 1:T + 1, :], emb[:, 2:T + 2, :]], axis=-1)   # (B, T, 3E)
    c1 = jax.nn.sigmoid(_mm(win1, w1_ref[...]) + b1_ref[...])                # (B, T, C1)

    # ---- Conv1d(C1->C2, kernel=3, pad=1) + sigmoid: one im2col matmul ----
    zpad = jnp.zeros((B, 1, C1), jnp.float32)
    c1p = jnp.concatenate([zpad, c1, zpad], axis=1)                          # (B, T+2, C1)
    win2 = jnp.concatenate(
        [c1p[:, 0:T, :], c1p[:, 1:T + 1, :], c1p[:, 2:T + 2, :]], axis=-1)   # (B, T, 3*C1)
    c2 = jax.nn.sigmoid(_mm(win2, w2_ref[...]) + b2_ref[...])                # (B, T, C2)
    # TODO(synk): nn.Dropout(p=0.2) is treated as inference-mode identity (no RNG mask).

    # ---- 2-layer unidirectional LSTM (batch_first), PyTorch gate order i,f,g,o
    # Layer-1 input projections hoisted out of the serial chain: one big matmul.
    gates_x1 = _mm(c2, wih1_ref[...]) + bg1_ref[...]                         # (B, T, 4H)
    whh1 = whh1_ref[...]                                                     # (H, 4H)
    wihh2 = wihh2_ref[...]                                                   # (2H, 4H) = [wih2; whh2]
    bg2 = bg2_ref[...]

    def apply_gates(gates, c_prev):
        # Fused nonlinearities: sigmoid/tanh on the full (B, 4H) gates tensor.
        sg = jax.nn.sigmoid(gates)
        tg = jnp.tanh(gates)
        i = sg[:, 0:H]
        f = sg[:, H:2 * H]
        o = sg[:, 3 * H:4 * H]
        g = tg[:, 2 * H:3 * H]
        c_new = f * c_prev + i * g
        h_new = o * jnp.tanh(c_new)
        return h_new, c_new

    h1 = jnp.zeros((B, H), jnp.float32)
    c1s = jnp.zeros((B, H), jnp.float32)
    h2 = jnp.zeros((B, H), jnp.float32)
    c2s = jnp.zeros((B, H), jnp.float32)

    hs = []
    # T is small & static -> Python unroll; switch to lax.fori_loop(unroll=True)
    # with a VMEM scratch for h2 if T ever grows large.
    for t in range(T):
        # layer 1: only the recurrent matmul remains on the critical path
        gates1 = gates_x1[:, t, :] + jnp.dot(
            h1, whh1, preferred_element_type=jnp.float32)
        h1, c1s = apply_gates(gates1, c1s)
        # layer 2: fused x/h projection -> a single MXU issue per cell
        gates2 = jnp.dot(jnp.concatenate([h1, h2], axis=-1), wihh2,
                         preferred_element_type=jnp.float32) + bg2
        h2, c2s = apply_gates(gates2, c2s)
        hs.append(h2)

    # ---- fc1: one (B, T*H) matmul after the loop + features branch ----
    hflat = jnp.concatenate(hs, axis=-1)                                     # (B, T*H)
    out_ref[...] = (jnp.dot(hflat, wfco_ref[...], preferred_element_type=jnp.float32)
                    + jnp.dot(feat_ref[...], wfcf_ref[...],
                              preferred_element_type=jnp.float32)
                    + bfc_ref[...])


# ------------------------------- wrapper -------------------------------------

def cnn_rnn_forward(emb, feat, params):
    B = emb.shape[0]
    NL = params["bfc"].shape[1]

    # Pad batch up to a full sublane tile (8): kernel cost is ~independent of
    # B up to 8, so tiny batches ride for free with full sublane utilization.
    Bp = max(8, ((B + 7) // 8) * 8)
    if Bp != B:
        emb = jnp.pad(emb, ((0, Bp - B), (0, 0), (0, 0)))
        feat = jnp.pad(feat, ((0, Bp - B), (0, 0)))

    inputs = (emb, feat,
              params["w1"], params["b1"], params["w2"], params["b2"],
              params["wih1"], params["whh1"], params["bg1"],
              params["wihh2"], params["bg2"],
              params["wfco"], params["wfcf"], params["bfc"])

    def full_spec(shape):
        nd = len(shape)
        return pl.BlockSpec(shape, lambda i, nd=nd: (0,) * nd)

    out = pl.pallas_call(
        cnn_rnn_kernel,
        out_shape=jax.ShapeDtypeStruct((Bp, NL), jnp.float32),
        grid=(1,),
        in_specs=[full_spec(a.shape) for a in inputs],
        out_specs=full_spec((Bp, NL)),
        compiler_params=pltpu.CompilerParams(
            dimension_semantics=("arbitrary",)),
    )(*inputs)
    return out[:B]


# --------------------- parameter init (PyTorch shapes) -----------------------

def init_pt_params(key, *, E, C1, C2, H, T, F, NL, vocab):
    ks = jax.random.split(key, 16)

    def u(k, shape, scale=0.2):
        return jax.random.uniform(k, shape, jnp.float32, -scale, scale)

    return dict(
        embedding=u(ks[0], (vocab, E), 1.0),
        conv1_w=u(ks[1], (C1, 1, 3, E)), conv1_b=u(ks[2], (C1,)),
        conv2_w=u(ks[3], (C2, C1, 3)),   conv2_b=u(ks[4], (C2,)),
        wih_l0=u(ks[5], (4 * H, C2)), whh_l0=u(ks[6], (4 * H, H)),
        bih_l0=u(ks[7], (4 * H,)),    bhh_l0=u(ks[8], (4 * H,)),
        wih_l1=u(ks[9], (4 * H, H)),  whh_l1=u(ks[10], (4 * H, H)),
        bih_l1=u(ks[11], (4 * H,)),   bhh_l1=u(ks[12], (4 * H,)),
        fc_w=u(ks[13], (NL, T * H + F)), fc_b=u(ks[14], (NL,)),
    )


def to_kernel_params(pt, *, E, C1, H, T):
    return dict(
        # conv1 weight (C1,1,3,E) -> (3E, C1), rows k*E + e  (matches im2col concat)
        w1=pt["conv1_w"].reshape(-1, 3 * E).T,
        b1=pt["conv1_b"][None, :],
        # conv2 weight (C2,C1,3) -> (3*C1, C2), rows k*C1 + ci
        w2=jnp.transpose(pt["conv2_w"], (2, 1, 0)).reshape(3 * C1, -1),
        b2=pt["conv2_b"][None, :],
        wih1=pt["wih_l0"].T, whh1=pt["whh_l0"].T,
        bg1=(pt["bih_l0"] + pt["bhh_l0"])[None, :],
        # layer-2 x/h projections pre-stacked: [h1, h2] @ [wih2; whh2]
        wihh2=jnp.concatenate([pt["wih_l1"].T, pt["whh_l1"].T], axis=0),
        bg2=(pt["bih_l1"] + pt["bhh_l1"])[None, :],
        wfco=pt["fc_w"].T[:T * H, :],
        wfcf=pt["fc_w"].T[T * H:, :],
        bfc=pt["fc_b"][None, :],
    )


# ----------------------- independent pure-JAX reference ----------------------

def reference_forward(emb, feat, pt):
    B = emb.shape[0]
    x = emb[:, None, :, :]                                   # (B,1,L,E)
    c1 = jax.lax.conv_general_dilated(
        x, pt["conv1_w"], window_strides=(1, 1), padding="VALID",
        dimension_numbers=("NCHW", "OIHW", "NCHW"))
    c1 = jax.nn.sigmoid(c1 + pt["conv1_b"][None, :, None, None])
    c1 = c1[:, :, :, 0]                                      # (B,C1,T)
    c2 = jax.lax.conv_general_dilated(
        c1, pt["conv2_w"], window_strides=(1,), padding=[(1, 1)],
        dimension_numbers=("NCH", "OIH", "NCH"))
    c2 = jax.nn.sigmoid(c2 + pt["conv2_b"][None, :, None])
    x_seq = jnp.transpose(c2, (0, 2, 1))                     # (B,T,C2)

    def run_layer(xs, wih, whh, bih, bhh):
        def step(carry, xt):
            h, c = carry
            gates = xt @ wih.T + h @ whh.T + bih + bhh
            i, f, g, o = jnp.split(gates, 4, axis=-1)
            c = jax.nn.sigmoid(f) * c + jax.nn.sigmoid(i) * jnp.tanh(g)
            h = jax.nn.sigmoid(o) * jnp.tanh(c)
            return (h, c), h
        h0 = jnp.zeros((xs.shape[0], whh.shape[1]), jnp.float32)
        (_, _), hs = jax.lax.scan(step, (h0, h0), jnp.transpose(xs, (1, 0, 2)))
        return jnp.transpose(hs, (1, 0, 2))

    o1 = run_layer(x_seq, pt["wih_l0"], pt["whh_l0"], pt["bih_l0"], pt["bhh_l0"])
    o2 = run_layer(o1, pt["wih_l1"], pt["whh_l1"], pt["bih_l1"], pt["bhh_l1"])
    flat = o2.reshape(B, -1)
    cat = jnp.concatenate([flat, feat], axis=1)
    return cat @ pt["fc_w"].T + pt["fc_b"]


# --------------------------------- main --------------------------------------

if __name__ == "__main__":
    # Small shapes consistent with the module's forward:
    # max_length L=10 -> T = L-2 = 8, embedding_dim=16, conv1_filters=8,
    # conv2_filters=16, lstm_hidden=8, features_dim=4, num_labels=2.
    B, L, E = 2, 10, 16
    C1, C2, H, F, NL = 8, 16, 8, 4, 2
    T = L - 2
    vocab = 32

    key = jax.random.PRNGKey(0)
    k_tok, k_feat, k_par = jax.random.split(key, 3)
    tokens = jax.random.randint(k_tok, (B, L), 0, vocab)          # x
    lengths = jnp.full((B,), L, jnp.int32)                        # unused by forward (matches PyTorch)
    feat = jax.random.normal(k_feat, (B, F), jnp.float32)         # features

    pt = init_pt_params(k_par, E=E, C1=C1, C2=C2, H=H, T=T, F=F, NL=NL, vocab=vocab)
    params = to_kernel_params(pt, E=E, C1=C1, H=H, T=T)

    emb = pt["embedding"][tokens]                                 # embedding lookup (glue)

    out = cnn_rnn_forward(emb, feat, params)
    out = jax.block_until_ready(out)

    ref = reference_forward(emb, feat, pt)
    np.testing.assert_allclose(np.asarray(out), np.asarray(ref), rtol=1e-4, atol=1e-4)
    print("KERNEL_OK")
</pallas_src>

<mosaic_0001>
module attributes {stable_mosaic.version = 11 : i64} {
  func.func @cnn_rnn_kernel(%arg0: i32, %arg1: memref<8x10x16xf32, #tpu.memory_space<vmem>>, %arg2: memref<8x4xf32, #tpu.memory_space<vmem>>, %arg3: memref<48x8xf32, #tpu.memory_space<vmem>>, %arg4: memref<1x8xf32, #tpu.memory_space<vmem>>, %arg5: memref<24x16xf32, #tpu.memory_space<vmem>>, %arg6: memref<1x16xf32, #tpu.memory_space<vmem>>, %arg7: memref<16x32xf32, #tpu.memory_space<vmem>>, %arg8: memref<8x32xf32, #tpu.memory_space<vmem>>, %arg9: memref<1x32xf32, #tpu.memory_space<vmem>>, %arg10: memref<16x32xf32, #tpu.memory_space<vmem>>, %arg11: memref<1x32xf32, #tpu.memory_space<vmem>>, %arg12: memref<64x2xf32, #tpu.memory_space<vmem>>, %arg13: memref<4x2xf32, #tpu.memory_space<vmem>>, %arg14: memref<1x2xf32, #tpu.memory_space<vmem>>, %arg15: memref<8x2xf32, #tpu.memory_space<vmem>>) attributes {dimension_semantics = [#tpu.dimension_semantics<arbitrary>], iteration_bounds = array<i64: 1>, scalar_prefetch = 0 : i64, scratch_operands = 0 : i64, tpu.core_type = #tpu.core_type<tc>, window_params = [{pipeline_mode = #tpu.pipeline_mode<synchronous>, transform_indices = @transform_0, window_bounds = array<i64: 8, 10, 16>}, {pipeline_mode = #tpu.pipeline_mode<synchronous>, transform_indices = @transform_1, window_bounds = array<i64: 8, 4>}, {pipeline_mode = #tpu.pipeline_mode<synchronous>, transform_indices = @transform_2, window_bounds = array<i64: 48, 8>}, {pipeline_mode = #tpu.pipeline_mode<synchronous>, transform_indices = @transform_3, window_bounds = array<i64: 1, 8>}, {pipeline_mode = #tpu.pipeline_mode<synchronous>, transform_indices = @transform_4, window_bounds = array<i64: 24, 16>}, {pipeline_mode = #tpu.pipeline_mode<synchronous>, transform_indices = @transform_5, window_bounds = array<i64: 1, 16>}, {pipeline_mode = #tpu.pipeline_mode<synchronous>, transform_indices = @transform_6, window_bounds = array<i64: 16, 32>}, {pipeline_mode = #tpu.pipeline_mode<synchronous>, transform_indices = @transform_7, window_bounds = array<i64: 8, 32>}, {pipeline_mode = #tpu.pipeline_mode<synchronous>, transform_indices = @transform_8, window_bounds = array<i64: 1, 32>}, {pipeline_mode = #tpu.pipeline_mode<synchronous>, transform_indices = @transform_9, window_bounds = array<i64: 16, 32>}, {pipeline_mode = #tpu.pipeline_mode<synchronous>, transform_indices = @transform_10, window_bounds = array<i64: 1, 32>}, {pipeline_mode = #tpu.pipeline_mode<synchronous>, transform_indices = @transform_11, window_bounds = array<i64: 64, 2>}, {pipeline_mode = #tpu.pipeline_mode<synchronous>, transform_indices = @transform_12, window_bounds = array<i64: 4, 2>}, {pipeline_mode = #tpu.pipeline_mode<synchronous>, transform_indices = @transform_13, window_bounds = array<i64: 1, 2>}, {pipeline_mode = #tpu.pipeline_mode<synchronous>, transform_indices = @transform_14, window_bounds = array<i64: 8, 2>}]} {
    %c0 = arith.constant 0 : index
    %c0_0 = arith.constant 0 : index
    %c0_1 = arith.constant 0 : index
    %0 = vector.load %arg1[%c0, %c0_0, %c0_1] : memref<8x10x16xf32, #tpu.memory_space<vmem>>, vector<8x10x16xf32>
    %1 = vector.extract_strided_slice %0 {offsets = [0, 0, 0], sizes = [8, 8, 16], strides = [1, 1, 1]} : vector<8x10x16xf32> to vector<8x8x16xf32>
    %2 = vector.extract_strided_slice %0 {offsets = [0, 1, 0], sizes = [8, 8, 16], strides = [1, 1, 1]} : vector<8x10x16xf32> to vector<8x8x16xf32>
    %3 = vector.extract_strided_slice %0 {offsets = [0, 2, 0], sizes = [8, 8, 16], strides = [1, 1, 1]} : vector<8x10x16xf32> to vector<8x8x16xf32>
    %4 = tpu.concatenate %1, %2, %3 in 2 : vector<8x8x16xf32>, vector<8x8x16xf32>, vector<8x8x16xf32> -> vector<8x8x48xf32>
    %c0_2 = arith.constant 0 : index
    %c0_3 = arith.constant 0 : index
    %5 = vector.load %arg3[%c0_2, %c0_3] : memref<48x8xf32, #tpu.memory_space<vmem>>, vector<48x8xf32>
    %6 = vector.shape_cast %4 : vector<8x8x48xf32> to vector<64x48xf32>
    %cst = arith.constant dense<0.000000e+00> : vector<64x8xf32>
    %7 = tpu.matmul %6, %5, %cst {dimension_numbers = #tpu.dot_dimension_numbers<[1], [0], [0], [1], [0, 0, 1, 1], [], []>} : vector<64x48xf32>, vector<48x8xf32>, vector<64x8xf32> -> vector<64x8xf32>
    %8 = vector.shape_cast %7 : vector<64x8xf32> to vector<8x8x8xf32>
    %c0_4 = arith.constant 0 : index
    %c0_5 = arith.constant 0 : index
    %9 = vector.load %arg4[%c0_4, %c0_5] : memref<1x8xf32, #tpu.memory_space<vmem>>, vector<1x8xf32>
    %10 = vector.shape_cast %9 : vector<1x8xf32> to vector<1x1x8xf32>
    %11 = vector.broadcast %10 : vector<1x1x8xf32> to vector<8x8x8xf32>
    %12 = arith.addf %8, %11 : vector<8x8x8xf32>
    %13 = arith.negf %12 : vector<8x8x8xf32>
    %14 = math.exp %13 : vector<8x8x8xf32>
    %cst_6 = arith.constant 1.000000e+00 : f32
    %15 = vector.broadcast %cst_6 : f32 to vector<8x8x8xf32>
    %16 = arith.addf %15, %14 : vector<8x8x8xf32>
    %17 = arith.divf %15, %16 : vector<8x8x8xf32>
    %cst_7 = arith.constant 0.000000e+00 : f32
    %18 = vector.broadcast %cst_7 : f32 to vector<8x1x8xf32>
    %19 = tpu.concatenate %18, %17, %18 in 1 : vector<8x1x8xf32>, vector<8x8x8xf32>, vector<8x1x8xf32> -> vector<8x10x8xf32>
    %20 = vector.extract_strided_slice %19 {offsets = [0, 0, 0], sizes = [8, 8, 8], strides = [1, 1, 1]} : vector<8x10x8xf32> to vector<8x8x8xf32>
    %21 = vector.extract_strided_slice %19 {offsets = [0, 1, 0], sizes = [8, 8, 8], strides = [1, 1, 1]} : vector<8x10x8xf32> to vector<8x8x8xf32>
    %22 = vector.extract_strided_slice %19 {offsets = [0, 2, 0], sizes = [8, 8, 8], strides = [1, 1, 1]} : vector<8x10x8xf32> to vector<8x8x8xf32>
    %23 = tpu.concatenate %20, %21, %22 in 2 : vector<8x8x8xf32>, vector<8x8x8xf32>, vector<8x8x8xf32> -> vector<8x8x24xf32>
    %c0_8 = arith.constant 0 : index
    %c0_9 = arith.constant 0 : index
    %24 = vector.load %arg5[%c0_8, %c0_9] : memref<24x16xf32, #tpu.memory_space<vmem>>, vector<24x16xf32>
    %25 = vector.shape_cast %23 : vector<8x8x24xf32> to vector<64x24xf32>
    %cst_10 = arith.constant dense<0.000000e+00> : vector<64x16xf32>
    %26 = tpu.matmul %25, %24, %cst_10 {dimension_numbers = #tpu.dot_dimension_numbers<[1], [0], [0], [1], [0, 0, 1, 1], [], []>} : vector<64x24xf32>, vector<24x16xf32>, vector<64x16xf32> -> vector<64x16xf32>
    %27 = vector.shape_cast %26 : vector<64x16xf32> to vector<8x8x16xf32>
    %c0_11 = arith.constant 0 : index
    %c0_12 = arith.constant 0 : index
    %28 = vector.load %arg6[%c0_11, %c0_12] : memref<1x16xf32, #tpu.memory_space<vmem>>, vector<1x16xf32>
    %29 = vector.shape_cast %28 : vector<1x16xf32> to vector<1x1x16xf32>
    %30 = vector.broadcast %29 : vector<1x1x16xf32> to vector<8x8x16xf32>
    %31 = arith.addf %27, %30 : vector<8x8x16xf32>
    %32 = arith.negf %31 : vector<8x8x16xf32>
    %33 = math.exp %32 : vector<8x8x16xf32>
    %cst_13 = arith.constant 1.000000e+00 : f32
    %34 = vector.broadcast %cst_13 : f32 to vector<8x8x16xf32>
    %35 = arith.addf %34, %33 : vector<8x8x16xf32>
    %36 = arith.divf %34, %35 : vector<8x8x16xf32>
    %c0_14 = arith.constant 0 : index
    %c0_15 = arith.constant 0 : index
    %37 = vector.load %arg7[%c0_14, %c0_15] : memref<16x32xf32, #tpu.memory_space<vmem>>, vector<16x32xf32>
    %38 = vector.shape_cast %36 : vector<8x8x16xf32> to vector<64x16xf32>
    %cst_16 = arith.constant dense<0.000000e+00> : vector<64x32xf32>
    %39 = tpu.matmul %38, %37, %cst_16 {dimension_numbers = #tpu.dot_dimension_numbers<[1], [0], [0], [1], [0, 0, 1, 1], [], []>} : vector<64x16xf32>, vector<16x32xf32>, vector<64x32xf32> -> vector<64x32xf32>
    %40 = vector.shape_cast %39 : vector<64x32xf32> to vector<8x8x32xf32>
    %c0_17 = arith.constant 0 : index
    %c0_18 = arith.constant 0 : index
    %41 = vector.load %arg9[%c0_17, %c0_18] : memref<1x32xf32, #tpu.memory_space<vmem>>, vector<1x32xf32>
    %42 = vector.shape_cast %41 : vector<1x32xf32> to vector<1x1x32xf32>
    %43 = vector.broadcast %42 : vector<1x1x32xf32> to vector<8x8x32xf32>
    %44 = arith.addf %40, %43 : vector<8x8x32xf32>
    %c0_19 = arith.constant 0 : index
    %c0_20 = arith.constant 0 : index
    %45 = vector.load %arg8[%c0_19, %c0_20] : memref<8x32xf32, #tpu.memory_space<vmem>>, vector<8x32xf32>
    %c0_21 = arith.constant 0 : index
    %c0_22 = arith.constant 0 : index
    %46 = vector.load %arg10[%c0_21, %c0_22] : memref<16x32xf32, #tpu.memory_space<vmem>>, vector<16x32xf32>
    %c0_23 = arith.constant 0 : index
    %c0_24 = arith.constant 0 : index
    %47 = vector.load %arg11[%c0_23, %c0_24] : memref<1x32xf32, #tpu.memory_space<vmem>>, vector<1x32xf32>
    %cst_25 = arith.constant 0.000000e+00 : f32
    %48 = vector.broadcast %cst_25 : f32 to vector<8x8xf32>
    %cst_26 = arith.constant 0.000000e+00 : f32
    %49 = vector.broadcast %cst_26 : f32 to vector<8x8xf32>
    %cst_27 = arith.constant 0.000000e+00 : f32
    %50 = vector.broadcast %cst_27 : f32 to vector<8x8xf32>
    %cst_28 = arith.constant 0.000000e+00 : f32
    %51 = vector.broadcast %cst_28 : f32 to vector<8x8xf32>
    %52 = vector.extract_strided_slice %44 {offsets = [0, 0, 0], sizes = [8, 1, 32], strides = [1, 1, 1]} : vector<8x8x32xf32> to vector<8x1x32xf32>
    %53 = vector.shape_cast %52 : vector<8x1x32xf32> to vector<8x32xf32>
    %cst_29 = arith.constant dense<0.000000e+00> : vector<8x32xf32>
    %54 = tpu.matmul %48, %45, %cst_29 {dimension_numbers = #tpu.dot_dimension_numbers<[1], [0], [0], [1], [0, 0, 1, 1], [], []>} : vector<8x8xf32>, vector<8x32xf32>, vector<8x32xf32> -> vector<8x32xf32>
    %55 = arith.addf %53, %54 : vector<8x32xf32>
    %56 = arith.negf %55 : vector<8x32xf32>
    %57 = math.exp %56 : vector<8x32xf32>
    %cst_30 = arith.constant 1.000000e+00 : f32
    %58 = vector.broadcast %cst_30 : f32 to vector<8x32xf32>
    %59 = arith.addf %58, %57 : vector<8x32xf32>
    %60 = arith.divf %58, %59 : vector<8x32xf32>
    %61 = math.tanh %55 : vector<8x32xf32>
    %62 = vector.extract_strided_slice %60 {offsets = [0, 0], sizes = [8, 8], strides = [1, 1]} : vector<8x32xf32> to vector<8x8xf32>
    %63 = vector.extract_strided_slice %60 {offsets = [0, 8], sizes = [8, 8], strides = [1, 1]} : vector<8x32xf32> to vector<8x8xf32>
    %64 = vector.extract_strided_slice %60 {offsets = [0, 24], sizes = [8, 8], strides = [1, 1]} : vector<8x32xf32> to vector<8x8xf32>
    %65 = vector.extract_strided_slice %61 {offsets = [0, 16], sizes = [8, 8], strides = [1, 1]} : vector<8x32xf32> to vector<8x8xf32>
    %66 = arith.mulf %63, %49 : vector<8x8xf32>
    %67 = arith.mulf %62, %65 : vector<8x8xf32>
    %68 = arith.addf %66, %67 : vector<8x8xf32>
    %69 = math.tanh %68 : vector<8x8xf32>
    %70 = arith.mulf %64, %69 : vector<8x8xf32>
    %71 = tpu.concatenate %70, %50 in 1 : vector<8x8xf32>, vector<8x8xf32> -> vector<8x16xf32>
    %cst_31 = arith.constant dense<0.000000e+00> : vector<8x32xf32>
    %72 = tpu.matmul %71, %46, %cst_31 {dimension_numbers = #tpu.dot_dimension_numbers<[1], [0], [0], [1], [0, 0, 1, 1], [], []>} : vector<8x16xf32>, vector<16x32xf32>, vector<8x32xf32> -> vector<8x32xf32>
    %73 = vector.broadcast %47 : vector<1x32xf32> to vector<8x32xf32>
    %74 = arith.addf %72, %73 : vector<8x32xf32>
    %75 = arith.negf %74 : vector<8x32xf32>
    %76 = math.exp %75 : vector<8x32xf32>
    %cst_32 = arith.constant 1.000000e+00 : f32
    %77 = vector.broadcast %cst_32 : f32 to vector<8x32xf32>
    %78 = arith.addf %77, %76 : vector<8x32xf32>
    %79 = arith.divf %77, %78 : vector<8x32xf32>
    %80 = math.tanh %74 : vector<8x32xf32>
    %81 = vector.extract_strided_slice %79 {offsets = [0, 0], sizes = [8, 8], strides = [1, 1]} : vector<8x32xf32> to vector<8x8xf32>
    %82 = vector.extract_strided_slice %79 {offsets = [0, 8], sizes = [8, 8], strides = [1, 1]} : vector<8x32xf32> to vector<8x8xf32>
    %83 = vector.extract_strided_slice %79 {offsets = [0, 24], sizes = [8, 8], strides = [1, 1]} : vector<8x32xf32> to vector<8x8xf32>
    %84 = vector.extract_strided_slice %80 {offsets = [0, 16], sizes = [8, 8], strides = [1, 1]} : vector<8x32xf32> to vector<8x8xf32>
    %85 = arith.mulf %82, %51 : vector<8x8xf32>
    %86 = arith.mulf %81, %84 : vector<8x8xf32>
    %87 = arith.addf %85, %86 : vector<8x8xf32>
    %88 = math.tanh %87 : vector<8x8xf32>
    %89 = arith.mulf %83, %88 : vector<8x8xf32>
    %90 = vector.extract_strided_slice %44 {offsets = [0, 1, 0], sizes = [8, 1, 32], strides = [1, 1, 1]} : vector<8x8x32xf32> to vector<8x1x32xf32>
    %91 = vector.shape_cast %90 : vector<8x1x32xf32> to vector<8x32xf32>
    %cst_33 = arith.constant dense<0.000000e+00> : vector<8x32xf32>
    %92 = tpu.matmul %70, %45, %cst_33 {dimension_numbers = #tpu.dot_dimension_numbers<[1], [0], [0], [1], [0, 0, 1, 1], [], []>} : vector<8x8xf32>, vector<8x32xf32>, vector<8x32xf32> -> vector<8x32xf32>
    %93 = arith.addf %91, %92 : vector<8x32xf32>
    %94 = arith.negf %93 : vector<8x32xf32>
    %95 = math.exp %94 : vector<8x32xf32>
    %cst_34 = arith.constant 1.000000e+00 : f32
    %96 = vector.broadcast %cst_34 : f32 to vector<8x32xf32>
    %97 = arith.addf %96, %95 : vector<8x32xf32>
    %98 = arith.divf %96, %97 : vector<8x32xf32>
    %99 = math.tanh %93 : vector<8x32xf32>
    %100 = vector.extract_strided_slice %98 {offsets = [0, 0], sizes = [8, 8], strides = [1, 1]} : vector<8x32xf32> to vector<8x8xf32>
    %101 = vector.extract_strided_slice %98 {offsets = [0, 8], sizes = [8, 8], strides = [1, 1]} : vector<8x32xf32> to vector<8x8xf32>
    %102 = vector.extract_strided_slice %98 {offsets = [0, 24], sizes = [8, 8], strides = [1, 1]} : vector<8x32xf32> to vector<8x8xf32>
    %103 = vector.extract_strided_slice %99 {offsets = [0, 16], sizes = [8, 8], strides = [1, 1]} : vector<8x32xf32> to vector<8x8xf32>
    %104 = arith.mulf %101, %68 : vector<8x8xf32>
    %105 = arith.mulf %100, %103 : vector<8x8xf32>
    %106 = arith.addf %104, %105 : vector<8x8xf32>
    %107 = math.tanh %106 : vector<8x8xf32>
    %108 = arith.mulf %102, %107 : vector<8x8xf32>
    %109 = tpu.concatenate %108, %89 in 1 : vector<8x8xf32>, vector<8x8xf32> -> vector<8x16xf32>
    %cst_35 = arith.constant dense<0.000000e+00> : vector<8x32xf32>
    %110 = tpu.matmul %109, %46, %cst_35 {dimension_numbers = #tpu.dot_dimension_numbers<[1], [0], [0], [1], [0, 0, 1, 1], [], []>} : vector<8x16xf32>, vector<16x32xf32>, vector<8x32xf32> -> vector<8x32xf32>
    %111 = vector.broadcast %47 : vector<1x32xf32> to vector<8x32xf32>
    %112 = arith.addf %110, %111 : vector<8x32xf32>
    %113 = arith.negf %112 : vector<8x32xf32>
    %114 = math.exp %113 : vector<8x32xf32>
    %cst_36 = arith.constant 1.000000e+00 : f32
    %115 = vector.broadcast %cst_36 : f32 to vector<8x32xf32>
    %116 = arith.addf %115, %114 : vector<8x32xf32>
    %117 = arith.divf %115, %116 : vector<8x32xf32>
    %118 = math.tanh %112 : vector<8x32xf32>
    %119 = vector.extract_strided_slice %117 {offsets = [0, 0], sizes = [8, 8], strides = [1, 1]} : vector<8x32xf32> to vector<8x8xf32>
    %120 = vector.extract_strided_slice %117 {offsets = [0, 8], sizes = [8, 8], strides = [1, 1]} : vector<8x32xf32> to vector<8x8xf32>
    %121 = vector.extract_strided_slice %117 {offsets = [0, 24], sizes = [8, 8], strides = [1, 1]} : vector<8x32xf32> to vector<8x8xf32>
    %122 = vector.extract_strided_slice %118 {offsets = [0, 16], sizes = [8, 8], strides = [1, 1]} : vector<8x32xf32> to vector<8x8xf32>
    %123 = arith.mulf %120, %87 : vector<8x8xf32>
    %124 = arith.mulf %119, %122 : vector<8x8xf32>
    %125 = arith.addf %123, %124 : vector<8x8xf32>
    %126 = math.tanh %125 : vector<8x8xf32>
    %127 = arith.mulf %121, %126 : vector<8x8xf32>
    %128 = vector.extract_strided_slice %44 {offsets = [0, 2, 0], sizes = [8, 1, 32], strides = [1, 1, 1]} : vector<8x8x32xf32> to vector<8x1x32xf32>
    %129 = vector.shape_cast %128 : vector<8x1x32xf32> to vector<8x32xf32>
    %cst_37 = arith.constant dense<0.000000e+00> : vector<8x32xf32>
    %130 = tpu.matmul %108, %45, %cst_37 {dimension_numbers = #tpu.dot_dimension_numbers<[1], [0], [0], [1], [0, 0, 1, 1], [], []>} : vector<8x8xf32>, vector<8x32xf32>, vector<8x32xf32> -> vector<8x32xf32>
    %131 = arith.addf %129, %130 : vector<8x32xf32>
    %132 = arith.negf %131 : vector<8x32xf32>
    %133 = math.exp %132 : vector<8x32xf32>
    %cst_38 = arith.constant 1.000000e+00 : f32
    %134 = vector.broadcast %cst_38 : f32 to vector<8x32xf32>
    %135 = arith.addf %134, %133 : vector<8x32xf32>
    %136 = arith.divf %134, %135 : vector<8x32xf32>
    %137 = math.tanh %131 : vector<8x32xf32>
    %138 = vector.extract_strided_slice %136 {offsets = [0, 0], sizes = [8, 8], strides = [1, 1]} : vector<8x32xf32> to vector<8x8xf32>
    %139 = vector.extract_strided_slice %136 {offsets = [0, 8], sizes = [8, 8], strides = [1, 1]} : vector<8x32xf32> to vector<8x8xf32>
    %140 = vector.extract_strided_slice %136 {offsets = [0, 24], sizes = [8, 8], strides = [1, 1]} : vector<8x32xf32> to vector<8x8xf32>
    %141 = vector.extract_strided_slice %137 {offsets = [0, 16], sizes = [8, 8], strides = [1, 1]} : vector<8x32xf32> to vector<8x8xf32>
    %142 = arith.mulf %139, %106 : vector<8x8xf32>
    %143 = arith.mulf %138, %141 : vector<8x8xf32>
    %144 = arith.addf %142, %143 : vector<8x8xf32>
    %145 = math.tanh %144 : vector<8x8xf32>
    %146 = arith.mulf %140, %145 : vector<8x8xf32>
    %147 = tpu.concatenate %146, %127 in 1 : vector<8x8xf32>, vector<8x8xf32> -> vector<8x16xf32>
    %cst_39 = arith.constant dense<0.000000e+00> : vector<8x32xf32>
    %148 = tpu.matmul %147, %46, %cst_39 {dimension_numbers = #tpu.dot_dimension_numbers<[1], [0], [0], [1], [0, 0, 1, 1], [], []>} : vector<8x16xf32>, vector<16x32xf32>, vector<8x32xf32> -> vector<8x32xf32>
    %149 = vector.broadcast %47 : vector<1x32xf32> to vector<8x32xf32>
    %150 = arith.addf %148, %149 : vector<8x32xf32>
    %151 = arith.negf %150 : vector<8x32xf32>
    %152 = math.exp %151 : vector<8x32xf32>
    %cst_40 = arith.constant 1.000000e+00 : f32
    %153 = vector.broadcast %cst_40 : f32 to vector<8x32xf32>
    %154 = arith.addf %153, %152 : vector<8x32xf32>
    %155 = arith.divf %153, %154 : vector<8x32xf32>
    %156 = math.tanh %150 : vector<8x32xf32>
    %157 = vector.extract_strided_slice %155 {offsets = [0, 0], sizes = [8, 8], strides = [1, 1]} : vector<8x32xf32> to vector<8x8xf32>
    %158 = vector.extract_strided_slice %155 {offsets = [0, 8], sizes = [8, 8], strides = [1, 1]} : vector<8x32xf32> to vector<8x8xf32>
    %159 = vector.extract_strided_slice %155 {offsets = [0, 24], sizes = [8, 8], strides = [1, 1]} : vector<8x32xf32> to vector<8x8xf32>
    %160 = vector.extract_strided_slice %156 {offsets = [0, 16], sizes = [8, 8], strides = [1, 1]} : vector<8x32xf32> to vector<8x8xf32>
    %161 = arith.mulf %158, %125 : vector<8x8xf32>
    %162 = arith.mulf %157, %160 : vector<8x8xf32>
    %163 = arith.addf %161, %162 : vector<8x8xf32>
    %164 = math.tanh %163 : vector<8x8xf32>
    %165 = arith.mulf %159, %164 : vector<8x8xf32>
    %166 = vector.extract_strided_slice %44 {offsets = [0, 3, 0], sizes = [8, 1, 32], strides = [1, 1, 1]} : vector<8x8x32xf32> to vector<8x1x32xf32>
    %167 = vector.shape_cast %166 : vector<8x1x32xf32> to vector<8x32xf32>
    %cst_41 = arith.constant dense<0.000000e+00> : vector<8x32xf32>
    %168 = tpu.matmul %146, %45, %cst_41 {dimension_numbers = #tpu.dot_dimension_numbers<[1], [0], [0], [1], [0, 0, 1, 1], [], []>} : vector<8x8xf32>, vector<8x32xf32>, vector<8x32xf32> -> vector<8x32xf32>
    %169 = arith.addf %167, %168 : vector<8x32xf32>
    %170 = arith.negf %169 : vector<8x32xf32>
    %171 = math.exp %170 : vector<8x32xf32>
    %cst_42 = arith.constant 1.000000e+00 : f32
    %172 = vector.broadcast %cst_42 : f32 to vector<8x32xf32>
    %173 = arith.addf %172, %171 : vector<8x32xf32>
    %174 = arith.divf %172, %173 : vector<8x32xf32>
    %175 = math.tanh %169 : vector<8x32xf32>
    %176 = vector.extract_strided_slice %174 {offsets = [0, 0], sizes = [8, 8], strides = [1, 1]} : vector<8x32xf32> to vector<8x8xf32>
    %177 = vector.extract_strided_slice %174 {offsets = [0, 8], sizes = [8, 8], strides = [1, 1]} : vector<8x32xf32> to vector<8x8xf32>
    %178 = vector.extract_strided_slice %174 {offsets = [0, 24], sizes = [8, 8], strides = [1, 1]} : vector<8x32xf32> to vector<8x8xf32>
    %179 = vector.extract_strided_slice %175 {offsets = [0, 16], sizes = [8, 8], strides = [1, 1]} : vector<8x32xf32> to vector<8x8xf32>
    %180 = arith.mulf %177, %144 : vector<8x8xf32>
    %181 = arith.mulf %176, %179 : vector<8x8xf32>
    %182 = arith.addf %180, %181 : vector<8x8xf32>
    %183 = math.tanh %182 : vector<8x8xf32>
    %184 = arith.mulf %178, %183 : vector<8x8xf32>
    %185 = tpu.concatenate %184, %165 in 1 : vector<8x8xf32>, vector<8x8xf32> -> vector<8x16xf32>
    %cst_43 = arith.constant dense<0.000000e+00> : vector<8x32xf32>
    %186 = tpu.matmul %185, %46, %cst_43 {dimension_numbers = #tpu.dot_dimension_numbers<[1], [0], [0], [1], [0, 0, 1, 1], [], []>} : vector<8x16xf32>, vector<16x32xf32>, vector<8x32xf32> -> vector<8x32xf32>
    %187 = vector.broadcast %47 : vector<1x32xf32> to vector<8x32xf32>
    %188 = arith.addf %186, %187 : vector<8x32xf32>
    %189 = arith.negf %188 : vector<8x32xf32>
    %190 = math.exp %189 : vector<8x32xf32>
    %cst_44 = arith.constant 1.000000e+00 : f32
    %191 = vector.broadcast %cst_44 : f32 to vector<8x32xf32>
    %192 = arith.addf %191, %190 : vector<8x32xf32>
    %193 = arith.divf %191, %192 : vector<8x32xf32>
    %194 = math.tanh %188 : vector<8x32xf32>
    %195 = vector.extract_strided_slice %193 {offsets = [0, 0], sizes = [8, 8], strides = [1, 1]} : vector<8x32xf32> to vector<8x8xf32>
    %196 = vector.extract_strided_slice %193 {offsets = [0, 8], sizes = [8, 8], strides = [1, 1]} : vector<8x32xf32> to vector<8x8xf32>
    %197 = vector.extract_strided_slice %193 {offsets = [0, 24], sizes = [8, 8], strides = [1, 1]} : vector<8x32xf32> to vector<8x8xf32>
    %198 = vector.extract_strided_slice %194 {offsets = [0, 16], sizes = [8, 8], strides = [1, 1]} : vector<8x32xf32> to vector<8x8xf32>
    %199 = arith.mulf %196, %163 : vector<8x8xf32>
    %200 = arith.mulf %195, %198 : vector<8x8xf32>
    %201 = arith.addf %199, %200 : vector<8x8xf32>
    %202 = math.tanh %201 : vector<8x8xf32>
    %203 = arith.mulf %197, %202 : vector<8x8xf32>
    %204 = vector.extract_strided_slice %44 {offsets = [0, 4, 0], sizes = [8, 1, 32], strides = [1, 1, 1]} : vector<8x8x32xf32> to vector<8x1x32xf32>
    %205 = vector.shape_cast %204 : vector<8x1x32xf32> to vector<8x32xf32>
    %cst_45 = arith.constant dense<0.000000e+00> : vector<8x32xf32>
    %206 = tpu.matmul %184, %45, %cst_45 {dimension_numbers = #tpu.dot_dimension_numbers<[1], [0], [0], [1], [0, 0, 1, 1], [], []>} : vector<8x8xf32>, vector<8x32xf32>, vector<8x32xf32> -> vector<8x32xf32>
    %207 = arith.addf %205, %206 : vector<8x32xf32>
    %208 = arith.negf %207 : vector<8x32xf32>
    %209 = math.exp %208 : vector<8x32xf32>
    %cst_46 = arith.constant 1.000000e+00 : f32
    %210 = vector.broadcast %cst_46 : f32 to vector<8x32xf32>
    %211 = arith.addf %210, %209 : vector<8x32xf32>
    %212 = arith.divf %210, %211 : vector<8x32xf32>
    %213 = math.tanh %207 : vector<8x32xf32>
    %214 = vector.extract_strided_slice %212 {offsets = [0, 0], sizes = [8, 8], strides = [1, 1]} : vector<8x32xf32> to vector<8x8xf32>
    %215 = vector.extract_strided_slice %212 {offsets = [0, 8], sizes = [8, 8], strides = [1, 1]} : vector<8x32xf32> to vector<8x8xf32>
    %216 = vector.extract_strided_slice %212 {offsets = [0, 24], sizes = [8, 8], strides = [1, 1]} : vector<8x32xf32> to vector<8x8xf32>
    %217 = vector.extract_strided_slice %213 {offsets = [0, 16], sizes = [8, 8], strides = [1, 1]} : vector<8x32xf32> to vector<8x8xf32>
    %218 = arith.mulf %215, %182 : vector<8x8xf32>
    %219 = arith.mulf %214, %217 : vector<8x8xf32>
    %220 = arith.addf %218, %219 : vector<8x8xf32>
    %221 = math.tanh %220 : vector<8x8xf32>
    %222 = arith.mulf %216, %221 : vector<8x8xf32>
    %223 = tpu.concatenate %222, %203 in 1 : vector<8x8xf32>, vector<8x8xf32> -> vector<8x16xf32>
    %cst_47 = arith.constant dense<0.000000e+00> : vector<8x32xf32>
    %224 = tpu.matmul %223, %46, %cst_47 {dimension_numbers = #tpu.dot_dimension_numbers<[1], [0], [0], [1], [0, 0, 1, 1], [], []>} : vector<8x16xf32>, vector<16x32xf32>, vector<8x32xf32> -> vector<8x32xf32>
    %225 = vector.broadcast %47 : vector<1x32xf32> to vector<8x32xf32>
    %226 = arith.addf %224, %225 : vector<8x32xf32>
    %227 = arith.negf %226 : vector<8x32xf32>
    %228 = math.exp %227 : vector<8x32xf32>
    %cst_48 = arith.constant 1.000000e+00 : f32
    %229 = vector.broadcast %cst_48 : f32 to vector<8x32xf32>
    %230 = arith.addf %229, %228 : vector<8x32xf32>
    %231 = arith.divf %229, %230 : vector<8x32xf32>
    %232 = math.tanh %226 : vector<8x32xf32>
    %233 = vector.extract_strided_slice %231 {offsets = [0, 0], sizes = [8, 8], strides = [1, 1]} : vector<8x32xf32> to vector<8x8xf32>
    %234 = vector.extract_strided_slice %231 {offsets = [0, 8], sizes = [8, 8], strides = [1, 1]} : vector<8x32xf32> to vector<8x8xf32>
    %235 = vector.extract_strided_slice %231 {offsets = [0, 24], sizes = [8, 8], strides = [1, 1]} : vector<8x32xf32> to vector<8x8xf32>
    %236 = vector.extract_strided_slice %232 {offsets = [0, 16], sizes = [8, 8], strides = [1, 1]} : vector<8x32xf32> to vector<8x8xf32>
    %237 = arith.mulf %234, %201 : vector<8x8xf32>
    %238 = arith.mulf %233, %236 : vector<8x8xf32>
    %239 = arith.addf %237, %238 : vector<8x8xf32>
    %240 = math.tanh %239 : vector<8x8xf32>
    %241 = arith.mulf %235, %240 : vector<8x8xf32>
    %242 = vector.extract_strided_slice %44 {offsets = [0, 5, 0], sizes = [8, 1, 32], strides = [1, 1, 1]} : vector<8x8x32xf32> to vector<8x1x32xf32>
    %243 = vector.shape_cast %242 : vector<8x1x32xf32> to vector<8x32xf32>
    %cst_49 = arith.constant dense<0.000000e+00> : vector<8x32xf32>
    %244 = tpu.matmul %222, %45, %cst_49 {dimension_numbers = #tpu.dot_dimension_numbers<[1], [0], [0], [1], [0, 0, 1, 1], [], []>} : vector<8x8xf32>, vector<8x32xf32>, vector<8x32xf32> -> vector<8x32xf32>
    %245 = arith.addf %243, %244 : vector<8x32xf32>
    %246 = arith.negf %245 : vector<8x32xf32>
    %247 = math.exp %246 : vector<8x32xf32>
    %cst_50 = arith.constant 1.000000e+00 : f32
    %248 = vector.broadcast %cst_50 : f32 to vector<8x32xf32>
    %249 = arith.addf %248, %247 : vector<8x32xf32>
    %250 = arith.divf %248, %249 : vector<8x32xf32>
    %251 = math.tanh %245 : vector<8x32xf32>
    %252 = vector.extract_strided_slice %250 {offsets = [0, 0], sizes = [8, 8], strides = [1, 1]} : vector<8x32xf32> to vector<8x8xf32>
    %253 = vector.extract_strided_slice %250 {offsets = [0, 8], sizes = [8, 8], strides = [1, 1]} : vector<8x32xf32> to vector<8x8xf32>
    %254 = vector.extract_strided_slice %250 {offsets = [0, 24], sizes = [8, 8], strides = [1, 1]} : vector<8x32xf32> to vector<8x8xf32>
    %255 = vector.extract_strided_slice %251 {offsets = [0, 16], sizes = [8, 8], strides = [1, 1]} : vector<8x32xf32> to vector<8x8xf32>
    %256 = arith.mulf %253, %220 : vector<8x8xf32>
    %257 = arith.mulf %252, %255 : vector<8x8xf32>
    %258 = arith.addf %256, %257 : vector<8x8xf32>
    %259 = math.tanh %258 : vector<8x8xf32>
    %260 = arith.mulf %254, %259 : vector<8x8xf32>
    %261 = tpu.concatenate %260, %241 in 1 : vector<8x8xf32>, vector<8x8xf32> -> vector<8x16xf32>
    %cst_51 = arith.constant dense<0.000000e+00> : vector<8x32xf32>
    %262 = tpu.matmul %261, %46, %cst_51 {dimension_numbers = #tpu.dot_dimension_numbers<[1], [0], [0], [1], [0, 0, 1, 1], [], []>} : vector<8x16xf32>, vector<16x32xf32>, vector<8x32xf32> -> vector<8x32xf32>
    %263 = vector.broadcast %47 : vector<1x32xf32> to vector<8x32xf32>
    %264 = arith.addf %262, %263 : vector<8x32xf32>
    %265 = arith.negf %264 : vector<8x32xf32>
    %266 = math.exp %265 : vector<8x32xf32>
    %cst_52 = arith.constant 1.000000e+00 : f32
    %267 = vector.broadcast %cst_52 : f32 to vector<8x32xf32>
    %268 = arith.addf %267, %266 : vector<8x32xf32>
    %269 = arith.divf %267, %268 : vector<8x32xf32>
    %270 = math.tanh %264 : vector<8x32xf32>
    %271 = vector.extract_strided_slice %269 {offsets = [0, 0], sizes = [8, 8], strides = [1, 1]} : vector<8x32xf32> to vector<8x8xf32>
    %272 = vector.extract_strided_slice %269 {offsets = [0, 8], sizes = [8, 8], strides = [1, 1]} : vector<8x32xf32> to vector<8x8xf32>
    %273 = vector.extract_strided_slice %269 {offsets = [0, 24], sizes = [8, 8], strides = [1, 1]} : vector<8x32xf32> to vector<8x8xf32>
    %274 = vector.extract_strided_slice %270 {offsets = [0, 16], sizes = [8, 8], strides = [1, 1]} : vector<8x32xf32> to vector<8x8xf32>
    %275 = arith.mulf %272, %239 : vector<8x8xf32>
    %276 = arith.mulf %271, %274 : vector<8x8xf32>
    %277 = arith.addf %275, %276 : vector<8x8xf32>
    %278 = math.tanh %277 : vector<8x8xf32>
    %279 = arith.mulf %273, %278 : vector<8x8xf32>
    %280 = vector.extract_strided_slice %44 {offsets = [0, 6, 0], sizes = [8, 1, 32], strides = [1, 1, 1]} : vector<8x8x32xf32> to vector<8x1x32xf32>
    %281 = vector.shape_cast %280 : vector<8x1x32xf32> to vector<8x32xf32>
    %cst_53 = arith.constant dense<0.000000e+00> : vector<8x32xf32>
    %282 = tpu.matmul %260, %45, %cst_53 {dimension_numbers = #tpu.dot_dimension_numbers<[1], [0], [0], [1], [0, 0, 1, 1], [], []>} : vector<8x8xf32>, vector<8x32xf32>, vector<8x32xf32> -> vector<8x32xf32>
    %283 = arith.addf %281, %282 : vector<8x32xf32>
    %284 = arith.negf %283 : vector<8x32xf32>
    %285 = math.exp %284 : vector<8x32xf32>
    %cst_54 = arith.constant 1.000000e+00 : f32
    %286 = vector.broadcast %cst_54 : f32 to vector<8x32xf32>
    %287 = arith.addf %286, %285 : vector<8x32xf32>
    %288 = arith.divf %286, %287 : vector<8x32xf32>
    %289 = math.tanh %283 : vector<8x32xf32>
    %290 = vector.extract_strided_slice %288 {offsets = [0, 0], sizes = [8, 8], strides = [1, 1]} : vector<8x32xf32> to vector<8x8xf32>
    %291 = vector.extract_strided_slice %288 {offsets = [0, 8], sizes = [8, 8], strides = [1, 1]} : vector<8x32xf32> to vector<8x8xf32>
    %292 = vector.extract_strided_slice %288 {offsets = [0, 24], sizes = [8, 8], strides = [1, 1]} : vector<8x32xf32> to vector<8x8xf32>
    %293 = vector.extract_strided_slice %289 {offsets = [0, 16], sizes = [8, 8], strides = [1, 1]} : vector<8x32xf32> to vector<8x8xf32>
    %294 = arith.mulf %291, %258 : vector<8x8xf32>
    %295 = arith.mulf %290, %293 : vector<8x8xf32>
    %296 = arith.addf %294, %295 : vector<8x8xf32>
    %297 = math.tanh %296 : vector<8x8xf32>
    %298 = arith.mulf %292, %297 : vector<8x8xf32>
    %299 = tpu.concatenate %298, %279 in 1 : vector<8x8xf32>, vector<8x8xf32> -> vector<8x16xf32>
    %cst_55 = arith.constant dense<0.000000e+00> : vector<8x32xf32>
    %300 = tpu.matmul %299, %46, %cst_55 {dimension_numbers = #tpu.dot_dimension_numbers<[1], [0], [0], [1], [0, 0, 1, 1], [], []>} : vector<8x16xf32>, vector<16x32xf32>, vector<8x32xf32> -> vector<8x32xf32>
    %301 = vector.broadcast %47 : vector<1x32xf32> to vector<8x32xf32>
    %302 = arith.addf %300, %301 : vector<8x32xf32>
    %303 = arith.negf %302 : vector<8x32xf32>
    %304 = math.exp %303 : vector<8x32xf32>
    %cst_56 = arith.constant 1.000000e+00 : f32
    %305 = vector.broadcast %cst_56 : f32 to vector<8x32xf32>
    %306 = arith.addf %305, %304 : vector<8x32xf32>
    %307 = arith.divf %305, %306 : vector<8x32xf32>
    %308 = math.tanh %302 : vector<8x32xf32>
    %309 = vector.extract_strided_slice %307 {offsets = [0, 0], sizes = [8, 8], strides = [1, 1]} : vector<8x32xf32> to vector<8x8xf32>
    %310 = vector.extract_strided_slice %307 {offsets = [0, 8], sizes = [8, 8], strides = [1, 1]} : vector<8x32xf32> to vector<8x8xf32>
    %311 = vector.extract_strided_slice %307 {offsets = [0, 24], sizes = [8, 8], strides = [1, 1]} : vector<8x32xf32> to vector<8x8xf32>
    %312 = vector.extract_strided_slice %308 {offsets = [0, 16], sizes = [8, 8], strides = [1, 1]} : vector<8x32xf32> to vector<8x8xf32>
    %313 = arith.mulf %310, %277 : vector<8x8xf32>
    %314 = arith.mulf %309, %312 : vector<8x8xf32>
    %315 = arith.addf %313, %314 : vector<8x8xf32>
    %316 = math.tanh %315 : vector<8x8xf32>
    %317 = arith.mulf %311, %316 : vector<8x8xf32>
    %318 = vector.extract_strided_slice %44 {offsets = [0, 7, 0], sizes = [8, 1, 32], strides = [1, 1, 1]} : vector<8x8x32xf32> to vector<8x1x32xf32>
    %319 = vector.shape_cast %318 : vector<8x1x32xf32> to vector<8x32xf32>
    %cst_57 = arith.constant dense<0.000000e+00> : vector<8x32xf32>
    %320 = tpu.matmul %298, %45, %cst_57 {dimension_numbers = #tpu.dot_dimension_numbers<[1], [0], [0], [1], [0, 0, 1, 1], [], []>} : vector<8x8xf32>, vector<8x32xf32>, vector<8x32xf32> -> vector<8x32xf32>
    %321 = arith.addf %319, %320 : vector<8x32xf32>
    %322 = arith.negf %321 : vector<8x32xf32>
    %323 = math.exp %322 : vector<8x32xf32>
    %cst_58 = arith.constant 1.000000e+00 : f32
    %324 = vector.broadcast %cst_58 : f32 to vector<8x32xf32>
    %325 = arith.addf %324, %323 : vector<8x32xf32>
    %326 = arith.divf %324, %325 : vector<8x32xf32>
    %327 = math.tanh %321 : vector<8x32xf32>
    %328 = vector.extract_strided_slice %326 {offsets = [0, 0], sizes = [8, 8], strides = [1, 1]} : vector<8x32xf32> to vector<8x8xf32>
    %329 = vector.extract_strided_slice %326 {offsets = [0, 8], sizes = [8, 8], strides = [1, 1]} : vector<8x32xf32> to vector<8x8xf32>
    %330 = vector.extract_strided_slice %326 {offsets = [0, 24], sizes = [8, 8], strides = [1, 1]} : vector<8x32xf32> to vector<8x8xf32>
    %331 = vector.extract_strided_slice %327 {offsets = [0, 16], sizes = [8, 8], strides = [1, 1]} : vector<8x32xf32> to vector<8x8xf32>
    %332 = arith.mulf %329, %296 : vector<8x8xf32>
    %333 = arith.mulf %328, %331 : vector<8x8xf32>
    %334 = arith.addf %332, %333 : vector<8x8xf32>
    %335 = math.tanh %334 : vector<8x8xf32>
    %336 = arith.mulf %330, %335 : vector<8x8xf32>
    %337 = tpu.concatenate %336, %317 in 1 : vector<8x8xf32>, vector<8x8xf32> -> vector<8x16xf32>
    %cst_59 = arith.constant dense<0.000000e+00> : vector<8x32xf32>
    %338 = tpu.matmul %337, %46, %cst_59 {dimension_numbers = #tpu.dot_dimension_numbers<[1], [0], [0], [1], [0, 0, 1, 1], [], []>} : vector<8x16xf32>, vector<16x32xf32>, vector<8x32xf32> -> vector<8x32xf32>
    %339 = vector.broadcast %47 : vector<1x32xf32> to vector<8x32xf32>
    %340 = arith.addf %338, %339 : vector<8x32xf32>
    %341 = arith.negf %340 : vector<8x32xf32>
    %342 = math.exp %341 : vector<8x32xf32>
    %cst_60 = arith.constant 1.000000e+00 : f32
    %343 = vector.broadcast %cst_60 : f32 to vector<8x32xf32>
    %344 = arith.addf %343, %342 : vector<8x32xf32>
    %345 = arith.divf %343, %344 : vector<8x32xf32>
    %346 = math.tanh %340 : vector<8x32xf32>
    %347 = vector.extract_strided_slice %345 {offsets = [0, 0], sizes = [8, 8], strides = [1, 1]} : vector<8x32xf32> to vector<8x8xf32>
    %348 = vector.extract_strided_slice %345 {offsets = [0, 8], sizes = [8, 8], strides = [1, 1]} : vector<8x32xf32> to vector<8x8xf32>
    %349 = vector.extract_strided_slice %345 {offsets = [0, 24], sizes = [8, 8], strides = [1, 1]} : vector<8x32xf32> to vector<8x8xf32>
    %350 = vector.extract_strided_slice %346 {offsets = [0, 16], sizes = [8, 8], strides = [1, 1]} : vector<8x32xf32> to vector<8x8xf32>
    %351 = arith.mulf %348, %315 : vector<8x8xf32>
    %352 = arith.mulf %347, %350 : vector<8x8xf32>
    %353 = arith.addf %351, %352 : vector<8x8xf32>
    %354 = math.tanh %353 : vector<8x8xf32>
    %355 = arith.mulf %349, %354 : vector<8x8xf32>
    %356 = tpu.concatenate %89, %127, %165, %203, %241, %279, %317, %355 in 1 : vector<8x8xf32>, vector<8x8xf32>, vector<8x8xf32>, vector<8x8xf32>, vector<8x8xf32>, vector<8x8xf32>, vector<8x8xf32>, vector<8x8xf32> -> vector<8x64xf32>
    %c0_61 = arith.constant 0 : index
    %c0_62 = arith.constant 0 : index
    %357 = vector.load %arg12[%c0_61, %c0_62] : memref<64x2xf32, #tpu.memory_space<vmem>>, vector<64x2xf32>
    %cst_63 = arith.constant dense<0.000000e+00> : vector<8x2xf32>
    %358 = tpu.matmul %356, %357, %cst_63 {dimension_numbers = #tpu.dot_dimension_numbers<[1], [0], [0], [1], [0, 0, 1, 1], [], []>} : vector<8x64xf32>, vector<64x2xf32>, vector<8x2xf32> -> vector<8x2xf32>
    %c0_64 = arith.constant 0 : index
    %c0_65 = arith.constant 0 : index
    %359 = vector.load %arg2[%c0_64, %c0_65] : memref<8x4xf32, #tpu.memory_space<vmem>>, vector<8x4xf32>
    %c0_66 = arith.constant 0 : index
    %c0_67 = arith.constant 0 : index
    %360 = vector.load %arg13[%c0_66, %c0_67] : memref<4x2xf32, #tpu.memory_space<vmem>>, vector<4x2xf32>
    %cst_68 = arith.constant dense<0.000000e+00> : vector<8x2xf32>
    %361 = tpu.matmul %359, %360, %cst_68 {dimension_numbers = #tpu.dot_dimension_numbers<[1], [0], [0], [1], [0, 0, 1, 1], [], []>} : vector<8x4xf32>, vector<4x2xf32>, vector<8x2xf32> -> vector<8x2xf32>
    %362 = arith.addf %358, %361 : vector<8x2xf32>
    %c0_69 = arith.constant 0 : index
    %c0_70 = arith.constant 0 : index
    %363 = vector.load %arg14[%c0_69, %c0_70] : memref<1x2xf32, #tpu.memory_space<vmem>>, vector<1x2xf32>
    %364 = vector.broadcast %363 : vector<1x2xf32> to vector<8x2xf32>
    %365 = arith.addf %362, %364 : vector<8x2xf32>
    %c0_71 = arith.constant 0 : index
    %c0_72 = arith.constant 0 : index
    %366 = vector.load %arg15[%c0_71, %c0_72] : memref<8x2xf32, #tpu.memory_space<vmem>>, vector<8x2xf32>
    tpu.vector_store %arg15[%c0_71, %c0_72], %365 {strides = array<i32>} : memref<8x2xf32, #tpu.memory_space<vmem>>, vector<8x2xf32>,
    return
  }
  func.func @transform_0(%arg0: i32) -> (i32, i32, i32) {
    %c0_i32 = arith.constant 0 : i32
    %c0_i32_0 = arith.constant 0 : i32
    %c0_i32_1 = arith.constant 0 : i32
    %c0_i32_2 = arith.constant 0 : i32
    return %c0_i32, %c0_i32_0, %c0_i32_1 : i32, i32, i32
  }
  func.func @transform_1(%arg0: i32) -> (i32, i32) {
    %c0_i32 = arith.constant 0 : i32
    %c0_i32_0 = arith.constant 0 : i32
    %c0_i32_1 = arith.constant 0 : i32
    return %c0_i32, %c0_i32_0 : i32, i32
  }
  func.func @transform_2(%arg0: i32) -> (i32, i32) {
    %c0_i32 = arith.constant 0 : i32
    %c0_i32_0 = arith.constant 0 : i32
    %c0_i32_1 = arith.constant 0 : i32
    return %c0_i32, %c0_i32_0 : i32, i32
  }
  func.func @transform_3(%arg0: i32) -> (i32, i32) {
    %c0_i32 = arith.constant 0 : i32
    %c0_i32_0 = arith.constant 0 : i32
    %c0_i32_1 = arith.constant 0 : i32
    return %c0_i32, %c0_i32_0 : i32, i32
  }
  func.func @transform_4(%arg0: i32) -> (i32, i32) {
    %c0_i32 = arith.constant 0 : i32
    %c0_i32_0 = arith.constant 0 : i32
    %c0_i32_1 = arith.constant 0 : i32
    return %c0_i32, %c0_i32_0 : i32, i32
  }
  func.func @transform_5(%arg0: i32) -> (i32, i32) {
    %c0_i32 = arith.constant 0 : i32
    %c0_i32_0 = arith.constant 0 : i32
    %c0_i32_1 = arith.constant 0 : i32
    return %c0_i32, %c0_i32_0 : i32, i32
  }
  func.func @transform_6(%arg0: i32) -> (i32, i32) {
    %c0_i32 = arith.constant 0 : i32
    %c0_i32_0 = arith.constant 0 : i32
    %c0_i32_1 = arith.constant 0 : i32
    return %c0_i32, %c0_i32_0 : i32, i32
  }
  func.func @transform_7(%arg0: i32) -> (i32, i32) {
    %c0_i32 = arith.constant 0 : i32
    %c0_i32_0 = arith.constant 0 : i32
    %c0_i32_1 = arith.constant 0 : i32
    return %c0_i32, %c0_i32_0 : i32, i32
  }
  func.func @transform_8(%arg0: i32) -> (i32, i32) {
    %c0_i32 = arith.constant 0 : i32
    %c0_i32_0 = arith.constant 0 : i32
    %c0_i32_1 = arith.constant 0 : i32
    return %c0_i32, %c0_i32_0 : i32, i32
  }
  func.func @transform_9(%arg0: i32) -> (i32, i32) {
    %c0_i32 = arith.constant 0 : i32
    %c0_i32_0 = arith.constant 0 : i32
    %c0_i32_1 = arith.constant 0 : i32
    return %c0_i32, %c0_i32_0 : i32, i32
  }
  func.func @transform_10(%arg0: i32) -> (i32, i32) {
    %c0_i32 = arith.constant 0 : i32
    %c0_i32_0 = arith.constant 0 : i32
    %c0_i32_1 = arith.constant 0 : i32
    return %c0_i32, %c0_i32_0 : i32, i32
  }
  func.func @transform_11(%arg0: i32) -> (i32, i32) {
    %c0_i32 = arith.constant 0 : i32
    %c0_i32_0 = arith.constant 0 : i32
    %c0_i32_1 = arith.constant 0 : i32
    return %c0_i32, %c0_i32_0 : i32, i32
  }
  func.func @transform_12(%arg0: i32) -> (i32, i32) {
    %c0_i32 = arith.constant 0 : i32
    %c0_i32_0 = arith.constant 0 : i32
    %c0_i32_1 = arith.constant 0 : i32
    return %c0_i32, %c0_i32_0 : i32, i32
  }
  func.func @transform_13(%arg0: i32) -> (i32, i32) {
    %c0_i32 = arith.constant 0 : i32
    %c0_i32_0 = arith.constant 0 : i32
    %c0_i32_1 = arith.constant 0 : i32
    return %c0_i32, %c0_i32_0 : i32, i32
  }
  func.func @transform_14(%arg0: i32) -> (i32, i32) {
    %c0_i32 = arith.constant 0 : i32
    %c0_i32_0 = arith.constant 0 : i32
    %c0_i32_1 = arith.constant 0 : i32
    return %c0_i32, %c0_i32_0 : i32, i32
  }
}

</mosaic_0001>

<bundles_post_ra>
// kernel: tpu_custom_call.1
= control target key start
LH: loop header
LB: loop body
LE: loop exit
PB: predicated region body
PF: predicated region fallthrough
CT: control target
= control target key end

     0   :  { %vm128_vm0 = vcmask 1045504   ;;  %vm79_vm1 = vcmask 1046528   ;;  %s5884_s29 = smov 32   ;;  %s5885_s30 = smov 16   ;;  %vm177_vm2 = vcmask 130048   ;;  %vm186_vm3 = vcmask 261120   ;;  %s7518_s0 = inlined_call_operand.vmem [shape: f32[8,10,16], index: 0, kind: input, shape index: {}]   ;;  %s7519_s2 = inlined_call_operand.vmem [shape: f32[48,8], index: 2, kind: input, shape index: {}]   ;;  %s7520_s3 = inlined_call_operand.vmem [shape: f32[1,8], index: 3, kind: input, shape index: {}]   ;;  %s7521_s4 = inlined_call_operand.vmem [shape: f32[24,16], index: 4, kind: input, shape index: {}]   ;;  %s7522_s6 = inlined_call_operand.vmem [shape: f32[16,32], index: 6, kind: input, shape index: {}]   ;;  %s7523_s7 = inlined_call_operand.vmem [shape: f32[8,32], index: 7, kind: input, shape index: {}]   ;;  %s7524_s5 = inlined_call_operand.vmem [shape: f32[1,16], index: 5, kind: input, shape index: {}]   ;;  %s7525_s8 = inlined_call_operand.vmem [shape: f32[1,32], index: 8, kind: input, shape index: {}]   ;;  %s7526_s9 = inlined_call_operand.vmem [shape: f32[16,32], index: 9, kind: input, shape index: {}]   ;;  %s7527_s10 = inlined_call_operand.vmem [shape: f32[1,32], index: 10, kind: input, shape index: {}]   ;;  %s7528_s11 = inlined_call_operand.vmem [shape: f32[64,2], index: 11, kind: input, shape index: {}]   ;;  %s7529_s12 = inlined_call_operand.vmem [shape: f32[4,2], index: 12, kind: input, shape index: {}]   ;;  %s7530_s1 = inlined_call_operand.vmem [shape: f32[8,4], index: 1, kind: input, shape index: {}]   ;;  %s7531_s13 = inlined_call_operand.vmem [shape: f32[1,2], index: 13, kind: input, shape index: {}]   ;;  %s7532_s14 = inlined_call_operand.vmem [shape: f32[8,2], index: 14, kind: output, shape index: {}]  }
   0x1   :  { %v5972_v0 = vld [vmem:[%s7518_s0] sm:$0xff]  ;;  %v48_v1 = vld [vmem:[%s7518_s0 + $0x8] sm:$0x3]  ;;  %v5980_v2 = vld [vmem:[%s7518_s0 + $0x10] sm:$0xff]  ;;  %vm201_vm4 = vcmask 392192   ;;  %vm418_vm5 = vcmask 1040384  }
   0x2   :  { %v129_v3 = vrot.slane %v5972_v0, 2  ;;  %v130_v4 = vrot.slane %v48_v1, 2  ;;  %v80_v5 = vrot.slane %v5972_v0, 1  ;;  %v81_v6 = vrot.slane %v48_v1, 1  ;;  %v50_v7 = vld [vmem:[%s7518_s0 + $0x18] sm:$0x3] }
   0x3   :  { %v132_v8 = vrot.slane %v5980_v2, 2  ;;  %v133_v9 = vrot.slane %v50_v7, 2  ;;  %v83_v10 = vrot.slane %v5980_v2, 1  ;;  %v84_v11 = vrot.slane %v50_v7, 1  ;;  %v5992_v12 = vld [vmem:[%s7518_s0 + $0x30] sm:$0xff]  ;;  %v5997_v13 = vld [vmem:[%s7518_s0 + $0x20] sm:$0xff] }
   0x4   :  { %v131_v14 = vsel %vm128_vm0, %v129_v3, %v130_v4  ;;  %v82_v15 = vsel %vm79_vm1, %v80_v5, %v81_v6  ;;  %v54_v16 = vld [vmem:[%s7518_s0 + $0x38] sm:$0x3]  ;;  %v52_v17 = vld [vmem:[%s7518_s0 + $0x28] sm:$0x3]  ;;  %v89_v18 = vrot.slane %v5992_v12, 1  ;;  %v86_v19 = vrot.slane %v5997_v13, 1 }
   0x5   :  { %153 = vrot.lane.b32.xlu1 %v131_v14, %s5884_s29  ;;  %104 = vrot.lane.b32.xlu0 %v82_v15, %s5885_s30  ;;  %v134_v20 = vsel %vm128_vm0, %v132_v8, %v133_v9  ;;  %v85_v21 = vsel %vm79_vm1, %v83_v10, %v84_v11  ;;  %v90_v22 = vrot.slane %v54_v16, 1  ;;  %v87_v23 = vrot.slane %v52_v17, 1  ;;  %v6019_v26 = vld [vmem:[%s7518_s0 + $0x50] sm:$0xff]  ;;  %v58_v27 = vld [vmem:[%s7518_s0 + $0x58] sm:$0x3]  ;;  %s5893_s21 = smov 24  }
   0x6   :  { %v138_v24 = vrot.slane %v5992_v12, 2  ;;  %v139_v25 = vrot.slane %v54_v16, 2  ;;  %v135_v30 = vrot.slane %v5997_v13, 2  ;;  %v136_v31 = vrot.slane %v52_v17, 2  ;;  %v6030_v32 = vld [vmem:[%s7518_s0 + $0x40] sm:$0xff]  ;;  %v196_v34 = vld [vmem:[%s7519_s2 + $0x8] sm:$0xff] }
   0x7   :  { %v91_v28 = vsel %vm79_vm1, %v89_v18, %v90_v22  ;;  %v88_v29 = vsel %vm79_vm1, %v86_v19, %v87_v23  ;;  %v195_v33 = vld [vmem:[%s7519_s2] sm:$0xff]  ;;  %v56_v35 = vld [vmem:[%s7518_s0 + $0x48] sm:$0x3]  ;;  %v197_v36 = vld [vmem:[%s7519_s2 + $0x10] sm:$0xff]  ;;  %v95_v39 = vrot.slane %v6019_v26, 1  ;;  %v96_v40 = vrot.slane %v58_v27, 1 }
   0x8   :  { %v198_v37 = vld [vmem:[%s7519_s2 + $0x18] sm:$0xff]  ;;  %v140_v38 = vsel %vm128_vm0, %v138_v24, %v139_v25  ;;  %v5169_v41 = vpack.c.bf16 %v196_v34, %v195_v33  ;;  %v137_v42 = vsel %vm128_vm0, %v135_v30, %v136_v31  ;;  %v92_v43 = vrot.slane %v6030_v32, 1  ;;  %v199_v46 = vld [vmem:[%s7519_s2 + $0x20] sm:$0xff]  ;;  %v200_v47 = vld [vmem:[%s7519_s2 + $0x28] sm:$0xff] }
   0x9   :  { %155 = vrot.lane.b32.xlu1 %v134_v20, %s5884_s29  ;;  %106 = vrot.lane.b32.xlu0 %v85_v21, %s5885_s30  ;;  %v93_v44 = vrot.slane %v56_v35, 1  ;;  %v5173_v45 = vpack.c.bf16 %v198_v37, %v197_v36  ;;  %v97_v48 = vsel %vm79_vm1, %v95_v39, %v96_v40  ;;  %v144_v49 = vrot.slane %v6019_v26, 2  ;;  %v6068_v54 = vld [vmem:[%s7518_s0 + $0x70] sm:$0xff]  ;;  %v62_v55 = vld [vmem:[%s7518_s0 + $0x78] sm:$0x3] }
   0xa   :  { %5170 = vmatprep.subr.bf16.mxu0 %v5169_v41  ;;  %v145_v50 = vrot.slane %v58_v27, 2  ;;  %v141_v52 = vrot.slane %v6030_v32, 2  ;;  %v142_v53 = vrot.slane %v56_v35, 2  ;;  %v5177_v56 = vpack.c.bf16 %v200_v47, %v199_v46  ;;  %v6076_v57 = vld [vmem:[%s7518_s0 + $0x60] sm:$0xff]  ;;  %v60_v58 = vld [vmem:[%s7518_s0 + $0x68] sm:$0x3] }
   0xb   :  { %5172 = vmatpush3.bf16.msra.mxu0 %v5169_v41  ;;  %v94_v51 = vsel %vm79_vm1, %v92_v43, %v93_v44  ;;  %v101_v59 = vrot.slane %v6068_v54, 1  ;;  %v102_v60 = vrot.slane %v62_v55, 1  ;;  %v98_v63 = vrot.slane %v6076_v57, 1  ;;  %v4778_v41 = vld [vmem:[%s7520_s3] ss:$0 sm:$0xff] }
   0xc   :  { %5174 = vmatprep.subr.bf16.mxu0 %v5173_v45  ;;  %v146_v61 = vsel %vm128_vm0, %v144_v49, %v145_v50  ;;  %v143_v62 = vsel %vm128_vm0, %v141_v52, %v142_v53  ;;  %v99_v1 = vrot.slane %v60_v58, 1  ;;  %v150_v4 = vrot.slane %v6068_v54, 2 }
   0xd   :  { %110 = vrot.lane.b32.xlu1 %v91_v28, %s5885_s30  ;;  %108 = vrot.lane.b32.xlu0 %v88_v29, %s5885_s30  ;;  %v103_v3 = vsel %vm79_vm1, %v101_v59, %v102_v60  ;;  %v151_v6 = vrot.slane %v62_v55, 2  ;;  %v147_v7 = vrot.slane %v6076_v57, 2  ;;  %v148_v8 = vrot.slane %v60_v58, 2 }
   0xe   :  { %v100_v5 = vsel %vm79_vm1, %v98_v63, %v99_v1  ;;  %v564_v1 = vld [vmem:[%s7521_s4] sm:$0xff]  ;;  %vm547_vm6 = vcmask 64512   ;;  %vm567_vm7 = vcmask 195584   ;;  %vm5888_vm8 = vmmov 0  }
   0xf   :  { %5176 = vmatpush3.bf16.msra.mxu0 %v5173_v45  ;;  %v152_v9 = vsel %vm128_vm0, %v150_v4, %v151_v6  ;;  %v149_v10 = vsel %vm128_vm0, %v147_v7, %v148_v8  ;;  %vm1208_vm9 = vcmask 1041409   ;;  %vm1211_vm10 = vcmask 1042434  }
  0x10   :  { %5178 = vmatprep.subr.bf16.mxu0 %v5177_v56  ;;  %vm1214_vm11 = vcmask 1043459   ;;  %vm1217_vm12 = vcmask 1044484   ;;  %vm1220_vm13 = vcmask 1045509   ;;  %vm1223_vm14 = vcmask 1046534  }
  0x11   :  { %159 = vrot.lane.b32.xlu1 %v140_v38, %s5884_s29  ;;  %157 = vrot.lane.b32.xlu0 %v137_v42, %s5884_s29  ;;  %vm1226_vm15 = vcmask 1047559  }
  0x13   :  { %5180 = vmatpush3.bf16.msra.mxu0 %v5177_v56 }
  0x15   :  { %114 = vrot.lane.b32.xlu1 %v97_v48, %s5885_s30  ;;  %112 = vrot.lane.b32.xlu0 %v94_v51, %s5885_s30 }
  0x19   :  { %163 = vrot.lane.b32.xlu1 %v146_v61, %s5884_s29  ;;  %161 = vrot.lane.b32.xlu0 %v143_v62, %s5884_s29 }
  0x1d   :  { %118 = vrot.lane.b32.xlu1 %v103_v3, %s5885_s30  ;;  %116 = vrot.lane.b32.xlu0 %v100_v5, %s5885_s30  ;;  %v565_v3 = vld [vmem:[%s7521_s4 + $0x8] sm:$0xff] }
  0x1e   :  { %v5181_v5 = vpack.c.bf16 %v565_v3, %v564_v1 }
  0x20   :  { %5182 = vmatprep.subr.bf16.mxu0 %v5181_v5  ;;  %5225 = vmatprep.subr.bf16.mxu1 %v5181_v5 }
  0x21   :  { %167 = vrot.lane.b32.xlu1 %v152_v9, %s5884_s29  ;;  %165 = vrot.lane.b32.xlu0 %v149_v10, %s5884_s29 }
  0x22   :  { %5227 = vmatpush3.bf16.msra.mxu1 %v5181_v5 }
  0x77   :  { %v154_v11 = vpop.permute.xlu1 %153  ;;  %v105_v14 = vpop.permute.xlu0 %104 }
  0x78   :  { %v178_v15 = vsel %vm177_vm2, %v5972_v0, %v105_v14 }
  0x79   :  { %v187_v16 = vsel %vm186_vm3, %v178_v15, %v154_v11 }
  0x7a   :  { %5003 = vmatprep.mubr.msk.f32.mxu0 %vm201_vm4, %v187_v16 }
  0x7b   :  { %v156_v17 = vpop.permute.xlu1 %155  ;;  %v107_v18 = vpop.permute.xlu0 %106 }
  0x7c   :  { %v179_v19 = vsel %vm177_vm2, %v5980_v2, %v107_v18  ;;  %v566_v18 = vld [vmem:[%s7521_s4 + $0x10] sm:$0xff]  ;;  %s5886_s4 = smov 8  }
  0x7d   :  { %v188_v20 = vsel %vm186_vm3, %v179_v19, %v156_v17  ;;  %5226 = vmatprep.subr.mxu1 %v566_v18 }
  0x7e   :  { %5004 = vmatmul.mubr.msk.f32.vlgmr.msra.gmra.mrb[0].mxu0 %vm201_vm4, %v188_v20  ;;  %5228 = vmatpush3.msra.mxu1 %v566_v18 }
  0x7f   :  { %v111_v21 = vpop.permute.xlu1 %110  ;;  %v109_v22 = vpop.permute.xlu0 %108  ;;  %5184 = vmatpush3.bf16.msra.mxu0 %v5181_v5 }
  0x80   :  { %v181_v23 = vsel %vm177_vm2, %v5992_v12, %v111_v21  ;;  %v180_v0 = vsel %vm177_vm2, %v5997_v13, %v109_v22  ;;  %5019 = vmatprep.subr.mxu0 %v566_v18 }
  0x83   :  { %v160_v24 = vpop.permute.xlu1 %159  ;;  %v158_v25 = vpop.permute.xlu0 %157  ;;  %5020 = vmatpush3.msra.mxu0 %v566_v18 }
  0x84   :  { %v190_v27 = vsel %vm186_vm3, %v181_v23, %v160_v24  ;;  %v189_v28 = vsel %vm186_vm3, %v180_v0, %v158_v25 }
  0x85   :  { %5006 = vmatprep.mubr.msk.f32.mxu0 %vm201_vm4, %v189_v28 }
  0x86   :  { %5007 = vmatmul.mubr.msk.f32.gmra.mrb[2].mxu0 %vm201_vm4, %v190_v27 }
  0x87   :  { %v115_v2 = vpop.permute.xlu1 %114  ;;  %v113_v29 = vpop.permute.xlu0 %112 }
  0x88   :  { %v183_v30 = vsel %vm177_vm2, %v6019_v26, %v115_v2  ;;  %v182_v12 = vsel %vm177_vm2, %v6030_v32, %v113_v29 }
  0x8b   :  { %v164_v31 = vpop.permute.xlu1 %163  ;;  %v162_v13 = vpop.permute.xlu0 %161 }
  0x8c   :  { %v192_v33 = vsel %vm186_vm3, %v183_v30, %v164_v31  ;;  %v191_v34 = vsel %vm186_vm3, %v182_v12, %v162_v13 }
  0x8d   :  { %5009 = vmatprep.mubr.msk.f32.mxu0 %vm201_vm4, %v191_v34 }
  0x8e   :  { %5010 = vmatmul.mubr.msk.f32.gmra.mrb[4].mxu0 %vm201_vm4, %v192_v33 }
  0x8f   :  { %v119_v35 = vpop.permute.xlu1 %118  ;;  %v117_v36 = vpop.permute.xlu0 %116 }
  0x90   :  { %v185_v37 = vsel %vm177_vm2, %v6068_v54, %v119_v35  ;;  %v184_v26 = vsel %vm177_vm2, %v6076_v57, %v117_v36 }
  0x93   :  { %v168_v38 = vpop.permute.xlu1 %167  ;;  %v166_v32 = vpop.permute.xlu0 %165 }
  0x94   :  { %v194_v39 = vsel %vm186_vm3, %v185_v37, %v168_v38  ;;  %v193_v40 = vsel %vm186_vm3, %v184_v26, %v166_v32 }
  0x95   :  { %5012 = vmatprep.mubr.msk.f32.mxu0 %vm201_vm4, %v193_v40 }
  0x96   :  { %5013 = vmatmul.mubr.msk.f32.gmra.mrb[6].mxu0 %vm201_vm4, %v194_v39 }
 0x151   :  { %v5005_v42 = vpop.f32.mrb[0].mxu0 }
 0x152   :  { %v339_v43 = vadd.f32 %v5005_v42, %v4778_v41  ;;  %v292_v44 = vpop.f32.mrb[1].mxu0 }
 0x153   :  { %v338_v45 = vadd.f32 %v4778_v41, %v292_v44 }
 0x154   :  { %v4780_v46 = vmul.f32 -1.442695, %v339_v43 }
 0x155   :  { %v4779_v47 = vmul.f32 -1.442695, %v338_v45 }
 0x156   :  { %5239 = vpow2.f32 %v4780_v46 }
 0x157   :  { %5241 = vpow2.f32 %v4779_v47 }
 0x159   :  { %v5008_v48 = vpop.f32.mrb[2].mxu0 }
 0x15a   :  { %v341_v49 = vadd.f32 %v5008_v48, %v4778_v41  ;;  %v302_v50 = vpop.f32.mrb[3].mxu0 }
 0x15b   :  { %v340_v51 = vadd.f32 %v4778_v41, %v302_v50 }
 0x15c   :  { %v4782_v52 = vmul.f32 -1.442695, %v341_v49 }
 0x15d   :  { %v4781_v53 = vmul.f32 -1.442695, %v340_v51 }
 0x15e   :  { %5243 = vpow2.f32 %v4782_v52 }
 0x15f   :  { %5245 = vpow2.f32 %v4781_v53 }
 0x160   :  { %v5240_v54 = vpop.eup %5239 }
 0x161   :  { %v5242_v55 = vpop.eup %5241  ;;  %v371_v56 = vadd.f32 1.0, %v5240_v54  ;;  %v5011_v57 = vpop.f32.mrb[4].mxu0 }
 0x162   :  { %v370_v58 = vadd.f32 1.0, %v5242_v55  ;;  %v343_v59 = vadd.f32 %v5011_v57, %v4778_v41  ;;  %v312_v60 = vpop.f32.mrb[5].mxu0 }
 0x163   :  { %5247 = vrcp.f32 %v371_v56  ;;  %v342_v61 = vadd.f32 %v4778_v41, %v312_v60 }
 0x164   :  { %5249 = vrcp.f32 %v370_v58  ;;  %v4784_v62 = vmul.f32 -1.442695, %v343_v59 }
 0x165   :  { %v4783_v63 = vmul.f32 -1.442695, %v342_v61 }
 0x166   :  { %5251 = vpow2.f32 %v4784_v62 }
 0x167   :  { %5253 = vpow2.f32 %v4783_v63 }
 0x168   :  { %v5244_v4 = vpop.eup %5243 }
 0x169   :  { %v5246_v6 = vpop.eup %5245  ;;  %v373_v7 = vadd.f32 1.0, %v5244_v4  ;;  %v5014_v8 = vpop.f32.mrb[6].mxu0 }
 0x16a   :  { %v372_v9 = vadd.f32 1.0, %v5246_v6  ;;  %v345_v10 = vadd.f32 %v5014_v8, %v4778_v41  ;;  %v322_v11 = vpop.f32.mrb[7].mxu0 }
 0x16b   :  { %5255 = vrcp.f32 %v373_v7  ;;  %v344_v14 = vadd.f32 %v4778_v41, %v322_v11 }
 0x16c   :  { %5257 = vrcp.f32 %v372_v9  ;;  %v4786_v15 = vmul.f32 -1.442695, %v345_v10 }
 0x16d   :  { %v5248_v16 = vpop.eup %5247  ;;  %v4785_v17 = vmul.f32 -1.442695, %v344_v14 }
 0x16e   :  { %v5250_v19 = vpop.eup %5249  ;;  %v403_v20 = vrot.slane %v5248_v16, 7  ;;  %5259 = vpow2.f32 %v4786_v15 }
 0x16f   :  { %v402_v21 = vrot.slane %v5250_v19, 7  ;;  %5261 = vpow2.f32 %v4785_v17 }
 0x170   :  { %v5252_v22 = vpop.eup %5251  ;;  %v6144_v23 = vsel %vm418_vm5, 0.0, %v403_v20  ;;  %v428_v0 = vsel %vm418_vm5, %v403_v20, 0.0 }
 0x171   :  { %v5254_v24 = vpop.eup %5253  ;;  %v375_v25 = vadd.f32 1.0, %v5252_v22  ;;  %v454_v27 = vrot.slane %v6144_v23, 1  ;;  %v455_v28 = vrot.slane %v428_v0, 1  ;;  %v6149_v2 = vsel %vm418_vm5, 0.0, %v402_v21 }
 0x172   :  { %v374_v29 = vadd.f32 1.0, %v5254_v24  ;;  %v427_v30 = vsel %vm418_vm5, %v402_v21, 0.0  ;;  %v451_v12 = vrot.slane %v6149_v2, 1  ;;  %v502_v31 = vrot.slane %v6144_v23, 2 }
 0x173   :  { %5263 = vrcp.f32 %v375_v25  ;;  %v456_v13 = vsel %vm79_vm1, %v454_v27, %v455_v28  ;;  %v452_v33 = vrot.slane %v427_v30, 1  ;;  %v503_v34 = vrot.slane %v428_v0, 2 }
 0x174   :  { %5265 = vrcp.f32 %v374_v29  ;;  %477 = vrot.lane.b32.xlu1 %v456_v13, %s5886_s4  ;;  %v499_v35 = vrot.slane %v6149_v2, 2  ;;  %v500_v36 = vrot.slane %v427_v30, 2 }
 0x175   :  { %v5256_v37 = vpop.eup %5255  ;;  %v453_v26 = vsel %vm79_vm1, %v451_v12, %v452_v33  ;;  %v504_v40 = vsel %vm128_vm0, %v502_v31, %v503_v34 }
 0x176   :  { %v5258_v38 = vpop.eup %5257  ;;  %v405_v32 = vrot.slane %v5256_v37, 7  ;;  %475 = vrot.lane.b32.xlu0 %v453_v26, %s5886_s4  ;;  %v501_v42 = vsel %vm128_vm0, %v499_v35, %v500_v36 }
 0x177   :  { %v404_v39 = vrot.slane %v5258_v38, 7 }
 0x178   :  { %v5260_v41 = vpop.eup %5259  ;;  %525 = vrot.lane.b32.xlu1 %v504_v40, %s5885_s30  ;;  %v6163_v43 = vsel %vm418_vm5, 0.0, %v405_v32  ;;  %v430_v44 = vsel %vm418_vm5, %v405_v32, 0.0 }
 0x179   :  { %v5262_v45 = vpop.eup %5261  ;;  %v377_v46 = vadd.f32 1.0, %v5260_v41  ;;  %v460_v47 = vrot.slane %v6163_v43, 1  ;;  %v461_v48 = vrot.slane %v430_v44, 1  ;;  %v6168_v49 = vsel %vm418_vm5, 0.0, %v404_v39 }
 0x17a   :  { %v376_v50 = vadd.f32 1.0, %v5262_v45  ;;  %523 = vrot.lane.b32.xlu0 %v501_v42, %s5885_s30  ;;  %v429_v51 = vsel %vm418_vm5, %v404_v39, 0.0  ;;  %v457_v52 = vrot.slane %v6168_v49, 1  ;;  %v508_v53 = vrot.slane %v6163_v43, 2 }
 0x17b   :  { %5267 = vrcp.f32 %v377_v46  ;;  %v462_v54 = vsel %vm79_vm1, %v460_v47, %v461_v48  ;;  %v458_v55 = vrot.slane %v429_v51, 1  ;;  %v509_v56 = vrot.slane %v430_v44, 2 }
 0x17c   :  { %5269 = vrcp.f32 %v376_v50  ;;  %481 = vrot.lane.b32.xlu1 %v462_v54, %s5886_s4  ;;  %v505_v57 = vrot.slane %v6168_v49, 2  ;;  %v506_v58 = vrot.slane %v429_v51, 2 }
 0x17d   :  { %v5264_v59 = vpop.eup %5263  ;;  %v459_v60 = vsel %vm79_vm1, %v457_v52, %v458_v55  ;;  %v510_v1 = vsel %vm128_vm0, %v508_v53, %v509_v56 }
 0x17e   :  { %v5266_v61 = vpop.eup %5265  ;;  %v407_v62 = vrot.slane %v5264_v59, 7  ;;  %479 = vrot.lane.b32.xlu0 %v459_v60, %s5886_s4  ;;  %v507_v3 = vsel %vm128_vm0, %v505_v57, %v506_v58 }
 0x17f   :  { %v406_v63 = vrot.slane %v5266_v61, 7 }
 0x180   :  { %529 = vrot.lane.b32.xlu1 %v510_v1, %s5885_s30  ;;  %v6183_v4 = vsel %vm418_vm5, 0.0, %v407_v62  ;;  %v432_v5 = vsel %vm418_vm5, %v407_v62, 0.0 }
 0x181   :  { %v466_v6 = vrot.slane %v6183_v4, 1  ;;  %v467_v7 = vrot.slane %v432_v5, 1  ;;  %v6188_v8 = vsel %vm418_vm5, 0.0, %v406_v63  ;;  %v431_v9 = vsel %vm418_vm5, %v406_v63, 0.0 }
 0x182   :  { %527 = vrot.lane.b32.xlu0 %v507_v3, %s5885_s30  ;;  %v463_v10 = vrot.slane %v6188_v8, 1  ;;  %v464_v11 = vrot.slane %v431_v9, 1  ;;  %v514_v15 = vrot.slane %v6183_v4, 2  ;;  %v515_v16 = vrot.slane %v432_v5, 2 }
 0x183   :  { %v468_v14 = vsel %vm79_vm1, %v466_v6, %v467_v7  ;;  %v511_v18 = vrot.slane %v6188_v8, 2  ;;  %v512_v19 = vrot.slane %v431_v9, 2  ;;  %v761_v9 = vld [vmem:[%s7522_s6 + $0x8] sm:$0xff] }
 0x184   :  { %485 = vrot.lane.b32.xlu1 %v468_v14, %s5886_s4  ;;  %v465_v17 = vsel %vm79_vm1, %v463_v10, %v464_v11  ;;  %v516_v24 = vsel %vm128_vm0, %v514_v15, %v515_v16  ;;  %v5887_v11 = vmov 0.0   ;;  %v6255_v14 = vld [vmem:[%s7523_s7] sm:$0xff] }
 0x185   :  { %v5268_v20 = vpop.eup %5267  ;;  %v513_v25 = vsel %vm128_vm0, %v511_v18, %v512_v19  ;;  %5049 = vmatprep.subr.mxu0 %v5887_v11  ;;  %v4795_v15 = vld [vmem:[%s7524_s5] ss:$0 sm:$0xff] }
 0x186   :  { %v5270_v21 = vpop.eup %5269  ;;  %v409_v22 = vrot.slane %v5268_v20, 7  ;;  %483 = vrot.lane.b32.xlu0 %v465_v17, %s5886_s4 }
 0x187   :  { %v408_v0 = vrot.slane %v5270_v21, 7 }
 0x188   :  { %533 = vrot.lane.b32.xlu1 %v516_v24, %s5885_s30  ;;  %v426_v27 = vsel %vm418_vm5, 0.0, %v409_v22  ;;  %v434_v28 = vsel %vm418_vm5, %v409_v22, 0.0 }
 0x189   :  { %v472_v29 = vrot.slane %v426_v27, 1  ;;  %v473_v30 = vrot.slane %v434_v28, 1  ;;  %v425_v12 = vsel %vm418_vm5, 0.0, %v408_v0  ;;  %v433_v31 = vsel %vm418_vm5, %v408_v0, 0.0 }
 0x18a   :  { %531 = vrot.lane.b32.xlu0 %v513_v25, %s5885_s30  ;;  %v469_v13 = vrot.slane %v425_v12, 1  ;;  %v470_v33 = vrot.slane %v433_v31, 1  ;;  %v520_v35 = vrot.slane %v426_v27, 2  ;;  %v521_v36 = vrot.slane %v434_v28, 2 }
 0x18b   :  { %v474_v34 = vsel %vm79_vm1, %v472_v29, %v473_v30  ;;  %v517_v26 = vrot.slane %v425_v12, 2  ;;  %v518_v38 = vrot.slane %v433_v31, 2 }
 0x18c   :  { %489 = vrot.lane.b32.xlu1 %v474_v34, %s5886_s4  ;;  %v471_v37 = vsel %vm79_vm1, %v469_v13, %v470_v33  ;;  %v522_v32 = vsel %vm128_vm0, %v520_v35, %v521_v36 }
 0x18d   :  { %v519_v39 = vsel %vm128_vm0, %v517_v26, %v518_v38 }
 0x18e   :  { %487 = vrot.lane.b32.xlu0 %v471_v37, %s5886_s4 }
 0x190   :  { %537 = vrot.lane.b32.xlu1 %v522_v32, %s5885_s30 }
 0x192   :  { %535 = vrot.lane.b32.xlu0 %v519_v39, %s5885_s30 }
 0x1e6   :  { %v478_v40 = vpop.permute.xlu1 %477 }
 0x1e7   :  { %v549_v46 = vsel %vm547_vm6, %v6144_v23, %v478_v40 }
 0x1e8   :  { %v476_v41 = vpop.permute.xlu0 %475 }
 0x1e9   :  { %v548_v44 = vsel %vm547_vm6, %v6149_v2, %v476_v41 }
 0x1ea   :  { %v526_v42 = vpop.permute.xlu1 %525 }
 0x1eb   :  { %v557_v48 = vsel %vm177_vm2, %v549_v46, %v526_v42 }
 0x1ec   :  { %v524_v45 = vpop.permute.xlu0 %523 }
 0x1ed   :  { %v556_v47 = vsel %vm177_vm2, %v548_v44, %v524_v45 }
 0x1ee   :  { %5021 = vmatprep.mubr.msk.f32.mxu0 %vm567_vm7, %v556_v47  ;;  %v482_v50 = vpop.permute.xlu1 %481 }
 0x1ef   :  { %5022 = vmatmul.mubr.msk.f32.vlgmr.msra.gmra.mrb[8].mxu0 %vm567_vm7, %v557_v48  ;;  %v551_v2 = vsel %vm547_vm6, %v6163_v43, %v482_v50 }
 0x1f0   :  { %v480_v51 = vpop.permute.xlu0 %479  ;;  %5050 = vmatpush3.msra.mxu0 %v6255_v14  ;;  %5051 = vmatprep.mubr.msk.f32.mxu0 %vm5888_vm8, %v5887_v11 }
 0x1f1   :  { %v550_v53 = vsel %vm547_vm6, %v6168_v49, %v480_v51 }
 0x1f2   :  { %v530_v52 = vpop.permute.xlu1 %529 }
 0x1f3   :  { %v559_v55 = vsel %vm177_vm2, %v551_v2, %v530_v52  ;;  %5052 = vmatmul.mubr.f32.vlgmr.msra.gmra.mrb[10].mxu0 %v5887_v11 }
 0x1f4   :  { %v528_v54 = vpop.permute.xlu0 %527  ;;  %5058 = vmatprep.mubr.msk.f32.mxu0 %vm5888_vm8, %v5887_v11 }
 0x1f5   :  { %v558_v23 = vsel %vm177_vm2, %v550_v53, %v528_v54 }
 0x1f6   :  { %5024 = vmatprep.mubr.msk.f32.mxu1 %vm567_vm7, %v558_v23  ;;  %v486_v56 = vpop.permute.xlu1 %485 }
 0x1f7   :  { %5025 = vmatmul.mubr.msk.f32.vlgmr.msra.gmra.mrb[0].mxu1 %vm567_vm7, %v559_v55  ;;  %v553_v49 = vsel %vm547_vm6, %v6183_v4, %v486_v56 }
 0x1f8   :  { %v484_v57 = vpop.permute.xlu0 %483 }
 0x1f9   :  { %v552_v59 = vsel %vm547_vm6, %v6188_v8, %v484_v57  ;;  %v760_v8 = vld [vmem:[%s7522_s6] sm:$0xff] }
 0x1fa   :  { %v534_v58 = vpop.permute.xlu1 %533  ;;  %v5185_v10 = vpack.c.bf16 %v761_v9, %v760_v8 }
 0x1fb   :  { %v561_v61 = vsel %vm177_vm2, %v553_v49, %v534_v58 }
 0x1fc   :  { %v532_v60 = vpop.permute.xlu0 %531  ;;  %5186 = vmatprep.subr.bf16.mxu1 %v5185_v10 }
 0x1fd   :  { %v560_v43 = vsel %vm177_vm2, %v552_v59, %v532_v60  ;;  %5188 = vmatpush3.bf16.msra.mxu1 %v5185_v10 }
 0x1fe   :  { %5027 = vmatprep.mubr.msk.f32.mxu1 %vm567_vm7, %v560_v43  ;;  %v490_v62 = vpop.permute.xlu1 %489 }
 0x1ff   :  { %5028 = vmatmul.mubr.msk.f32.gmra.mrb[2].mxu1 %vm567_vm7, %v561_v61  ;;  %v555_v6 = vsel %vm547_vm6, %v426_v27, %v490_v62  ;;  %v4812_v62 = vld [vmem:[%s7525_s8] ss:$0 sm:$0xff]  ;;  %s5889_s8 = smov 112  }
 0x200   :  { %v488_v63 = vpop.permute.xlu0 %487 }
 0x201   :  { %v554_v3 = vsel %vm547_vm6, %v425_v12, %v488_v63 }
 0x202   :  { %v538_v1 = vpop.permute.xlu1 %537 }
 0x203   :  { %v563_v4 = vsel %vm177_vm2, %v555_v6, %v538_v1 }
 0x204   :  { %v536_v5 = vpop.permute.xlu0 %535 }
 0x205   :  { %v562_v7 = vsel %vm177_vm2, %v554_v3, %v536_v5 }
 0x206   :  { %5030 = vmatprep.mubr.msk.f32.mxu1 %vm567_vm7, %v562_v7 }
 0x207   :  { %5031 = vmatmul.mubr.msk.f32.gmra.mrb[4].mxu1 %vm567_vm7, %v563_v4 }
 0x2c2   :  { %v5023_v16 = vpop.f32.mrb[8].mxu0 }
 0x2c3   :  { %v705_v17 = vadd.f32 %v5023_v16, %v4795_v15  ;;  %v658_v18 = vpop.f32.mrb[9].mxu0 }
 0x2c4   :  { %v704_v19 = vadd.f32 %v4795_v15, %v658_v18 }
 0x2c5   :  { %v4797_v20 = vmul.f32 -1.442695, %v705_v17 }
 0x2c6   :  { %v4796_v21 = vmul.f32 -1.442695, %v704_v19  ;;  %v979_v43 = vpop.f32.mrb[10].mxu0 }
 0x2c7   :  { %5271 = vpow2.f32 %v4797_v20  ;;  %v5053_v61 = vpop.f32.mrb[11].mxu0  ;;  %v984_v63 = vrot.slane %v979_v43, 1  ;;  %v986_v8 = vrot.slane %v979_v43, 3  ;;  %v985_v10 = vrot.slane %v979_v43, 2 }
 0x2c8   :  { %5273 = vpow2.f32 %v4796_v21 }
 0x2ca   :  { %v5026_v22 = vpop.f32.mrb[0].mxu1 }
 0x2cb   :  { %v707_v0 = vadd.f32 %v5026_v22, %v4795_v15  ;;  %v668_v24 = vpop.f32.mrb[1].mxu1  ;;  %v988_v22 = vrot.slane %v979_v43, 5 }
 0x2cc   :  { %v706_v25 = vadd.f32 %v4795_v15, %v668_v24 }
 0x2cd   :  { %v4799_v27 = vmul.f32 -1.442695, %v707_v0 }
 0x2ce   :  { %v4798_v28 = vmul.f32 -1.442695, %v706_v25  ;;  %v987_v25 = vrot.slane %v979_v43, 4 }
 0x2cf   :  { %5275 = vpow2.f32 %v4799_v27 }
 0x2d0   :  { %5277 = vpow2.f32 %v4798_v28 }
 0x2d1   :  { %v5272_v29 = vpop.eup %5271 }
 0x2d2   :  { %v5274_v30 = vpop.eup %5273  ;;  %v737_v12 = vadd.f32 1.0, %v5272_v29  ;;  %v5029_v31 = vpop.f32.mrb[2].mxu1 }
 0x2d3   :  { %v736_v13 = vadd.f32 1.0, %v5274_v30  ;;  %v709_v33 = vadd.f32 %v5029_v31, %v4795_v15  ;;  %v678_v34 = vpop.f32.mrb[3].mxu1 }
 0x2d4   :  { %v708_v35 = vadd.f32 %v4795_v15, %v678_v34 }
 0x2d5   :  { %5279 = vrcp.f32 %v736_v13  ;;  %v4801_v36 = vmul.f32 -1.442695, %v709_v33  ;;  %v990_v13 = vrot.slane %v979_v43, 7 }
 0x2d6   :  { %5281 = vrcp.f32 %v737_v12  ;;  %v4800_v37 = vmul.f32 -1.442695, %v708_v35  ;;  %v989_v35 = vrot.slane %v979_v43, 6 }
 0x2d7   :  { %5283 = vpow2.f32 %v4801_v36 }
 0x2d8   :  { %5285 = vpow2.f32 %v4800_v37 }
 0x2d9   :  { %v5276_v26 = vpop.eup %5275 }
 0x2da   :  { %v5278_v38 = vpop.eup %5277  ;;  %v739_v32 = vadd.f32 1.0, %v5276_v26  ;;  %v5032_v39 = vpop.f32.mrb[4].mxu1 }
 0x2db   :  { %v738_v40 = vadd.f32 1.0, %v5278_v38  ;;  %v711_v41 = vadd.f32 %v5032_v39, %v4795_v15  ;;  %v688_v42 = vpop.f32.mrb[5].mxu1 }
 0x2dc   :  { %v710_v44 = vadd.f32 %v4795_v15, %v688_v42 }
 0x2dd   :  { %5287 = vrcp.f32 %v738_v40  ;;  %v4803_v45 = vmul.f32 -1.442695, %v711_v41 }
 0x2de   :  { %5289 = vrcp.f32 %v739_v32  ;;  %v4802_v46 = vmul.f32 -1.442695, %v710_v44 }
 0x2df   :  { %v5280_v47 = vpop.eup %5279  ;;  %5291 = vpow2.f32 %v4803_v45 }
 0x2e0   :  { %v5282_v48 = vpop.eup %5281  ;;  %5293 = vpow2.f32 %v4802_v46  ;;  %5037 = vmatprep.mubr.msk.f32.mxu1 %vm177_vm2, %v5280_v47 }
 0x2e1   :  { %v5284_v50 = vpop.eup %5283  ;;  %5038 = vmatmul.mubr.msk.f32.vlgmr.msra.gmra.mrb[6].mxu1 %vm177_vm2, %v5282_v48 }
 0x2e2   :  { %v5286_v51 = vpop.eup %5285  ;;  %v741_v52 = vadd.f32 1.0, %v5284_v50 }
 0x2e3   :  { %v740_v53 = vadd.f32 1.0, %v5286_v51 }
 0x2e5   :  { %5295 = vrcp.f32 %v740_v53 }
 0x2e6   :  { %5297 = vrcp.f32 %v741_v52 }
 0x2e7   :  { %v5288_v54 = vpop.eup %5287 }
 0x2e8   :  { %v5290_v2 = vpop.eup %5289  ;;  %5040 = vmatprep.mubr.msk.f32.mxu1 %vm177_vm2, %v5288_v54 }
 0x2e9   :  { %v5292_v23 = vpop.eup %5291  ;;  %5041 = vmatmul.mubr.msk.f32.gmra.mrb[8].mxu1 %vm177_vm2, %v5290_v2 }
 0x2ea   :  { %v5294_v55 = vpop.eup %5293  ;;  %v743_v56 = vadd.f32 1.0, %v5292_v23 }
 0x2eb   :  { %v742_v57 = vadd.f32 1.0, %v5294_v55 }
 0x2ed   :  { %5299 = vrcp.f32 %v742_v57 }
 0x2ee   :  { %5301 = vrcp.f32 %v743_v56 }
 0x2ef   :  { %v5296_v58 = vpop.eup %5295 }
 0x2f0   :  { %v5298_v59 = vpop.eup %5297  ;;  %5043 = vmatprep.mubr.msk.f32.mxu1 %vm177_vm2, %v5296_v58 }
 0x2f1   :  { %5044 = vmatmul.mubr.msk.f32.gmra.mrb[10].mxu1 %vm177_vm2, %v5298_v59 }
 0x2f7   :  { %v5300_v60 = vpop.eup %5299 }
 0x2f8   :  { %v5302_v49 = vpop.eup %5301  ;;  %5046 = vmatprep.mubr.msk.f32.mxu1 %vm177_vm2, %v5300_v60 }
 0x2f9   :  { %5047 = vmatmul.mubr.msk.f32.gmra.mrb[12].mxu1 %vm177_vm2, %v5302_v49 }
 0x2fa   :  { %5082 = vmatprep.mubr.msk.f32.mxu1 %vm5888_vm8, %v5887_v11 }
 0x3b4   :  { %v5039_v1 = vpop.f32.mrb[6].mxu1 }
 0x3b5   :  { %v6279_v3 = vadd.f32 %v5039_v1, %v4812_v62  ;;  %v852_v5 = vpop.f32.mrb[7].mxu1 }
 0x3b6   :  { %v6281_v6 = vadd.f32 %v4812_v62, %v852_v5 }
 0x3b7   :  { %v1000_v7 = vadd.f32 %v984_v63, %v6279_v3 }
 0x3b8   :  { %v999_v4 = vadd.f32 %v979_v43, %v6281_v6 }
 0x3b9   :  { %5303 = vtanh.f32 %v1000_v7  ;;  %v4814_v42 = vmul.f32 -1.442695, %v1000_v7 }
 0x3ba   :  { %5305 = vtanh.f32 %v999_v4  ;;  %v4813_v44 = vmul.f32 -1.442695, %v999_v4 }
 0x3bc   :  { %v5042_v9 = vpop.f32.mrb[8].mxu1 }
 0x3bd   :  { %v6285_v15 = vadd.f32 %v5042_v9, %v4812_v62  ;;  %v862_v16 = vpop.f32.mrb[9].mxu1 }
 0x3be   :  { %v6287_v17 = vadd.f32 %v4812_v62, %v862_v16 }
 0x3bf   :  { %v1002_v18 = vadd.f32 %v986_v8, %v6285_v15 }
 0x3c0   :  { %v1001_v19 = vadd.f32 %v985_v10, %v6287_v17 }
 0x3c1   :  { %5307 = vtanh.f32 %v1002_v18  ;;  %v4816_v45 = vmul.f32 -1.442695, %v1002_v18 }
 0x3c2   :  { %5309 = vtanh.f32 %v1001_v19  ;;  %v4815_v47 = vmul.f32 -1.442695, %v1001_v19 }
 0x3c3   :  { %v5304_v20 = vpop.eup %5303 }
 0x3c4   :  { %1081 = vrot.lane.b32.xlu0 %v5304_v20, %s5889_s8  ;;  %v5045_v21 = vpop.f32.mrb[10].mxu1  ;;  %v5306_v28 = vpop.eup %5305 }
 0x3c5   :  { %v6292_v0 = vadd.f32 %v5045_v21, %v4812_v62  ;;  %v872_v24 = vpop.f32.mrb[11].mxu1 }
 0x3c6   :  { %v6294_v27 = vadd.f32 %v4812_v62, %v872_v24 }
 0x3c7   :  { %v1004_v29 = vadd.f32 %v988_v22, %v6292_v0 }
 0x3c8   :  { %1079 = vrot.lane.b32.xlu0 %v5306_v28, %s5889_s8  ;;  %v1003_v30 = vadd.f32 %v987_v25, %v6294_v27 }
 0x3c9   :  { %5311 = vtanh.f32 %v1004_v29  ;;  %v4818_v50 = vmul.f32 -1.442695, %v1004_v29 }
 0x3ca   :  { %5313 = vtanh.f32 %v1003_v30  ;;  %v4817_v51 = vmul.f32 -1.442695, %v1003_v30 }
 0x3cb   :  { %v5308_v12 = vpop.eup %5307 }
 0x3cc   :  { %1085 = vrot.lane.b32.xlu1 %v5308_v12, %s5889_s8  ;;  %v5048_v31 = vpop.f32.mrb[12].mxu1  ;;  %v5310_v37 = vpop.eup %5309 }
 0x3cd   :  { %v6300_v33 = vadd.f32 %v5048_v31, %v4812_v62  ;;  %v882_v34 = vpop.f32.mrb[13].mxu1 }
 0x3ce   :  { %v6302_v36 = vadd.f32 %v4812_v62, %v882_v34 }
 0x3cf   :  { %v1006_v26 = vadd.f32 %v990_v13, %v6300_v33 }
 0x3d0   :  { %1083 = vrot.lane.b32.xlu1 %v5310_v37, %s5889_s8  ;;  %v1005_v38 = vadd.f32 %v989_v35, %v6302_v36 }
 0x3d1   :  { %5315 = vtanh.f32 %v1006_v26  ;;  %v4820_v23 = vmul.f32 -1.442695, %v1006_v26 }
 0x3d2   :  { %5317 = vtanh.f32 %v1005_v38  ;;  %v4819_v55 = vmul.f32 -1.442695, %v1005_v38 }
 0x3d3   :  { %v5312_v32 = vpop.eup %5311  ;;  %5319 = vpow2.f32 %v4814_v42 }
 0x3d4   :  { %v5314_v39 = vpop.eup %5313  ;;  %1089 = vrot.lane.b32.xlu1 %v5312_v32, %s5889_s8  ;;  %5321 = vpow2.f32 %v4813_v44 }
 0x3d5   :  { %1087 = vrot.lane.b32.xlu0 %v5314_v39, %s5889_s8  ;;  %5323 = vpow2.f32 %v4816_v45 }
 0x3d6   :  { %5325 = vpow2.f32 %v4815_v47 }
 0x3db   :  { %v5316_v40 = vpop.eup %5315 }
 0x3dc   :  { %v5318_v41 = vpop.eup %5317  ;;  %1093 = vrot.lane.b32.xlu1 %v5316_v40, %s5889_s8 }
 0x3dd   :  { %1091 = vrot.lane.b32.xlu0 %v5318_v41, %s5889_s8  ;;  %v5320_v46 = vpop.eup %5319 }
 0x3de   :  { %v1032_v48 = vadd.f32 1.0, %v5320_v46  ;;  %v5322_v52 = vpop.eup %5321 }
 0x3df   :  { %v5324_v53 = vpop.eup %5323  ;;  %v1031_v54 = vadd.f32 1.0, %v5322_v52 }
 0x3e0   :  { %5327 = vrcp.f32 %v1032_v48  ;;  %v1034_v2 = vadd.f32 1.0, %v5324_v53  ;;  %v5326_v56 = vpop.eup %5325 }
 0x3e1   :  { %5329 = vpow2.f32 %v4818_v50  ;;  %v1033_v58 = vadd.f32 1.0, %v5326_v56 }
 0x3e2   :  { %5331 = vpow2.f32 %v4817_v51 }
 0x3e3   :  { %5333 = vrcp.f32 %v1031_v54 }
 0x3e4   :  { %5335 = vrcp.f32 %v1034_v2 }
 0x3e5   :  { %5337 = vpow2.f32 %v4820_v23 }
 0x3e6   :  { %5339 = vpow2.f32 %v4819_v55 }
 0x3e7   :  { %5341 = vrcp.f32 %v1033_v58 }
 0x3ea   :  { %v6311_v57 = vpop.eup %5327 }
 0x3eb   :  { %v5330_v59 = vpop.eup %5329  ;;  %v1064_v26 = vmul.f32 0.0, %v6311_v57 }
 0x3ec   :  { %v5332_v60 = vpop.eup %5331  ;;  %v1036_v61 = vadd.f32 1.0, %v5330_v59 }
 0x3ed   :  { %v1035_v62 = vadd.f32 1.0, %v5332_v60  ;;  %v6315_v63 = vpop.eup %5333 }
 0x3ee   :  { %v6318_v7 = vpop.eup %5335  ;;  %5343 = vrcp.f32 %v1036_v61  ;;  %v1063_v39 = vmul.f32 0.0, %v6315_v63 }
 0x3ef   :  { %v5338_v4 = vpop.eup %5337  ;;  %5345 = vrcp.f32 %v1035_v62  ;;  %v1066_v42 = vmul.f32 0.0, %v6318_v7 }
 0x3f0   :  { %v5340_v8 = vpop.eup %5339  ;;  %v1038_v16 = vadd.f32 1.0, %v5338_v4  ;;  %v5890_v4 = vmov 0.0|0.0  }
 0x3f1   :  { %v1037_v18 = vadd.f32 1.0, %v5340_v8  ;;  %v6323_v19 = vpop.eup %5341  ;;  %5189 = vmatprep.subr.bf16.mxu0 %v5890_v4  ;;  %v907_v8 = vld [vmem:[%s7526_s9] sm:$0xff]  ;;  %5195 = vmatprep.subr.bf16.mxu1 %v5890_v4 }
 0x3f2   :  { %5347 = vrcp.f32 %v1038_v16  ;;  %v1065_v46 = vmul.f32 0.0, %v6323_v19 }
 0x3f3   :  { %5349 = vrcp.f32 %v1037_v18 }
 0x3f8   :  { %v6327_v22 = vpop.eup %5343 }
 0x3f9   :  { %v6329_v25 = vpop.eup %5345  ;;  %v1068_v51 = vmul.f32 0.0, %v6327_v22 }
 0x3fa   :  { %v1067_v53 = vmul.f32 0.0, %v6329_v25 }
 0x3fc   :  { %v6335_v12 = vpop.eup %5347 }
 0x3fd   :  { %v6337_v13 = vpop.eup %5349  ;;  %v1070_v58 = vmul.f32 0.0, %v6335_v12 }
 0x3fe   :  { %v1069_v60 = vmul.f32 0.0, %v6337_v13 }
 0x436   :  { %v1082_v49 = vpop.permute.xlu0 %1081 }
 0x437   :  { %v1104_v43 = vmul.f32 %v6311_v57, %v1082_v49 }
 0x439   :  { %1121 = vrot.lane.b32.xlu0 %v1104_v43, %s5886_s4 }
 0x43a   :  { %v1080_v1 = vpop.permute.xlu0 %1079 }
 0x43b   :  { %v1103_v5 = vmul.f32 %v6315_v63, %v1080_v1 }
 0x43d   :  { %1119 = vrot.lane.b32.xlu0 %v1103_v5, %s5886_s4 }
 0x43e   :  { %v1086_v9 = vpop.permute.xlu1 %1085 }
 0x43f   :  { %v1106_v10 = vmul.f32 %v6318_v7, %v1086_v9  ;;  %v908_v9 = vld [vmem:[%s7526_s9 + $0x8] sm:$0xff]  ;;  %s5891_s9 = smov 104  }
 0x441   :  { %1125 = vrot.lane.b32.xlu1 %v1106_v10, %s5886_s4  ;;  %v6389_v10 = vpack.c.bf16 %v908_v9, %v907_v8 }
 0x442   :  { %v1084_v20 = vpop.permute.xlu1 %1083 }
 0x443   :  { %v1105_v21 = vmul.f32 %v6323_v19, %v1084_v20  ;;  %5191 = vmatpush3.bf16.msra.mxu0 %v6389_v10  ;;  %5197 = vmatpush3.bf16.msra.mxu1 %v6389_v10 }
 0x444   :  { %5061 = vmatprep.subr.mxu0 %v5887_v11  ;;  %5198 = vmatprep.subr.bf16.mxu1 %v5890_v4 }
 0x445   :  { %1123 = vrot.lane.b32.xlu1 %v1105_v21, %s5886_s4 }
 0x446   :  { %v1090_v24 = vpop.permute.xlu1 %1089 }
 0x447   :  { %v1108_v28 = vmul.f32 %v6327_v22, %v1090_v24  ;;  %v1088_v29 = vpop.permute.xlu0 %1087 }
 0x448   :  { %v1107_v30 = vmul.f32 %v6329_v25, %v1088_v29 }
 0x449   :  { %1129 = vrot.lane.b32.xlu1 %v1108_v28, %s5886_s4 }
 0x44a   :  { %1127 = vrot.lane.b32.xlu0 %v1107_v30, %s5886_s4 }
 0x44e   :  { %v1094_v31 = vpop.permute.xlu1 %1093 }
 0x44f   :  { %v1110_v34 = vmul.f32 %v6335_v12, %v1094_v31  ;;  %v1092_v35 = vpop.permute.xlu0 %1091 }
 0x450   :  { %v1109_v37 = vmul.f32 %v6337_v13, %v1092_v35 }
 0x451   :  { %1133 = vrot.lane.b32.xlu1 %v1110_v34, %s5886_s4 }
 0x452   :  { %1131 = vrot.lane.b32.xlu0 %v1109_v37, %s5886_s4 }
 0x4ab   :  { %v1122_v38 = vpop.permute.xlu0 %1121 }
 0x4ac   :  { %v6344_v32 = vadd.f32 %v1122_v38, %v1064_v26 }
 0x4ae   :  { %5351 = vtanh.f32 %v6344_v32 }
 0x4af   :  { %v1120_v40 = vpop.permute.xlu0 %1119 }
 0x4b0   :  { %v6348_v41 = vadd.f32 %v1120_v40, %v1063_v39 }
 0x4b2   :  { %5353 = vtanh.f32 %v6348_v41 }
 0x4b3   :  { %v1126_v44 = vpop.permute.xlu1 %1125 }
 0x4b4   :  { %v6352_v45 = vadd.f32 %v1126_v44, %v1066_v42 }
 0x4b6   :  { %5355 = vtanh.f32 %v6352_v45 }
 0x4b7   :  { %v1124_v47 = vpop.permute.xlu1 %1123 }
 0x4b8   :  { %v5352_v48 = vpop.eup %5351  ;;  %v6356_v50 = vadd.f32 %v1124_v47, %v1065_v46 }
 0x4b9   :  { %1169 = vrot.lane.b32.xlu0 %v5352_v48, %s5885_s30 }
 0x4ba   :  { %5357 = vtanh.f32 %v6356_v50 }
 0x4bb   :  { %v1130_v52 = vpop.permute.xlu1 %1129 }
 0x4bc   :  { %v5354_v54 = vpop.eup %5353  ;;  %v6362_v2 = vadd.f32 %v1130_v52, %v1068_v51  ;;  %v1128_v23 = vpop.permute.xlu0 %1127 }
 0x4bd   :  { %v6364_v55 = vadd.f32 %v1128_v23, %v1067_v53  ;;  %1167 = vrot.lane.b32.xlu0 %v5354_v54, %s5885_s30 }
 0x4be   :  { %5359 = vtanh.f32 %v6362_v2 }
 0x4bf   :  { %5361 = vtanh.f32 %v6364_v55 }
 0x4c0   :  { %v5356_v56 = vpop.eup %5355 }
 0x4c1   :  { %1173 = vrot.lane.b32.xlu1 %v5356_v56, %s5885_s30 }
 0x4c3   :  { %v1134_v59 = vpop.permute.xlu1 %1133 }
 0x4c4   :  { %v5358_v49 = vpop.eup %5357  ;;  %v6372_v43 = vadd.f32 %v1134_v59, %v1070_v58  ;;  %v1132_v61 = vpop.permute.xlu0 %1131 }
 0x4c5   :  { %v6374_v62 = vadd.f32 %v1132_v61, %v1069_v60  ;;  %1171 = vrot.lane.b32.xlu1 %v5358_v49, %s5885_s30 }
 0x4c6   :  { %5363 = vtanh.f32 %v6372_v43 }
 0x4c7   :  { %5365 = vtanh.f32 %v6374_v62 }
 0x4c8   :  { %v5360_v1 = vpop.eup %5359 }
 0x4c9   :  { %v5362_v5 = vpop.eup %5361  ;;  %1177 = vrot.lane.b32.xlu1 %v5360_v1, %s5885_s30 }
 0x4ca   :  { %1175 = vrot.lane.b32.xlu0 %v5362_v5, %s5885_s30 }
 0x4d0   :  { %v5364_v16 = vpop.eup %5363 }
 0x4d1   :  { %v5366_v18 = vpop.eup %5365  ;;  %1181 = vrot.lane.b32.xlu1 %v5364_v16, %s5885_s30 }
 0x4d2   :  { %1179 = vrot.lane.b32.xlu0 %v5366_v18, %s5885_s30 }
 0x52b   :  { %v1170_v20 = vpop.permute.xlu0 %1169 }
 0x52c   :  { %v1192_v30 = vmul.f32 %v6311_v57, %v1170_v20 }
 0x52e   :  { %v1207_v26 = vrot.slane %v1192_v30, 7 }
 0x52f   :  { %v1168_v28 = vpop.permute.xlu0 %1167 }
 0x530   :  { %v1191_v31 = vmul.f32 %v6315_v63, %v1168_v28 }
 0x532   :  { %v1209_v40 = vsel %vm1208_vm9, %v1207_v26, %v1191_v31 }
 0x533   :  { %v1174_v21 = vpop.permute.xlu1 %1173 }
 0x534   :  { %v1194_v38 = vmul.f32 %v6318_v7, %v1174_v21 }
 0x536   :  { %v1213_v44 = vrot.slane %v1194_v38, 5 }
 0x537   :  { %v1172_v24 = vpop.permute.xlu1 %1171 }
 0x538   :  { %v1193_v29 = vmul.f32 %v6323_v19, %v1172_v24 }
 0x53a   :  { %v1210_v35 = vrot.slane %v1193_v29, 6 }
 0x53b   :  { %v1178_v39 = vpop.permute.xlu1 %1177 }
 0x53c   :  { %v1176_v34 = vpop.permute.xlu0 %1175  ;;  %v1212_v42 = vsel %vm1211_vm10, %v1210_v35, %v1209_v40  ;;  %v1196_v57 = vmul.f32 %v6327_v22, %v1178_v39 }
 0x53d   :  { %v1195_v37 = vmul.f32 %v6329_v25, %v1176_v34  ;;  %v1215_v46 = vsel %vm1214_vm11, %v1213_v44, %v1212_v42  ;;  %v6435_v34 = vld [vmem:[%s7527_s10] ss:$0 sm:$0xff] }
 0x53e   :  { %v1219_v51 = vrot.slane %v1196_v57, 3 }
 0x53f   :  { %v1216_v19 = vrot.slane %v1195_v37, 4 }
 0x541   :  { %v1218_v7 = vsel %vm1217_vm12, %v1216_v19, %v1215_v46 }
 0x542   :  { %v1221_v54 = vsel %vm1220_vm13, %v1219_v51, %v1218_v7 }
 0x543   :  { %v1182_v63 = vpop.permute.xlu1 %1181 }
 0x544   :  { %v1198_v25 = vmul.f32 %v6335_v12, %v1182_v63  ;;  %v1180_v47 = vpop.permute.xlu0 %1179 }
 0x545   :  { %v1197_v48 = vmul.f32 %v6337_v13, %v1180_v47 }
 0x546   :  { %v1225_v53 = vrot.slane %v1198_v25, 1 }
 0x547   :  { %v1222_v52 = vrot.slane %v1197_v48, 2 }
 0x549   :  { %v1224_v22 = vsel %vm1223_vm14, %v1222_v52, %v1221_v54 }
 0x54a   :  { %v1227_v23 = vsel %vm1226_vm15, %v1225_v53, %v1224_v22 }
 0x54b   :  { %1228 = vrot.lane.b32.xlu0 %v1227_v23, %s5891_s9 }
 0x5bd   :  { %v1229_v12 = vpop.permute.xlu0 %1228 }
 0x5be   :  { %v1231_v56 = vsel %vm547_vm6, %v1229_v12, 0.0 }
 0x5bf   :  { %5059 = vmatmul.mubr.msk.f32.vlgmr.msra.gmra.mrb[12].mxu0 %vm177_vm2, %v1231_v56 }
 0x5c0   :  { %5062 = vmatpush3.msra.mxu0 %v6255_v14  ;;  %5063 = vmatprep.mubr.msk.f32.mxu0 %vm5888_vm8, %v5887_v11 }
 0x5c1   :  { %5192 = vmatprep.subr.bf16.mxu0 %v5890_v4 }
 0x5c3   :  { %5064 = vmatmul.mubr.msk.f32.vlgmr.msra.gmra.mrb[14].mxu0 %vm547_vm6, %v1229_v12 }
 0x5c4   :  { %5194 = vmatpush3.bf16.msra.mxu0 %v6389_v10  ;;  %5070 = vmatprep.mubr.msk.f32.mxu0 %vm5888_vm8, %v5887_v11 }
 0x5c5   :  { %5073 = vmatprep.subr.mxu0 %v5887_v11 }
 0x692   :  { %v1307_v13 = vpop.f32.mrb[12].mxu0 }
 0x693   :  { %v5060_v58 = vpop.f32.mrb[13].mxu0  ;;  %v1308_v37 = vadd.f32 %v6435_v34, %v1307_v13 }
 0x695   :  { %v4823_v23 = vmul.f32 -1.442695, %v1308_v37 }
 0x696   :  { %v1403_v59 = vpop.f32.mrb[14].mxu0 }
 0x697   :  { %v5065_v60 = vpop.f32.mrb[15].mxu0  ;;  %v1408_v49 = vrot.slane %v1403_v59, 7  ;;  %v1424_v14 = vadd.f32 %v1403_v59, %v6279_v3  ;;  %v1409_v1 = vrot.slane %v1403_v59, 1  ;;  %v1411_v5 = vrot.slane %v1403_v59, 3 }
 0x698   :  { %v1410_v8 = vrot.slane %v1403_v59, 2  ;;  %v1413_v16 = vrot.slane %v1403_v59, 5  ;;  %v1412_v21 = vrot.slane %v1403_v59, 4  ;;  %v1414_v28 = vrot.slane %v1403_v59, 6 }
 0x699   :  { %v1423_v61 = vadd.f32 %v1408_v49, %v6281_v6  ;;  %5367 = vtanh.f32 %v1424_v14  ;;  %v1425_v9 = vadd.f32 %v1409_v1, %v6287_v17  ;;  %v1427_v18 = vadd.f32 %v1411_v5, %v6294_v27 }
 0x69a   :  { %v1426_v24 = vadd.f32 %v1410_v8, %v6285_v15  ;;  %v1429_v29 = vadd.f32 %v1413_v16, %v6302_v36  ;;  %v1428_v31 = vadd.f32 %v1412_v21, %v6292_v0  ;;  %v1430_v35 = vadd.f32 %v1414_v28, %v6300_v33 }
 0x69b   :  { %5369 = vtanh.f32 %v1423_v61  ;;  %v4826_v57 = vmul.f32 -1.442695, %v1424_v14  ;;  %v4825_v63 = vmul.f32 -1.442695, %v1423_v61  ;;  %v4827_v46 = vmul.f32 -1.442695, %v1425_v9 }
 0x69c   :  { %5371 = vtanh.f32 %v1425_v9  ;;  %v4829_v25 = vmul.f32 -1.442695, %v1427_v18  ;;  %v4828_v7 = vmul.f32 -1.442695, %v1426_v24  ;;  %v4831_v48 = vmul.f32 -1.442695, %v1429_v29 }
 0x69d   :  { %5373 = vtanh.f32 %v1427_v18  ;;  %v4830_v53 = vmul.f32 -1.442695, %v1428_v31  ;;  %v4832_v54 = vmul.f32 -1.442695, %v1430_v35 }
 0x69e   :  { %5375 = vtanh.f32 %v1426_v24 }
 0x69f   :  { %5377 = vtanh.f32 %v1429_v29 }
 0x6a0   :  { %5379 = vtanh.f32 %v1428_v31 }
 0x6a1   :  { %5381 = vtanh.f32 %v1430_v35 }
 0x6a2   :  { %5383 = vtanh.f32 %v1308_v37 }
 0x6a3   :  { %v5368_v20 = vpop.eup %5367  ;;  %5385 = vpow2.f32 %v4826_v57 }
 0x6a4   :  { %1529 = vrot.lane.b32.xlu1 %v5368_v20, %s5889_s8  ;;  %5387 = vpow2.f32 %v4825_v63 }
 0x6a5   :  { %v5370_v30 = vpop.eup %5369  ;;  %5389 = vpow2.f32 %v4827_v46 }
 0x6a6   :  { %v5372_v26 = vpop.eup %5371  ;;  %5391 = vpow2.f32 %v4829_v25 }
 0x6a7   :  { %1531 = vrot.lane.b32.xlu0 %v5372_v26, %s5889_s8  ;;  %v5374_v38 = vpop.eup %5373  ;;  %5393 = vpow2.f32 %v4828_v7 }
 0x6a8   :  { %1527 = vrot.lane.b32.xlu1 %v5370_v30, %s5889_s8  ;;  %v5376_v39 = vpop.eup %5375  ;;  %5395 = vpow2.f32 %v4831_v48 }
 0x6a9   :  { %v5378_v40 = vpop.eup %5377 }
 0x6aa   :  { %v5380_v42 = vpop.eup %5379 }
 0x6ab   :  { %1533 = vrot.lane.b32.xlu0 %v5376_v39, %s5889_s8  ;;  %v5382_v19 = vpop.eup %5381 }
 0x6ac   :  { %1535 = vrot.lane.b32.xlu1 %v5374_v38, %s5889_s8  ;;  %v5384_v44 = vpop.eup %5383 }
 0x6ad   :  { %v5386_v47 = vpop.eup %5385 }
 0x6ae   :  { %v1456_v51 = vadd.f32 1.0, %v5386_v47  ;;  %v5388_v52 = vpop.eup %5387 }
 0x6af   :  { %1537 = vrot.lane.b32.xlu0 %v5380_v42, %s5889_s8  ;;  %v1455_v22 = vadd.f32 1.0, %v5388_v52  ;;  %v5390_v12 = vpop.eup %5389 }
 0x6b0   :  { %1539 = vrot.lane.b32.xlu1 %v5378_v40, %s5889_s8  ;;  %5397 = vrcp.f32 %v1456_v51  ;;  %v5392_v56 = vpop.eup %5391  ;;  %v1457_v13 = vadd.f32 1.0, %v5390_v12  ;;  %v1495_v12 = vrot.slane %v6348_v41, 7  ;;  %v1498_v41 = vrot.slane %v6352_v45, 7 }
 0x6b1   :  { %5399 = vpow2.f32 %v4830_v53  ;;  %v5394_v58 = vpop.eup %5393  ;;  %v1459_v59 = vadd.f32 1.0, %v5392_v56 }
 0x6b2   :  { %5401 = vpow2.f32 %v4832_v54  ;;  %v5396_v60 = vpop.eup %5395  ;;  %v1458_v61 = vadd.f32 1.0, %v5394_v58  ;;  %v1496_v54 = vrot.slane %v6344_v32, 7  ;;  %v1499_v32 = vrot.slane %v6364_v55, 7 }
 0x6b3   :  { %1320 = vrot.lane.b32.xlu0 %v5384_v44, %s5889_s8  ;;  %5403 = vrcp.f32 %v1455_v22  ;;  %v1461_v8 = vadd.f32 1.0, %v5396_v60  ;;  %v1497_v60 = vrot.slane %v6356_v50, 7 }
 0x6b4   :  { %1541 = vrot.lane.b32.xlu1 %v5382_v19, %s5889_s8  ;;  %5405 = vpow2.f32 %v4823_v23 }
 0x6b5   :  { %5407 = vrcp.f32 %v1457_v13 }
 0x6b6   :  { %5409 = vrcp.f32 %v1459_v59 }
 0x6b7   :  { %5411 = vrcp.f32 %v1458_v61 }
 0x6b8   :  { %5413 = vrcp.f32 %v1461_v8 }
 0x6ba   :  { %v6447_v49 = vpop.eup %5397 }
 0x6bb   :  { %v5400_v1 = vpop.eup %5399  ;;  %v1512_v22 = vmul.f32 %v6447_v49, %v1496_v54 }
 0x6bc   :  { %v5402_v9 = vpop.eup %5401  ;;  %v1460_v20 = vadd.f32 1.0, %v5400_v1 }
 0x6bd   :  { %v6451_v16 = vpop.eup %5403  ;;  %v1462_v28 = vadd.f32 1.0, %v5402_v9 }
 0x6be   :  { %v5406_v21 = vpop.eup %5405  ;;  %5415 = vrcp.f32 %v1460_v20  ;;  %v1511_v13 = vmul.f32 %v6451_v16, %v1495_v12 }
 0x6bf   :  { %v1314_v29 = vadd.f32 1.0, %v5406_v21  ;;  %v6455_v30 = vpop.eup %5407  ;;  %5417 = vrcp.f32 %v1462_v28  ;;  %v1500_v21 = vrot.slane %v6362_v2, 7 }
 0x6c0   :  { %v6458_v37 = vpop.eup %5409 }
 0x6c1   :  { %5419 = vrcp.f32 %v1314_v29  ;;  %v6462_v39 = vpop.eup %5411 }
 0x6c2   :  { %v6466_v19 = vpop.eup %5413  ;;  %v1514_v50 = vmul.f32 %v6462_v39, %v1498_v41 }
 0x6c8   :  { %v6470_v63 = vpop.eup %5415 }
 0x6c9   :  { %v6474_v47 = vpop.eup %5417 }
 0x6cb   :  { %v6478_v51 = vpop.eup %5419 }
 0x716   :  { %v1530_v14 = vpop.permute.xlu1 %1529 }
 0x717   :  { %v1552_v5 = vmul.f32 %v6447_v49, %v1530_v14  ;;  %v1513_v14 = vmul.f32 %v6455_v30, %v1497_v60 }
 0x719   :  { %1569 = vrot.lane.b32.xlu0 %v1552_v5, %s5886_s4  ;;  %v1532_v31 = vpop.permute.xlu0 %1531  ;;  %v1515_v5 = vmul.f32 %v6458_v37, %v1499_v32 }
 0x71a   :  { %v1528_v18 = vpop.permute.xlu1 %1527  ;;  %v1553_v35 = vmul.f32 %v6455_v30, %v1532_v31  ;;  %v1516_v31 = vmul.f32 %v6470_v63, %v1500_v21 }
 0x71b   :  { %v1551_v24 = vmul.f32 %v6451_v16, %v1528_v18  ;;  %v1501_v18 = vrot.slane %v6374_v62, 7  ;;  %v1502_v62 = vrot.slane %v6372_v43, 7  ;;  %v1318_v43 = vmul.f32 0.0, %v6478_v51 }
 0x71c   :  { %1571 = vrot.lane.b32.xlu1 %v1553_v35, %s5886_s4 }
 0x71d   :  { %1567 = vrot.lane.b32.xlu0 %v1551_v24, %s5886_s4  ;;  %v1534_v40 = vpop.permute.xlu0 %1533  ;;  %v1517_v24 = vmul.f32 %v6466_v19, %v1501_v18 }
 0x71e   :  { %v1536_v26 = vpop.permute.xlu1 %1535  ;;  %v1554_v42 = vmul.f32 %v6462_v39, %v1534_v40 }
 0x71f   :  { %v1555_v38 = vmul.f32 %v6458_v37, %v1536_v26 }
 0x720   :  { %1573 = vrot.lane.b32.xlu1 %v1554_v42, %s5886_s4 }
 0x721   :  { %1575 = vrot.lane.b32.xlu0 %v1555_v38, %s5886_s4  ;;  %v1538_v46 = vpop.permute.xlu0 %1537  ;;  %v1518_v38 = vmul.f32 %v6474_v47, %v1502_v62 }
 0x722   :  { %v1540_v44 = vpop.permute.xlu1 %1539  ;;  %v1556_v25 = vmul.f32 %v6470_v63, %v1538_v46 }
 0x723   :  { %v1557_v57 = vmul.f32 %v6466_v19, %v1540_v44 }
 0x724   :  { %1577 = vrot.lane.b32.xlu1 %v1556_v25, %s5886_s4 }
 0x725   :  { %1579 = vrot.lane.b32.xlu0 %v1557_v57, %s5886_s4  ;;  %v1321_v52 = vpop.permute.xlu0 %1320 }
 0x726   :  { %v1542_v7 = vpop.permute.xlu1 %1541  ;;  %v1323_v53 = vmul.f32 %v6478_v51, %v1321_v52 }
 0x727   :  { %v1558_v48 = vmul.f32 %v6474_v47, %v1542_v7 }
 0x728   :  { %1325 = vrot.lane.b32.xlu1 %v1323_v53, %s5886_s4 }
 0x729   :  { %1581 = vrot.lane.b32.xlu0 %v1558_v48, %s5886_s4 }
 0x78b   :  { %v1570_v23 = vpop.permute.xlu0 %1569 }
 0x78c   :  { %v6486_v56 = vadd.f32 %v1570_v23, %v1512_v22 }
 0x78e   :  { %5421 = vtanh.f32 %v6486_v56  ;;  %v1572_v61 = vpop.permute.xlu1 %1571 }
 0x78f   :  { %v1568_v58 = vpop.permute.xlu0 %1567  ;;  %v6497_v1 = vadd.f32 %v1572_v61, %v1513_v14 }
 0x790   :  { %v6490_v59 = vadd.f32 %v1568_v58, %v1511_v13 }
 0x792   :  { %5423 = vtanh.f32 %v6490_v59  ;;  %v1574_v55 = vpop.permute.xlu1 %1573 }
 0x793   :  { %v1576_v8 = vpop.permute.xlu0 %1575  ;;  %5425 = vtanh.f32 %v6497_v1  ;;  %v6507_v45 = vadd.f32 %v1574_v55, %v1514_v50 }
 0x794   :  { %v6503_v20 = vadd.f32 %v1576_v8, %v1515_v5 }
 0x796   :  { %5427 = vtanh.f32 %v6503_v20  ;;  %v1578_v26 = vpop.permute.xlu1 %1577 }
 0x797   :  { %v1580_v28 = vpop.permute.xlu0 %1579  ;;  %5429 = vtanh.f32 %v6507_v45  ;;  %v6517_v2 = vadd.f32 %v1578_v26, %v1516_v31 }
 0x798   :  { %v5422_v9 = vpop.eup %5421  ;;  %v6514_v35 = vadd.f32 %v1580_v28, %v1517_v24 }
 0x799   :  { %1617 = vrot.lane.b32.xlu1 %v5422_v9, %s5885_s30 }
 0x79a   :  { %5431 = vtanh.f32 %v6514_v35  ;;  %v1326_v44 = vpop.permute.xlu1 %1325 }
 0x79b   :  { %v1582_v40 = vpop.permute.xlu0 %1581  ;;  %5433 = vtanh.f32 %v6517_v2  ;;  %v6525_v46 = vadd.f32 %v1326_v44, %v1318_v43 }
 0x79c   :  { %v5424_v29 = vpop.eup %5423  ;;  %v6523_v42 = vadd.f32 %v1582_v40, %v1518_v38 }
 0x79d   :  { %1615 = vrot.lane.b32.xlu1 %v5424_v29, %s5885_s30  ;;  %v5426_v57 = vpop.eup %5425 }
 0x79e   :  { %5435 = vtanh.f32 %v6523_v42  ;;  %1619 = vrot.lane.b32.xlu0 %v5426_v57, %s5885_s30 }
 0x79f   :  { %5437 = vtanh.f32 %v6525_v46 }
 0x7a0   :  { %v5428_v25 = vpop.eup %5427 }
 0x7a1   :  { %1623 = vrot.lane.b32.xlu1 %v5428_v25, %s5885_s30  ;;  %v5430_v7 = vpop.eup %5429 }
 0x7a2   :  { %1621 = vrot.lane.b32.xlu0 %v5430_v7, %s5885_s30 }
 0x7a4   :  { %v5432_v48 = vpop.eup %5431 }
 0x7a5   :  { %1627 = vrot.lane.b32.xlu1 %v5432_v48, %s5885_s30  ;;  %v5434_v52 = vpop.eup %5433 }
 0x7a6   :  { %1625 = vrot.lane.b32.xlu0 %v5434_v52, %s5885_s30 }
 0x7a8   :  { %v5436_v53 = vpop.eup %5435 }
 0x7a9   :  { %1629 = vrot.lane.b32.xlu1 %v5436_v53, %s5885_s30  ;;  %v5438_v54 = vpop.eup %5437 }
 0x7aa   :  { %1331 = vrot.lane.b32.xlu0 %v5438_v54, %s5885_s30 }
 0x80b   :  { %v1618_v22 = vpop.permute.xlu1 %1617 }
 0x80c   :  { %v1640_v13 = vmul.f32 %v6447_v49, %v1618_v22 }
 0x80e   :  { %v1655_v61 = vrot.slane %v1640_v13, 7 }
 0x80f   :  { %v1616_v23 = vpop.permute.xlu1 %1615 }
 0x810   :  { %v1639_v12 = vmul.f32 %v6451_v16, %v1616_v23  ;;  %v1620_v60 = vpop.permute.xlu0 %1619 }
 0x811   :  { %v1641_v32 = vmul.f32 %v6455_v30, %v1620_v60 }
 0x812   :  { %v1782_v58 = vrot.slane %v1639_v12, 1  ;;  %v1656_v50 = vsel %vm1211_vm10, %v1655_v61, %v1639_v12 }
 0x813   :  { %v1624_v14 = vpop.permute.xlu1 %1623  ;;  %v1657_v8 = vrot.slane %v1641_v32, 6  ;;  %v1784_v9 = vrot.slane %v1641_v32, 7 }
 0x814   :  { %v1783_v41 = vsel %vm1208_vm9, %v1640_v13, %v1782_v58  ;;  %v1643_v5 = vmul.f32 %v6458_v37, %v1624_v14  ;;  %v1622_v18 = vpop.permute.xlu0 %1621 }
 0x815   :  { %v1642_v55 = vmul.f32 %v6462_v39, %v1622_v18  ;;  %v1785_v16 = vsel %vm1211_vm10, %v1784_v9, %v1783_v41  ;;  %v1658_v62 = vsel %vm1214_vm11, %v1657_v8, %v1656_v50  ;;  %v6572_v8 = vld [vmem:[%s7523_s7] sm:$0xff] }
 0x816   :  { %v1661_v49 = vrot.slane %v1643_v5, 4  ;;  %v1788_v30 = vrot.slane %v1643_v5, 5 }
 0x817   :  { %v1628_v21 = vpop.permute.xlu1 %1627  ;;  %v1659_v24 = vrot.slane %v1642_v55, 5  ;;  %v1786_v28 = vrot.slane %v1642_v55, 6 }
 0x818   :  { %v1645_v29 = vmul.f32 %v6466_v19, %v1628_v21  ;;  %v1626_v31 = vpop.permute.xlu0 %1625 }
 0x819   :  { %v1660_v37 = vsel %vm1217_vm12, %v1659_v24, %v1658_v62  ;;  %v1787_v26 = vsel %vm1214_vm11, %v1786_v28, %v1785_v16  ;;  %v1644_v38 = vmul.f32 %v6470_v63, %v1626_v31 }
 0x81a   :  { %v1665_v40 = vrot.slane %v1645_v29, 2  ;;  %v1662_v43 = vsel %vm1220_vm13, %v1661_v49, %v1660_v37  ;;  %v1789_v44 = vsel %vm1217_vm12, %v1788_v30, %v1787_v26  ;;  %v1792_v48 = vrot.slane %v1645_v29, 3 }
 0x81b   :  { %v1630_v39 = vpop.permute.xlu1 %1629  ;;  %v1663_v57 = vrot.slane %v1644_v38, 3  ;;  %v1790_v25 = vrot.slane %v1644_v38, 4 }
 0x81c   :  { %v1646_v7 = vmul.f32 %v6474_v47, %v1630_v39  ;;  %v1332_v19 = vpop.permute.xlu0 %1331 }
 0x81d   :  { %v6553_v52 = vmul.f32 %v6478_v51, %v1332_v19  ;;  %v1664_v54 = vsel %vm1223_vm14, %v1663_v57, %v1662_v43  ;;  %v1791_v23 = vsel %vm1220_vm13, %v1790_v25, %v1789_v44 }
 0x81e   :  { %v1667_v53 = vrot.slane %v1646_v7, 1  ;;  %v1794_v22 = vrot.slane %v1646_v7, 2  ;;  %v1666_v63 = vsel %vm1226_vm15, %v1665_v40, %v1664_v54  ;;  %v1793_v47 = vsel %vm1223_vm14, %v1792_v48, %v1791_v23 }
 0x81f   :  { %1668 = vrot.lane.b32.xlu0 %v1666_v63, %s5891_s9  ;;  %v1675_v12 = vrot.slane %v6553_v52, 7 }
 0x820   :  { %1670 = vrot.lane.b32.xlu1 %v1667_v53, %s5891_s9  ;;  %v1795_v13 = vsel %vm1226_vm15, %v1794_v22, %v1793_v47 }
 0x823   :  { %1676 = vrot.lane.b32.xlu0 %v1675_v12, %s5889_s8 }
 0x824   :  { %1796 = vrot.lane.b32.xlu1 %v1795_v13, %s5891_s9 }
 0x891   :  { %v1669_v51 = vpop.permute.xlu0 %1668 }
 0x892   :  { %v1671_v58 = vpop.permute.xlu1 %1670 }
 0x895   :  { %v1677_v60 = vpop.permute.xlu0 %1676 }
 0x896   :  { %v1679_v32 = vsel %vm547_vm6, %v1669_v51, %v1677_v60  ;;  %v1680_v14 = vsel %vm547_vm6, %v1671_v58, %v1677_v60  ;;  %v1797_v9 = vpop.permute.xlu1 %1796 }
 0x897   :  { %v1683_v61 = vrot.slane %v1679_v32, 1  ;;  %v1684_v41 = vrot.slane %v1680_v14, 1 }
 0x899   :  { %v1685_v5 = vsel %vm79_vm1, %v1683_v61, %v1684_v41  ;;  %vm3073_vm1 = vcmask 1043456  }
 0x89a   :  { %5071 = vmatmul.mubr.msk.f32.vlgmr.msra.gmra.mrb[16].mxu0 %vm177_vm2, %v1685_v5 }
 0x89b   :  { %5074 = vmatpush3.msra.mxu0 %v6572_v8  ;;  %5075 = vmatprep.mubr.msk.f32.mxu0 %vm5888_vm8, %v5887_v11 }
 0x89c   :  { %5085 = vmatprep.subr.mxu0 %v5887_v11 }
 0x89e   :  { %5076 = vmatmul.mubr.msk.f32.vlgmr.msra.gmra.mrb[18].mxu0 %vm547_vm6, %v1797_v9 }
 0x89f   :  { %5086 = vmatpush3.msra.mxu0 %v6572_v8  ;;  %5087 = vmatprep.mubr.msk.f32.mxu0 %vm5888_vm8, %v5887_v11 }
 0x8a0   :  { %5097 = vmatprep.subr.mxu0 %v5887_v11 }
 0x96d   :  { %v1754_v18 = vpop.f32.mrb[16].mxu0 }
 0x96e   :  { %v5072_v50 = vpop.f32.mrb[17].mxu0  ;;  %v1755_v25 = vadd.f32 %v6435_v34, %v1754_v18 }
 0x970   :  { %v4834_v41 = vmul.f32 -1.442695, %v1755_v25 }
 0x971   :  { %v1866_v55 = vpop.f32.mrb[18].mxu0 }
 0x972   :  { %v1871_v16 = vrot.slane %v1866_v55, 6  ;;  %v5077_v49 = vpop.f32.mrb[19].mxu0  ;;  %v1873_v24 = vrot.slane %v1866_v55, 1  ;;  %v1872_v28 = vrot.slane %v1866_v55, 7  ;;  %v1888_v30 = vadd.f32 %v1866_v55, %v6287_v17 }
 0x973   :  { %v1874_v29 = vrot.slane %v1866_v55, 2  ;;  %v1875_v37 = vrot.slane %v1866_v55, 3  ;;  %v1876_v38 = vrot.slane %v1866_v55, 4  ;;  %v1877_v39 = vrot.slane %v1866_v55, 5 }
 0x974   :  { %v1886_v21 = vadd.f32 %v1871_v16, %v6281_v6  ;;  %v1889_v62 = vadd.f32 %v1873_v24, %v6285_v15  ;;  %v1887_v26 = vadd.f32 %v1872_v28, %v6279_v3  ;;  %v4838_v12 = vmul.f32 -1.442695, %v1888_v30 }
 0x975   :  { %v1890_v40 = vadd.f32 %v1874_v29, %v6294_v27  ;;  %v1891_v43 = vadd.f32 %v1875_v37, %v6292_v0  ;;  %v1892_v44 = vadd.f32 %v1876_v38, %v6302_v36  ;;  %v1893_v57 = vadd.f32 %v1877_v39, %v6300_v33 }
 0x976   :  { %5439 = vtanh.f32 %v1886_v21  ;;  %v4836_v23 = vmul.f32 -1.442695, %v1886_v21  ;;  %v4839_v47 = vmul.f32 -1.442695, %v1889_v62  ;;  %v4837_v51 = vmul.f32 -1.442695, %v1887_v26 }
 0x977   :  { %5441 = vtanh.f32 %v1888_v30  ;;  %v4840_v58 = vmul.f32 -1.442695, %v1890_v40  ;;  %v4841_v32 = vmul.f32 -1.442695, %v1891_v43  ;;  %v4842_v14 = vmul.f32 -1.442695, %v1892_v44 }
 0x978   :  { %5443 = vtanh.f32 %v1889_v62  ;;  %v4843_v61 = vmul.f32 -1.442695, %v1893_v57 }
 0x979   :  { %5445 = vtanh.f32 %v1887_v26 }
 0x97a   :  { %5447 = vtanh.f32 %v1890_v40 }
 0x97b   :  { %5449 = vtanh.f32 %v1891_v43 }
 0x97c   :  { %5451 = vtanh.f32 %v1892_v44 }
 0x97d   :  { %5453 = vtanh.f32 %v1893_v57 }
 0x97e   :  { %5455 = vtanh.f32 %v1755_v25 }
 0x97f   :  { %5457 = vpow2.f32 %v4836_v23 }
 0x980   :  { %v5440_v31 = vpop.eup %5439  ;;  %5459 = vpow2.f32 %v4838_v12 }
 0x981   :  { %1990 = vrot.lane.b32.xlu0 %v5440_v31, %s5889_s8  ;;  %v5442_v7 = vpop.eup %5441  ;;  %5461 = vpow2.f32 %v4839_v47 }
 0x982   :  { %v5444_v19 = vpop.eup %5443  ;;  %1994 = vrot.lane.b32.xlu1 %v5442_v7, %s5889_s8  ;;  %5463 = vpow2.f32 %v4837_v51 }
 0x983   :  { %v5446_v48 = vpop.eup %5445  ;;  %5465 = vpow2.f32 %v4840_v58 }
 0x984   :  { %v5448_v53 = vpop.eup %5447 }
 0x985   :  { %1996 = vrot.lane.b32.xlu0 %v5444_v19, %s5889_s8  ;;  %v5450_v54 = vpop.eup %5449 }
 0x986   :  { %1992 = vrot.lane.b32.xlu1 %v5446_v48, %s5889_s8  ;;  %v5452_v22 = vpop.eup %5451 }
 0x987   :  { %v5454_v34 = vpop.eup %5453 }
 0x988   :  { %v5456_v63 = vpop.eup %5455 }
 0x989   :  { %1998 = vrot.lane.b32.xlu0 %v5448_v53, %s5889_s8  ;;  %v5458_v13 = vpop.eup %5457 }
 0x98a   :  { %2000 = vrot.lane.b32.xlu1 %v5450_v54, %s5889_s8  ;;  %v1918_v60 = vadd.f32 1.0, %v5458_v13  ;;  %v5460_v5 = vpop.eup %5459 }
 0x98b   :  { %v5462_v9 = vpop.eup %5461  ;;  %v1920_v18 = vadd.f32 1.0, %v5460_v5 }
 0x98c   :  { %5467 = vrcp.f32 %v1918_v60  ;;  %v5464_v50 = vpop.eup %5463  ;;  %v1921_v55 = vadd.f32 1.0, %v5462_v9  ;;  %v1958_v9 = vrot.slane %v6490_v59, 7 }
 0x98d   :  { %2002 = vrot.lane.b32.xlu0 %v5452_v22, %s5889_s8  ;;  %5469 = vpow2.f32 %v4841_v32  ;;  %v5466_v16 = vpop.eup %5465  ;;  %v1919_v28 = vadd.f32 1.0, %v5464_v50 }
 0x98e   :  { %2004 = vrot.lane.b32.xlu1 %v5454_v34, %s5889_s8  ;;  %5471 = vpow2.f32 %v4842_v14  ;;  %v1922_v29 = vadd.f32 1.0, %v5466_v16  ;;  %v1960_v16 = vrot.slane %v6497_v1, 7 }
 0x98f   :  { %5473 = vpow2.f32 %v4843_v61 }
 0x990   :  { %5475 = vpow2.f32 %v4834_v41 }
 0x991   :  { %1767 = vrot.lane.b32.xlu0 %v5456_v63, %s5889_s8  ;;  %5477 = vrcp.f32 %v1920_v18 }
 0x992   :  { %5479 = vrcp.f32 %v1921_v55 }
 0x993   :  { %5481 = vrcp.f32 %v1919_v28 }
 0x994   :  { %5483 = vrcp.f32 %v1922_v29  ;;  %v1959_v29 = vrot.slane %v6486_v56, 7  ;;  %v1963_v56 = vrot.slane %v6517_v2, 7 }
 0x996   :  { %v6601_v49 = vpop.eup %5467 }
 0x997   :  { %v5470_v30 = vpop.eup %5469  ;;  %v1974_v18 = vmul.f32 %v6601_v49, %v1958_v9 }
 0x998   :  { %v5472_v62 = vpop.eup %5471  ;;  %v1923_v31 = vadd.f32 1.0, %v5470_v30 }
 0x999   :  { %v5474_v37 = vpop.eup %5473  ;;  %v1924_v26 = vadd.f32 1.0, %v5472_v62 }
 0x99a   :  { %v5476_v38 = vpop.eup %5475  ;;  %5485 = vrcp.f32 %v1923_v31  ;;  %v1925_v40 = vadd.f32 1.0, %v5474_v37  ;;  %v1962_v37 = vrot.slane %v6503_v20, 7  ;;  %v1964_v20 = vrot.slane %v6514_v35, 7 }
 0x99b   :  { %v1761_v39 = vadd.f32 1.0, %v5476_v38  ;;  %5487 = vrcp.f32 %v1924_v26  ;;  %v6605_v43 = vpop.eup %5477 }
 0x99c   :  { %v6607_v57 = vpop.eup %5479  ;;  %5489 = vrcp.f32 %v1925_v40 }
 0x99d   :  { %5491 = vrcp.f32 %v1761_v39  ;;  %v6612_v48 = vpop.eup %5481 }
 0x99e   :  { %v6615_v54 = vpop.eup %5483  ;;  %v1975_v1 = vmul.f32 %v6612_v48, %v1959_v29 }
 0x99f   :  { %v1978_v38 = vmul.f32 %v6615_v54, %v1962_v37 }
 0x9a4   :  { %v6620_v23 = vpop.eup %5485 }
 0x9a5   :  { %v6623_v47 = vpop.eup %5487 }
 0x9a6   :  { %v6628_v60 = vpop.eup %5489 }
 0x9a7   :  { %v6631_v14 = vpop.eup %5491 }
 0x9f3   :  { %v1991_v21 = vpop.permute.xlu0 %1990 }
 0x9f4   :  { %v2014_v24 = vmul.f32 %v6601_v49, %v1991_v21  ;;  %v1995_v44 = vpop.permute.xlu1 %1994  ;;  %v1961_v21 = vrot.slane %v6507_v45, 7 }
 0x9f5   :  { %v2016_v25 = vmul.f32 %v6605_v43, %v1995_v44 }
 0x9f6   :  { %2030 = vrot.lane.b32.xlu1 %v2014_v24, %s5886_s4  ;;  %v1976_v24 = vmul.f32 %v6605_v43, %v1960_v16  ;;  %v1977_v30 = vmul.f32 %v6607_v57, %v1961_v21 }
 0x9f7   :  { %v1997_v7 = vpop.permute.xlu0 %1996  ;;  %2034 = vrot.lane.b32.xlu0 %v2016_v25, %s5886_s4  ;;  %v1979_v25 = vmul.f32 %v6620_v23, %v1963_v56 }
 0x9f8   :  { %v2017_v19 = vmul.f32 %v6607_v57, %v1997_v7  ;;  %v1993_v53 = vpop.permute.xlu1 %1992 }
 0x9f9   :  { %v2015_v22 = vmul.f32 %v6612_v48, %v1993_v53  ;;  %v1965_v53 = vrot.slane %v6523_v42, 7 }
 0x9fa   :  { %2036 = vrot.lane.b32.xlu1 %v2017_v19, %s5886_s4  ;;  %v1980_v19 = vmul.f32 %v6623_v47, %v1964_v20 }
 0x9fb   :  { %v1999_v34 = vpop.permute.xlu0 %1998  ;;  %2032 = vrot.lane.b32.xlu0 %v2015_v22, %s5886_s4  ;;  %v1981_v35 = vmul.f32 %v6628_v60, %v1965_v53 }
 0x9fc   :  { %v2018_v63 = vmul.f32 %v6615_v54, %v1999_v34  ;;  %v2001_v12 = vpop.permute.xlu1 %2000 }
 0x9fd   :  { %v2019_v13 = vmul.f32 %v6620_v23, %v2001_v12  ;;  %v1765_v12 = vmul.f32 %v6631_v14, %v6525_v46 }
 0x9fe   :  { %2038 = vrot.lane.b32.xlu1 %v2018_v63, %s5886_s4 }
 0x9ff   :  { %v2003_v51 = vpop.permute.xlu0 %2002  ;;  %2040 = vrot.lane.b32.xlu0 %v2019_v13, %s5886_s4 }
 0xa00   :  { %v2020_v58 = vmul.f32 %v6623_v47, %v2003_v51  ;;  %v2005_v32 = vpop.permute.xlu1 %2004 }
 0xa01   :  { %v2021_v61 = vmul.f32 %v6628_v60, %v2005_v32 }
 0xa02   :  { %2042 = vrot.lane.b32.xlu1 %v2020_v58, %s5886_s4 }
 0xa03   :  { %v1768_v41 = vpop.permute.xlu0 %1767  ;;  %2044 = vrot.lane.b32.xlu0 %v2021_v61, %s5886_s4 }
 0xa04   :  { %v1770_v5 = vmul.f32 %v6631_v14, %v1768_v41 }
 0xa06   :  { %1772 = vrot.lane.b32.xlu1 %v1770_v5, %s5886_s4 }
 0xa68   :  { %v2031_v50 = vpop.permute.xlu1 %2030 }
 0xa69   :  { %v6639_v55 = vadd.f32 %v2031_v50, %v1974_v18  ;;  %v2035_v28 = vpop.permute.xlu0 %2034 }
 0xa6a   :  { %v6647_v62 = vadd.f32 %v2035_v28, %v1976_v24 }
 0xa6b   :  { %5493 = vtanh.f32 %v6639_v55 }
 0xa6c   :  { %v2037_v59 = vpop.permute.xlu1 %2036  ;;  %5495 = vtanh.f32 %v6647_v62 }
 0xa6d   :  { %v6650_v26 = vadd.f32 %v2037_v59, %v1977_v30  ;;  %v2033_v45 = vpop.permute.xlu0 %2032 }
 0xa6e   :  { %v6658_v40 = vadd.f32 %v2033_v45, %v1975_v1 }
 0xa6f   :  { %5497 = vtanh.f32 %v6650_v26 }
 0xa70   :  { %v2039_v39 = vpop.permute.xlu1 %2038  ;;  %5499 = vtanh.f32 %v6658_v40 }
 0xa71   :  { %v6661_v44 = vadd.f32 %v2039_v39, %v1978_v38  ;;  %v2041_v7 = vpop.permute.xlu0 %2040 }
 0xa72   :  { %v6668_v22 = vadd.f32 %v2041_v7, %v1979_v25 }
 0xa73   :  { %5501 = vtanh.f32 %v6661_v44 }
 0xa74   :  { %v2043_v2 = vpop.permute.xlu1 %2042  ;;  %5503 = vtanh.f32 %v6668_v22 }
 0xa75   :  { %v5494_v31 = vpop.eup %5493  ;;  %v6670_v34 = vadd.f32 %v2043_v2, %v1980_v19  ;;  %v2045_v63 = vpop.permute.xlu0 %2044 }
 0xa76   :  { %2078 = vrot.lane.b32.xlu0 %v5494_v31, %s5885_s30  ;;  %v5496_v13 = vpop.eup %5495  ;;  %v6677_v51 = vadd.f32 %v2045_v63, %v1981_v35 }
 0xa77   :  { %5505 = vtanh.f32 %v6670_v34  ;;  %2082 = vrot.lane.b32.xlu1 %v5496_v13, %s5885_s30 }
 0xa78   :  { %v1773_v58 = vpop.permute.xlu1 %1772  ;;  %5507 = vtanh.f32 %v6677_v51 }
 0xa79   :  { %v5498_v42 = vpop.eup %5497  ;;  %v6680_v32 = vadd.f32 %v1773_v58, %v1765_v12 }
 0xa7a   :  { %2084 = vrot.lane.b32.xlu0 %v5498_v42, %s5885_s30  ;;  %v5500_v61 = vpop.eup %5499 }
 0xa7b   :  { %5509 = vtanh.f32 %v6680_v32  ;;  %2080 = vrot.lane.b32.xlu1 %v5500_v61, %s5885_s30 }
 0xa7d   :  { %v5502_v41 = vpop.eup %5501 }
 0xa7e   :  { %2086 = vrot.lane.b32.xlu0 %v5502_v41, %s5885_s30  ;;  %v5504_v46 = vpop.eup %5503 }
 0xa7f   :  { %2088 = vrot.lane.b32.xlu1 %v5504_v46, %s5885_s30 }
 0xa81   :  { %v5506_v5 = vpop.eup %5505 }
 0xa82   :  { %2090 = vrot.lane.b32.xlu0 %v5506_v5, %s5885_s30  ;;  %v5508_v9 = vpop.eup %5507 }
 0xa83   :  { %2092 = vrot.lane.b32.xlu1 %v5508_v9, %s5885_s30 }
 0xa85   :  { %v5510_v18 = vpop.eup %5509 }
 0xa86   :  { %1778 = vrot.lane.b32.xlu0 %v5510_v18, %s5885_s30 }
 0xae8   :  { %v2079_v50 = vpop.permute.xlu0 %2078 }
 0xae9   :  { %v2083_v16 = vpop.permute.xlu1 %2082  ;;  %v2102_v24 = vmul.f32 %v6601_v49, %v2079_v50 }
 0xaea   :  { %v2104_v30 = vmul.f32 %v6605_v43, %v2083_v16 }
 0xaeb   :  { %v2245_v37 = vrot.slane %v2102_v24, 2 }
 0xaec   :  { %v2085_v21 = vpop.permute.xlu0 %2084  ;;  %v2120_v20 = vrot.slane %v2104_v30, 6 }
 0xaed   :  { %v2105_v28 = vmul.f32 %v6607_v57, %v2085_v21  ;;  %v2081_v29 = vpop.permute.xlu1 %2080 }
 0xaee   :  { %v2103_v59 = vmul.f32 %v6612_v48, %v2081_v29 }
 0xaef   :  { %v2122_v56 = vrot.slane %v2105_v28, 5  ;;  %v2249_v39 = vrot.slane %v2105_v28, 7 }
 0xaf0   :  { %v2087_v31 = vpop.permute.xlu0 %2086  ;;  %v2118_v45 = vrot.slane %v2103_v59, 7  ;;  %v2246_v38 = vrot.slane %v2103_v59, 1 }
 0xaf1   :  { %v2106_v1 = vmul.f32 %v6615_v54, %v2087_v31  ;;  %v2089_v25 = vpop.permute.xlu1 %2088 }
 0xaf2   :  { %v2119_v49 = vsel %vm1214_vm11, %v2118_v45, %v2102_v24  ;;  %v2247_v57 = vsel %vm1208_vm9, %v2246_v38, %v2245_v37  ;;  %v2107_v43 = vmul.f32 %v6620_v23, %v2089_v25 }
 0xaf3   :  { %v2124_v7 = vrot.slane %v2106_v1, 4  ;;  %v2251_v19 = vrot.slane %v2106_v1, 6  ;;  %v2248_v48 = vsel %vm1211_vm10, %v2104_v30, %v2247_v57  ;;  %v2121_v54 = vsel %vm1217_vm12, %v2120_v20, %v2119_v49 }
 0xaf4   :  { %v2091_v53 = vpop.permute.xlu0 %2090  ;;  %v2250_v35 = vsel %vm1214_vm11, %v2249_v39, %v2248_v48  ;;  %v2126_v63 = vrot.slane %v2107_v43, 3  ;;  %v2253_v12 = vrot.slane %v2107_v43, 5  ;;  %v2123_v13 = vsel %vm1220_vm13, %v2122_v56, %v2121_v54 }
 0xaf5   :  { %v2108_v2 = vmul.f32 %v6623_v47, %v2091_v53  ;;  %v2252_v58 = vsel %vm1217_vm12, %v2251_v19, %v2250_v35  ;;  %v2093_v42 = vpop.permute.xlu1 %2092  ;;  %v2125_v41 = vsel %vm1223_vm14, %v2124_v7, %v2123_v13 }
 0xaf6   :  { %v2109_v23 = vmul.f32 %v6628_v60, %v2093_v42  ;;  %v2127_v46 = vsel %vm1226_vm15, %v2126_v63, %v2125_v41  ;;  %v2254_v47 = vsel %vm1220_vm13, %v2253_v12, %v2252_v58 }
 0xaf7   :  { %v2255_v61 = vrot.slane %v2108_v2, 4  ;;  %2131 = vrot.lane.b32.xlu0 %v2127_v46, %s5891_s9  ;;  %v2128_v21 = vrot.slane %v2108_v2, 2  ;;  %v6746_v46 = vld [vmem:[%s7527_s10] ss:$0 sm:$0xff] }
 0xaf8   :  { %v1779_v5 = vpop.permute.xlu0 %1778  ;;  %v2257_v50 = vrot.slane %v2109_v23, 3  ;;  %v2129_v60 = vrot.slane %v2109_v23, 1 }
 0xaf9   :  { %v6711_v9 = vmul.f32 %v6631_v14, %v1779_v5  ;;  %v2256_v18 = vsel %vm1223_vm14, %v2255_v61, %v2254_v47 }
 0xafa   :  { %v2258_v24 = vsel %vm1226_vm15, %v2257_v50, %v2256_v18  ;;  %v2130_v28 = vsel %vm1208_vm9, %v2129_v60, %v2128_v21 }
 0xafb   :  { %v2138_v16 = vrot.slane %v6711_v9, 6  ;;  %2259 = vrot.lane.b32.xlu1 %v2258_v24, %s5891_s9 }
 0xafd   :  { %2139 = vrot.lane.b32.xlu0 %v2138_v16, %s5889_s8 }
 0xaff   :  { %2133 = vrot.lane.b32.xlu1 %v2130_v28, %s5891_s9 }
 0xb69   :  { %v2132_v30 = vpop.permute.xlu0 %2131 }
 0xb6d   :  { %v2260_v14 = vpop.permute.xlu1 %2259 }
 0xb6e   :  { %5088 = vmatmul.mubr.msk.f32.vlgmr.msra.gmra.mrb[20].mxu0 %vm547_vm6, %v2260_v14 }
 0xb6f   :  { %v2140_v29 = vpop.permute.xlu0 %2139  ;;  %5098 = vmatpush3.msra.mxu0 %v6572_v8  ;;  %5099 = vmatprep.mubr.msk.f32.mxu0 %vm5888_vm8, %v5887_v11 }
 0xb70   :  { %v2142_v59 = vsel %vm547_vm6, %v2132_v30, %v2140_v29  ;;  %5109 = vmatprep.subr.mxu0 %v5887_v11 }
 0xb71   :  { %v2134_v31 = vpop.permute.xlu1 %2133  ;;  %v2146_v1 = vrot.slane %v2142_v59, 2 }
 0xb72   :  { %v2143_v37 = vsel %vm547_vm6, %v2134_v31, %v2140_v29 }
 0xb73   :  { %v2147_v45 = vrot.slane %v2143_v37, 2 }
 0xb75   :  { %v2148_v38 = vsel %vm128_vm0, %v2146_v1, %v2147_v45  ;;  %vm2609_vm0 = vcmask 1044480  }
 0xb76   :  { %5083 = vmatmul.mubr.msk.f32.vlgmr.msra.gmra.mrb[14].mxu1 %vm177_vm2, %v2148_v38 }
 0xb77   :  { %5200 = vmatpush3.bf16.msra.mxu1 %v6389_v10  ;;  %5094 = vmatprep.mubr.msk.f32.mxu1 %vm5888_vm8, %v5887_v11 }
 0xb78   :  { %5201 = vmatprep.subr.bf16.mxu1 %v5890_v4 }
 0xc41   :  { %v2329_v56 = vpop.f32.mrb[20].mxu0 }
 0xc42   :  { %v5089_v39 = vpop.f32.mrb[21].mxu0  ;;  %v2335_v20 = vrot.slane %v2329_v56, 6  ;;  %v2337_v19 = vrot.slane %v2329_v56, 1  ;;  %v2334_v57 = vrot.slane %v2329_v56, 5  ;;  %v2352_v43 = vadd.f32 %v2329_v56, %v6285_v15 }
 0xc43   :  { %v2338_v53 = vrot.slane %v2329_v56, 2  ;;  %v2336_v2 = vrot.slane %v2329_v56, 7  ;;  %v2340_v35 = vrot.slane %v2329_v56, 4  ;;  %v2339_v12 = vrot.slane %v2329_v56, 3 }
 0xc44   :  { %v2350_v49 = vadd.f32 %v2335_v20, %v6279_v3  ;;  %v2353_v48 = vadd.f32 %v2337_v19, %v6294_v27  ;;  %v2349_v54 = vadd.f32 %v2334_v57, %v6281_v6  ;;  %v4850_v28 = vmul.f32 -1.442695, %v2352_v43 }
 0xc45   :  { %v2354_v63 = vadd.f32 %v2338_v53, %v6292_v0  ;;  %v2351_v13 = vadd.f32 %v2336_v2, %v6287_v17  ;;  %v2356_v58 = vadd.f32 %v2340_v35, %v6300_v33  ;;  %v2355_v61 = vadd.f32 %v2339_v12, %v6302_v36 }
 0xc46   :  { %5511 = vtanh.f32 %v2350_v49  ;;  %v4848_v60 = vmul.f32 -1.442695, %v2350_v49  ;;  %v4851_v30 = vmul.f32 -1.442695, %v2353_v48  ;;  %v4847_v14 = vmul.f32 -1.442695, %v2349_v54 }
 0xc47   :  { %5513 = vtanh.f32 %v2352_v43  ;;  %v4852_v29 = vmul.f32 -1.442695, %v2354_v63  ;;  %v4849_v59 = vmul.f32 -1.442695, %v2351_v13  ;;  %v4854_v31 = vmul.f32 -1.442695, %v2356_v58 }
 0xc48   :  { %5515 = vtanh.f32 %v2353_v48  ;;  %v4853_v1 = vmul.f32 -1.442695, %v2355_v61 }
 0xc49   :  { %v2217_v25 = vpop.f32.mrb[14].mxu1  ;;  %5517 = vtanh.f32 %v2349_v54 }
 0xc4a   :  { %v5084_v7 = vpop.f32.mrb[15].mxu1  ;;  %5519 = vtanh.f32 %v2354_v63  ;;  %v2218_v5 = vadd.f32 %v6746_v46, %v2217_v25 }
 0xc4b   :  { %5521 = vtanh.f32 %v2351_v13 }
 0xc4c   :  { %5523 = vtanh.f32 %v2356_v58  ;;  %v4845_v39 = vmul.f32 -1.442695, %v2218_v5 }
 0xc4d   :  { %5525 = vtanh.f32 %v2355_v61 }
 0xc4e   :  { %5527 = vtanh.f32 %v2218_v5 }
 0xc4f   :  { %5529 = vpow2.f32 %v4848_v60 }
 0xc50   :  { %v5512_v42 = vpop.eup %5511  ;;  %5531 = vpow2.f32 %v4850_v28 }
 0xc51   :  { %2455 = vrot.lane.b32.xlu0 %v5512_v42, %s5889_s8  ;;  %v5514_v41 = vpop.eup %5513  ;;  %5533 = vpow2.f32 %v4851_v30 }
 0xc52   :  { %2459 = vrot.lane.b32.xlu1 %v5514_v41, %s5889_s8  ;;  %v5516_v23 = vpop.eup %5515  ;;  %5535 = vpow2.f32 %v4847_v14 }
 0xc53   :  { %v5518_v47 = vpop.eup %5517  ;;  %5537 = vpow2.f32 %v4852_v29 }
 0xc54   :  { %v5520_v18 = vpop.eup %5519  ;;  %5539 = vpow2.f32 %v4849_v59 }
 0xc55   :  { %2461 = vrot.lane.b32.xlu0 %v5516_v23, %s5889_s8  ;;  %v5522_v50 = vpop.eup %5521  ;;  %5541 = vpow2.f32 %v4854_v31 }
 0xc56   :  { %2453 = vrot.lane.b32.xlu1 %v5518_v47, %s5889_s8  ;;  %v5524_v16 = vpop.eup %5523  ;;  %5543 = vpow2.f32 %v4853_v1 }
 0xc57   :  { %v5526_v21 = vpop.eup %5525 }
 0xc58   :  { %v5528_v24 = vpop.eup %5527 }
 0xc59   :  { %2463 = vrot.lane.b32.xlu0 %v5520_v18, %s5889_s8  ;;  %v5530_v37 = vpop.eup %5529 }
 0xc5a   :  { %2457 = vrot.lane.b32.xlu1 %v5522_v50, %s5889_s8  ;;  %v5532_v45 = vpop.eup %5531  ;;  %v2382_v38 = vadd.f32 1.0, %v5530_v37 }
 0xc5b   :  { %v5534_v56 = vpop.eup %5533  ;;  %v2384_v20 = vadd.f32 1.0, %v5532_v45 }
 0xc5c   :  { %v5536_v25 = vpop.eup %5535  ;;  %5545 = vrcp.f32 %v2382_v38  ;;  %v2385_v7 = vadd.f32 1.0, %v5534_v56 }
 0xc5d   :  { %2467 = vrot.lane.b32.xlu0 %v5524_v16, %s5889_s8  ;;  %v5538_v19 = vpop.eup %5537  ;;  %5547 = vpow2.f32 %v4845_v39  ;;  %v2381_v49 = vadd.f32 1.0, %v5536_v25  ;;  %v2422_v25 = vrot.slane %v6658_v40, 7 }
 0xc5e   :  { %2465 = vrot.lane.b32.xlu1 %v5526_v21, %s5889_s8  ;;  %5549 = vrcp.f32 %v2384_v20  ;;  %v5540_v57 = vpop.eup %5539  ;;  %v2386_v43 = vadd.f32 1.0, %v5538_v19 }
 0xc5f   :  { %5551 = vrcp.f32 %v2385_v7  ;;  %v5542_v53 = vpop.eup %5541  ;;  %v2383_v48 = vadd.f32 1.0, %v5540_v57  ;;  %v2424_v7 = vrot.slane %v6650_v26, 7  ;;  %v2425_v57 = vrot.slane %v6661_v44, 7 }
 0xc60   :  { %5553 = vrcp.f32 %v2381_v49  ;;  %v5544_v2 = vpop.eup %5543  ;;  %v2388_v54 = vadd.f32 1.0, %v5542_v53  ;;  %v2426_v26 = vrot.slane %v6668_v22, 7 }
 0xc61   :  { %5555 = vrcp.f32 %v2386_v43  ;;  %v2387_v12 = vadd.f32 1.0, %v5544_v2  ;;  %v2421_v2 = vrot.slane %v6639_v55, 7 }
 0xc62   :  { %2230 = vrot.lane.b32.xlu1 %v5528_v24, %s5889_s8  ;;  %5557 = vrcp.f32 %v2383_v48 }
 0xc63   :  { %5559 = vrcp.f32 %v2388_v54 }
 0xc64   :  { %5561 = vrcp.f32 %v2387_v12 }
 0xc66   :  { %v6756_v35 = vpop.eup %5545 }
 0xc67   :  { %v5548_v13 = vpop.eup %5547  ;;  %v2438_v19 = vmul.f32 %v6756_v35, %v2422_v25 }
 0xc68   :  { %v6759_v42 = vpop.eup %5549  ;;  %v2224_v5 = vadd.f32 1.0, %v5548_v13 }
 0xc69   :  { %v6763_v23 = vpop.eup %5551  ;;  %v2440_v43 = vmul.f32 %v6759_v42, %v2424_v7 }
 0xc6a   :  { %v6767_v50 = vpop.eup %5553  ;;  %5563 = vrcp.f32 %v2224_v5  ;;  %v2441_v40 = vmul.f32 %v6763_v23, %v2425_v57  ;;  %v2428_v5 = vrot.slane %v6677_v51, 7 }
 0xc6b   :  { %v6771_v24 = vpop.eup %5555  ;;  %v2437_v44 = vmul.f32 %v6767_v50, %v2421_v2 }
 0xc6c   :  { %v6775_v30 = vpop.eup %5557  ;;  %v2442_v55 = vmul.f32 %v6771_v24, %v2426_v26 }
 0xc6d   :  { %v6779_v59 = vpop.eup %5559 }
 0xc6e   :  { %v6783_v1 = vpop.eup %5561 }
 0xc74   :  { %v6788_v56 = vpop.eup %5563 }
 0xcc3   :  { %v2456_v63 = vpop.permute.xlu0 %2455 }
 0xcc4   :  { %v2478_v58 = vmul.f32 %v6756_v35, %v2456_v63  ;;  %v2460_v61 = vpop.permute.xlu1 %2459 }
 0xcc5   :  { %v2480_v41 = vmul.f32 %v6759_v42, %v2460_v61 }
 0xcc6   :  { %2495 = vrot.lane.b32.xlu1 %v2478_v58, %s5886_s4  ;;  %v2423_v58 = vrot.slane %v6647_v62, 7  ;;  %v2444_v62 = vmul.f32 %v6779_v59, %v2428_v5 }
 0xcc7   :  { %v2462_v47 = vpop.permute.xlu0 %2461  ;;  %2499 = vrot.lane.b32.xlu0 %v2480_v41, %s5886_s4 }
 0xcc8   :  { %v2481_v18 = vmul.f32 %v6763_v23, %v2462_v47  ;;  %v2454_v16 = vpop.permute.xlu1 %2453  ;;  %v2439_v22 = vmul.f32 %v6775_v30, %v2423_v58 }
 0xcc9   :  { %v2477_v21 = vmul.f32 %v6767_v50, %v2454_v16  ;;  %v2427_v16 = vrot.slane %v6670_v34, 7 }
 0xcca   :  { %2501 = vrot.lane.b32.xlu1 %v2481_v18, %s5886_s4 }
 0xccb   :  { %v2464_v60 = vpop.permute.xlu0 %2463  ;;  %2493 = vrot.lane.b32.xlu0 %v2477_v21, %s5886_s4  ;;  %v2443_v51 = vmul.f32 %v6783_v1, %v2427_v16 }
 0xccc   :  { %v2482_v28 = vmul.f32 %v6771_v24, %v2464_v60  ;;  %v2458_v14 = vpop.permute.xlu1 %2457 }
 0xccd   :  { %v2479_v29 = vmul.f32 %v6775_v30, %v2458_v14 }
 0xcce   :  { %2503 = vrot.lane.b32.xlu1 %v2482_v28, %s5886_s4 }
 0xccf   :  { %v2468_v31 = vpop.permute.xlu0 %2467  ;;  %2497 = vrot.lane.b32.xlu0 %v2479_v29, %s5886_s4 }
 0xcd0   :  { %v2484_v37 = vmul.f32 %v6779_v59, %v2468_v31  ;;  %v2466_v45 = vpop.permute.xlu1 %2465 }
 0xcd1   :  { %v2483_v38 = vmul.f32 %v6783_v1, %v2466_v45  ;;  %v2228_v45 = vmul.f32 %v6788_v56, %v6680_v32 }
 0xcd2   :  { %2507 = vrot.lane.b32.xlu1 %v2484_v37, %s5886_s4 }
 0xcd3   :  { %2505 = vrot.lane.b32.xlu0 %v2483_v38, %s5886_s4 }
 0xcd4   :  { %v2231_v39 = vpop.permute.xlu1 %2230 }
 0xcd5   :  { %v2233_v20 = vmul.f32 %v6788_v56, %v2231_v39 }
 0xcd7   :  { %2235 = vrot.lane.b32.xlu0 %v2233_v20, %s5886_s4 }
 0xd38   :  { %v2496_v49 = vpop.permute.xlu1 %2495 }
 0xd39   :  { %v6797_v53 = vadd.f32 %v2496_v49, %v2438_v19  ;;  %v2500_v48 = vpop.permute.xlu0 %2499 }
 0xd3a   :  { %v6800_v54 = vadd.f32 %v2500_v48, %v2440_v43 }
 0xd3b   :  { %5565 = vtanh.f32 %v6797_v53 }
 0xd3c   :  { %v2502_v63 = vpop.permute.xlu1 %2501  ;;  %5567 = vtanh.f32 %v6800_v54 }
 0xd3d   :  { %v6807_v12 = vadd.f32 %v2502_v63, %v2441_v40  ;;  %v2494_v13 = vpop.permute.xlu0 %2493 }
 0xd3e   :  { %v6810_v61 = vadd.f32 %v2494_v13, %v2437_v44 }
 0xd3f   :  { %5569 = vtanh.f32 %v6807_v12 }
 0xd40   :  { %v2504_v41 = vpop.permute.xlu1 %2503  ;;  %5571 = vtanh.f32 %v6810_v61 }
 0xd41   :  { %v6817_v47 = vadd.f32 %v2504_v41, %v2442_v55  ;;  %v2498_v18 = vpop.permute.xlu0 %2497 }
 0xd42   :  { %v6820_v21 = vadd.f32 %v2498_v18, %v2439_v22 }
 0xd43   :  { %5573 = vtanh.f32 %v6817_v47 }
 0xd44   :  { %v2508_v60 = vpop.permute.xlu1 %2507  ;;  %5575 = vtanh.f32 %v6820_v21 }
 0xd45   :  { %v5566_v28 = vpop.eup %5565  ;;  %v6826_v14 = vadd.f32 %v2508_v60, %v2444_v62  ;;  %v2506_v29 = vpop.permute.xlu0 %2505 }
 0xd46   :  { %2543 = vrot.lane.b32.xlu0 %v5566_v28, %s5885_s30  ;;  %v5568_v31 = vpop.eup %5567  ;;  %v6829_v37 = vadd.f32 %v2506_v29, %v2443_v51 }
 0xd47   :  { %5577 = vtanh.f32 %v6826_v14  ;;  %2547 = vrot.lane.b32.xlu1 %v5568_v31, %s5885_s30 }
 0xd48   :  { %5579 = vtanh.f32 %v6829_v37 }
 0xd49   :  { %v5570_v34 = vpop.eup %5569  ;;  %v2236_v38 = vpop.permute.xlu0 %2235 }
 0xd4a   :  { %2549 = vrot.lane.b32.xlu0 %v5570_v34, %s5885_s30  ;;  %v5572_v39 = vpop.eup %5571  ;;  %v6837_v20 = vadd.f32 %v2236_v38, %v2228_v45 }
 0xd4b   :  { %2541 = vrot.lane.b32.xlu1 %v5572_v39, %s5885_s30 }
 0xd4c   :  { %5581 = vtanh.f32 %v6837_v20 }
 0xd4d   :  { %v5574_v25 = vpop.eup %5573 }
 0xd4e   :  { %2551 = vrot.lane.b32.xlu0 %v5574_v25, %s5885_s30  ;;  %v5576_v7 = vpop.eup %5575 }
 0xd4f   :  { %2545 = vrot.lane.b32.xlu1 %v5576_v7, %s5885_s30 }
 0xd51   :  { %v5578_v19 = vpop.eup %5577 }
 0xd52   :  { %2555 = vrot.lane.b32.xlu0 %v5578_v19, %s5885_s30  ;;  %v5580_v32 = vpop.eup %5579 }
 0xd53   :  { %2553 = vrot.lane.b32.xlu1 %v5580_v32, %s5885_s30 }
 0xd56   :  { %v5582_v49 = vpop.eup %5581 }
 0xd57   :  { %2241 = vrot.lane.b32.xlu1 %v5582_v49, %s5885_s30 }
 0xdb8   :  { %v2544_v57 = vpop.permute.xlu0 %2543 }
 0xdb9   :  { %v2548_v43 = vpop.permute.xlu1 %2547  ;;  %v2566_v40 = vmul.f32 %v6756_v35, %v2544_v57 }
 0xdba   :  { %v2568_v44 = vmul.f32 %v6759_v42, %v2548_v43 }
 0xdbb   :  { %v2581_v41 = vrot.slane %v2566_v40, 7  ;;  %v2710_v18 = vrot.slane %v2566_v40, 2 }
 0xdbc   :  { %v2550_v48 = vpop.permute.xlu0 %2549  ;;  %v2585_v28 = vrot.slane %v2568_v44, 5 }
 0xdbd   :  { %v2542_v2 = vpop.permute.xlu1 %2541  ;;  %v2569_v5 = vmul.f32 %v6763_v23, %v2550_v48 }
 0xdbe   :  { %v2565_v63 = vmul.f32 %v6767_v50, %v2542_v2 }
 0xdbf   :  { %v2715_v31 = vrot.slane %v2569_v5, 7  ;;  %v2587_v34 = vrot.slane %v2569_v5, 4 }
 0xdc0   :  { %v2552_v26 = vpop.permute.xlu0 %2551  ;;  %v2709_v13 = vrot.slane %v2565_v63, 3  ;;  %v2582_v29 = vsel %vm1217_vm12, %v2581_v41, %v2565_v63 }
 0xdc1   :  { %v2546_v58 = vpop.permute.xlu1 %2545  ;;  %v2570_v55 = vmul.f32 %v6771_v24, %v2552_v26 }
 0xdc2   :  { %v2567_v22 = vmul.f32 %v6775_v30, %v2546_v58  ;;  %v2711_v50 = vsel %vm1208_vm9, %v2710_v18, %v2709_v13 }
 0xdc3   :  { %v2717_v51 = vrot.slane %v2570_v55, 6  ;;  %v2589_v57 = vrot.slane %v2570_v55, 3 }
 0xdc4   :  { %v2556_v16 = vpop.permute.xlu0 %2555  ;;  %v2583_v62 = vrot.slane %v2567_v22, 6  ;;  %v2712_v60 = vrot.slane %v2567_v22, 1 }
 0xdc5   :  { %v2572_v35 = vmul.f32 %v6779_v59, %v2556_v16  ;;  %v2554_v42 = vpop.permute.xlu1 %2553 }
 0xdc6   :  { %v2713_v24 = vsel %vm1211_vm10, %v2712_v60, %v2711_v50  ;;  %v2571_v23 = vmul.f32 %v6783_v1, %v2554_v42  ;;  %v2584_v38 = vsel %vm1220_vm13, %v2583_v62, %v2582_v29 }
 0xdc7   :  { %v2714_v30 = vsel %vm1214_vm11, %v2568_v44, %v2713_v24  ;;  %v2721_v45 = vrot.slane %v2572_v35, 4  ;;  %v2586_v25 = vsel %vm1223_vm14, %v2585_v28, %v2584_v38  ;;  %v2592_v48 = vrot.slane %v2572_v35, 1 }
 0xdc8   :  { %v2590_v39 = vrot.slane %v2571_v23, 2  ;;  %v2719_v59 = vrot.slane %v2571_v23, 5  ;;  %v2716_v7 = vsel %vm1217_vm12, %v2715_v31, %v2714_v30  ;;  %v2588_v19 = vsel %vm1226_vm15, %v2587_v34, %v2586_v25 }
 0xdc9   :  { %v2242_v32 = vpop.permute.xlu1 %2241  ;;  %v2718_v49 = vsel %vm1220_vm13, %v2717_v51, %v2716_v7  ;;  %2594 = vrot.lane.b32.xlu1 %v2588_v19, %s5891_s9 }
 0xdca   :  { %v6865_v1 = vmul.f32 %v6788_v56, %v2242_v32  ;;  %v2720_v43 = vsel %vm1223_vm14, %v2719_v59, %v2718_v49  ;;  %v2591_v63 = vsel %vm1208_vm9, %v2590_v39, %v2589_v57 }
 0xdcb   :  { %v2722_v2 = vsel %vm1226_vm15, %v2721_v45, %v2720_v43  ;;  %v2593_v26 = vsel %vm1211_vm10, %v2592_v48, %v2591_v63 }
 0xdcc   :  { %v2601_v40 = vrot.slane %v6865_v1, 5  ;;  %2723 = vrot.lane.b32.xlu0 %v2722_v2, %s5891_s9 }
 0xdce   :  { %2602 = vrot.lane.b32.xlu1 %v2601_v40, %s5889_s8 }
 0xdd0   :  { %2596 = vrot.lane.b32.xlu0 %v2593_v26, %s5891_s9 }
 0xe3b   :  { %v2595_v44 = vpop.permute.xlu1 %2594 }
 0xe3e   :  { %v2724_v56 = vpop.permute.xlu0 %2723 }
 0xe3f   :  { %5100 = vmatmul.mubr.msk.f32.vlgmr.msra.gmra.mrb[22].mxu0 %vm547_vm6, %v2724_v56 }
 0xe40   :  { %v2603_v13 = vpop.permute.xlu1 %2602  ;;  %5110 = vmatpush3.msra.mxu0 %v6572_v8  ;;  %5111 = vmatprep.mubr.msk.f32.mxu0 %vm5888_vm8, %v5887_v11 }
 0xe41   :  { %v2605_v58 = vsel %vm547_vm6, %v2595_v44, %v2603_v13  ;;  %5121 = vmatprep.subr.mxu0 %v5887_v11 }
 0xe42   :  { %v2597_v55 = vpop.permute.xlu0 %2596  ;;  %v2610_v5 = vrot.slane %v2605_v58, 3 }
 0xe43   :  { %v2606_v41 = vsel %vm547_vm6, %v2597_v55, %v2603_v13 }
 0xe44   :  { %v2611_v22 = vrot.slane %v2606_v41, 3 }
 0xe46   :  { %v2612_v18 = vsel %vm2609_vm0, %v2610_v5, %v2611_v22  ;;  %vm3537_vm0 = vcmask 1042432  }
 0xe47   :  { %5095 = vmatmul.mubr.msk.f32.vlgmr.msra.gmra.mrb[16].mxu1 %vm177_vm2, %v2612_v18 }
 0xe48   :  { %5203 = vmatpush3.bf16.msra.mxu1 %v6389_v10  ;;  %5106 = vmatprep.mubr.msk.f32.mxu1 %vm5888_vm8, %v5887_v11 }
 0xe49   :  { %5204 = vmatprep.subr.bf16.mxu1 %v5890_v4 }
 0xf12   :  { %v2793_v8 = vpop.f32.mrb[22].mxu0 }
 0xf13   :  { %v2798_v16 = vrot.slane %v2793_v8, 4  ;;  %v5101_v62 = vpop.f32.mrb[23].mxu0  ;;  %v2800_v35 = vrot.slane %v2793_v8, 6  ;;  %v2802_v51 = vrot.slane %v2793_v8, 1  ;;  %v2799_v29 = vrot.slane %v2793_v8, 5 }
 0xf14   :  { %v2817_v31 = vadd.f32 %v2793_v8, %v6294_v27  ;;  %v2803_v23 = vrot.slane %v2793_v8, 2  ;;  %v2801_v30 = vrot.slane %v2793_v8, 7  ;;  %v2804_v39 = vrot.slane %v2793_v8, 3 }
 0xf15   :  { %v2813_v60 = vadd.f32 %v2798_v16, %v6281_v6  ;;  %v2815_v42 = vadd.f32 %v2800_v35, %v6287_v17  ;;  %v2818_v34 = vadd.f32 %v2802_v51, %v6292_v0  ;;  %v2814_v45 = vadd.f32 %v2799_v29, %v6279_v3 }
 0xf16   :  { %v2819_v38 = vadd.f32 %v2803_v23, %v6302_v36  ;;  %v2816_v59 = vadd.f32 %v2801_v30, %v6285_v15  ;;  %v2820_v19 = vadd.f32 %v2804_v39, %v6300_v33  ;;  %v4862_v26 = vmul.f32 -1.442695, %v2817_v31 }
 0xf17   :  { %5583 = vtanh.f32 %v2813_v60  ;;  %v4858_v40 = vmul.f32 -1.442695, %v2813_v60  ;;  %v4860_v63 = vmul.f32 -1.442695, %v2815_v42  ;;  %v4863_v56 = vmul.f32 -1.442695, %v2818_v34 }
 0xf18   :  { %5585 = vtanh.f32 %v2815_v42  ;;  %v4859_v13 = vmul.f32 -1.442695, %v2814_v45  ;;  %v4864_v55 = vmul.f32 -1.442695, %v2819_v38  ;;  %v4861_v41 = vmul.f32 -1.442695, %v2816_v59 }
 0xf19   :  { %5587 = vtanh.f32 %v2817_v31  ;;  %v4865_v18 = vmul.f32 -1.442695, %v2820_v19 }
 0xf1a   :  { %v2681_v28 = vpop.f32.mrb[16].mxu1  ;;  %5589 = vtanh.f32 %v2818_v34 }
 0xf1b   :  { %v5096_v50 = vpop.f32.mrb[17].mxu1  ;;  %5591 = vtanh.f32 %v2814_v45  ;;  %v2682_v25 = vadd.f32 %v6746_v46, %v2681_v28 }
 0xf1c   :  { %5593 = vtanh.f32 %v2819_v38 }
 0xf1d   :  { %5595 = vtanh.f32 %v2816_v59  ;;  %v4856_v5 = vmul.f32 -1.442695, %v2682_v25 }
 0xf1e   :  { %5597 = vtanh.f32 %v2682_v25 }
 0xf1f   :  { %5599 = vtanh.f32 %v2820_v19 }
 0xf20   :  { %5601 = vpow2.f32 %v4858_v40 }
 0xf21   :  { %v5584_v24 = vpop.eup %5583  ;;  %5603 = vpow2.f32 %v4860_v63 }
 0xf22   :  { %2917 = vrot.lane.b32.xlu0 %v5584_v24, %s5889_s8  ;;  %v5586_v7 = vpop.eup %5585  ;;  %5605 = vpow2.f32 %v4862_v26 }
 0xf23   :  { %v5588_v32 = vpop.eup %5587  ;;  %5607 = vpow2.f32 %v4863_v56 }
 0xf24   :  { %2925 = vrot.lane.b32.xlu1 %v5588_v32, %s5889_s8  ;;  %v5590_v49 = vpop.eup %5589  ;;  %5609 = vpow2.f32 %v4859_v13 }
 0xf25   :  { %v5592_v57 = vpop.eup %5591 }
 0xf26   :  { %2921 = vrot.lane.b32.xlu0 %v5586_v7, %s5889_s8  ;;  %v5594_v43 = vpop.eup %5593 }
 0xf27   :  { %v5596_v46 = vpop.eup %5595 }
 0xf28   :  { %2919 = vrot.lane.b32.xlu1 %v5592_v57, %s5889_s8  ;;  %v5598_v48 = vpop.eup %5597 }
 0xf29   :  { %v5600_v2 = vpop.eup %5599 }
 0xf2a   :  { %2927 = vrot.lane.b32.xlu0 %v5590_v49, %s5889_s8  ;;  %v5602_v44 = vpop.eup %5601 }
 0xf2b   :  { %v2845_v58 = vadd.f32 1.0, %v5602_v44  ;;  %v5604_v22 = vpop.eup %5603 }
 0xf2c   :  { %2923 = vrot.lane.b32.xlu1 %v5596_v46, %s5889_s8  ;;  %v5606_v8 = vpop.eup %5605  ;;  %v2847_v16 = vadd.f32 1.0, %v5604_v22 }
 0xf2d   :  { %5611 = vrcp.f32 %v2845_v58  ;;  %v5608_v62 = vpop.eup %5607  ;;  %v2849_v60 = vadd.f32 1.0, %v5606_v8 }
 0xf2e   :  { %2929 = vrot.lane.b32.xlu0 %v5594_v43, %s5889_s8  ;;  %5613 = vpow2.f32 %v4864_v55  ;;  %v5610_v35 = vpop.eup %5609  ;;  %v2850_v51 = vadd.f32 1.0, %v5608_v62 }
 0xf2f   :  { %5615 = vpow2.f32 %v4861_v41  ;;  %v2846_v31 = vadd.f32 1.0, %v5610_v35 }
 0xf30   :  { %2931 = vrot.lane.b32.xlu1 %v5600_v2, %s5889_s8  ;;  %5617 = vpow2.f32 %v4856_v5 }
 0xf31   :  { %5619 = vpow2.f32 %v4865_v18 }
 0xf32   :  { %2694 = vrot.lane.b32.xlu0 %v5598_v48, %s5889_s8  ;;  %5621 = vrcp.f32 %v2847_v16  ;;  %v2885_v16 = vrot.slane %v6810_v61, 7 }
 0xf33   :  { %5623 = vrcp.f32 %v2849_v60 }
 0xf34   :  { %5625 = vrcp.f32 %v2850_v51  ;;  %v2889_v51 = vrot.slane %v6807_v12, 7 }
 0xf35   :  { %5627 = vrcp.f32 %v2846_v31  ;;  %v2890_v31 = vrot.slane %v6817_v47, 7 }
 0xf37   :  { %v6905_v28 = vpop.eup %5611 }
 0xf38   :  { %v5614_v42 = vpop.eup %5613  ;;  %v2901_v62 = vmul.f32 %v6905_v28, %v2885_v16 }
 0xf39   :  { %v5616_v24 = vpop.eup %5615  ;;  %v2851_v23 = vadd.f32 1.0, %v5614_v42 }
 0xf3a   :  { %v5618_v34 = vpop.eup %5617  ;;  %v2848_v30 = vadd.f32 1.0, %v5616_v24 }
 0xf3b   :  { %v5620_v45 = vpop.eup %5619  ;;  %v2688_v38 = vadd.f32 1.0, %v5618_v34  ;;  %5629 = vrcp.f32 %v2851_v23 }
 0xf3c   :  { %v6909_v39 = vpop.eup %5621  ;;  %5631 = vrcp.f32 %v2848_v30  ;;  %v2852_v25 = vadd.f32 1.0, %v5620_v45  ;;  %v2886_v30 = vrot.slane %v6797_v53, 7  ;;  %v2888_v53 = vrot.slane %v6800_v54, 7 }
 0xf3d   :  { %v6912_v19 = vpop.eup %5623  ;;  %5633 = vrcp.f32 %v2688_v38  ;;  %v2891_v38 = vrot.slane %v6829_v37, 7 }
 0xf3e   :  { %v6916_v57 = vpop.eup %5625  ;;  %5635 = vrcp.f32 %v2852_v25  ;;  %v2905_v24 = vmul.f32 %v6912_v19, %v2889_v51 }
 0xf3f   :  { %v6920_v48 = vpop.eup %5627 }
 0xf40   :  { %v2902_v47 = vmul.f32 %v6920_v48, %v2886_v30 }
 0xf45   :  { %v6924_v63 = vpop.eup %5629 }
 0xf46   :  { %v6928_v56 = vpop.eup %5631 }
 0xf47   :  { %v6932_v55 = vpop.eup %5633  ;;  %v2904_v37 = vmul.f32 %v6928_v56, %v2888_v53 }
 0xf48   :  { %v6936_v22 = vpop.eup %5635  ;;  %v2692_v54 = vmul.f32 %v6932_v55, %v6837_v20 }
 0xf94   :  { %v2918_v50 = vpop.permute.xlu0 %2917 }
 0xf95   :  { %v2941_v29 = vmul.f32 %v6905_v28, %v2918_v50  ;;  %v2887_v50 = vrot.slane %v6820_v21, 7  ;;  %v2906_v21 = vmul.f32 %v6916_v57, %v2890_v31 }
 0xf96   :  { %v2926_v32 = vpop.permute.xlu1 %2925 }
 0xf97   :  { %2957 = vrot.lane.b32.xlu1 %v2941_v29, %s5886_s4  ;;  %v2945_v49 = vmul.f32 %v6912_v19, %v2926_v32  ;;  %v2903_v42 = vmul.f32 %v6909_v39, %v2887_v50  ;;  %v2907_v32 = vmul.f32 %v6924_v63, %v2891_v38 }
 0xf98   :  { %v2922_v59 = vpop.permute.xlu0 %2921 }
 0xf99   :  { %v2943_v7 = vmul.f32 %v6909_v39, %v2922_v59  ;;  %2965 = vrot.lane.b32.xlu0 %v2945_v49, %s5886_s4 }
 0xf9a   :  { %v2920_v2 = vpop.permute.xlu1 %2919 }
 0xf9b   :  { %2961 = vrot.lane.b32.xlu1 %v2943_v7, %s5886_s4  ;;  %v2942_v40 = vmul.f32 %v6920_v48, %v2920_v2  ;;  %v2892_v2 = vrot.slane %v6826_v14, 7 }
 0xf9c   :  { %v2928_v43 = vpop.permute.xlu0 %2927 }
 0xf9d   :  { %v2946_v46 = vmul.f32 %v6916_v57, %v2928_v43  ;;  %2959 = vrot.lane.b32.xlu0 %v2942_v40, %s5886_s4 }
 0xf9e   :  { %v2924_v13 = vpop.permute.xlu1 %2923 }
 0xf9f   :  { %2967 = vrot.lane.b32.xlu1 %v2946_v46, %s5886_s4  ;;  %v2944_v58 = vmul.f32 %v6928_v56, %v2924_v13  ;;  %v2908_v13 = vmul.f32 %v6936_v22, %v2892_v2 }
 0xfa0   :  { %v2930_v26 = vpop.permute.xlu0 %2929 }
 0xfa1   :  { %v2947_v44 = vmul.f32 %v6924_v63, %v2930_v26  ;;  %2963 = vrot.lane.b32.xlu0 %v2944_v58, %s5886_s4 }
 0xfa2   :  { %v2932_v18 = vpop.permute.xlu1 %2931 }
 0xfa3   :  { %2969 = vrot.lane.b32.xlu1 %v2947_v44, %s5886_s4  ;;  %v2948_v8 = vmul.f32 %v6936_v22, %v2932_v18 }
 0xfa4   :  { %v2695_v41 = vpop.permute.xlu0 %2694 }
 0xfa5   :  { %v2697_v5 = vmul.f32 %v6932_v55, %v2695_v41  ;;  %2971 = vrot.lane.b32.xlu0 %v2948_v8, %s5886_s4 }
 0xfa7   :  { %2699 = vrot.lane.b32.xlu1 %v2697_v5, %s5886_s4 }
0x1009   :  { %v2958_v60 = vpop.permute.xlu1 %2957 }
0x100a   :  { %v6943_v35 = vadd.f32 %v2958_v60, %v2901_v62 }
0x100b   :  { %v2966_v61 = vpop.permute.xlu0 %2965 }
0x100c   :  { %5637 = vtanh.f32 %v6943_v35  ;;  %v6954_v45 = vadd.f32 %v2966_v61, %v2905_v24 }
0x100d   :  { %v2962_v29 = vpop.permute.xlu1 %2961 }
0x100e   :  { %v6951_v23 = vadd.f32 %v2962_v29, %v2903_v42 }
0x100f   :  { %v2960_v25 = vpop.permute.xlu0 %2959 }
0x1010   :  { %5639 = vtanh.f32 %v6951_v23  ;;  %v6965_v7 = vadd.f32 %v2960_v25, %v2902_v47 }
0x1011   :  { %v2968_v12 = vpop.permute.xlu1 %2967  ;;  %5641 = vtanh.f32 %v6954_v45 }
0x1012   :  { %v6962_v59 = vadd.f32 %v2968_v12, %v2906_v21 }
0x1013   :  { %v2964_v46 = vpop.permute.xlu0 %2963 }
0x1014   :  { %5643 = vtanh.f32 %v6962_v59  ;;  %v6974_v40 = vadd.f32 %v2964_v46, %v2904_v37 }
0x1015   :  { %v2970_v49 = vpop.permute.xlu1 %2969  ;;  %5645 = vtanh.f32 %v6965_v7 }
0x1016   :  { %v5638_v34 = vpop.eup %5637  ;;  %v6971_v43 = vadd.f32 %v2970_v49, %v2907_v32 }
0x1017   :  { %3005 = vrot.lane.b32.xlu0 %v5638_v34, %s5885_s30  ;;  %v2972_v41 = vpop.permute.xlu0 %2971 }
0x1018   :  { %5647 = vtanh.f32 %v6971_v43  ;;  %v6984_v14 = vadd.f32 %v2972_v41, %v2908_v13 }
0x1019   :  { %v2700_v26 = vpop.permute.xlu1 %2699  ;;  %5649 = vtanh.f32 %v6974_v40 }
0x101a   :  { %v5640_v44 = vpop.eup %5639  ;;  %v6981_v58 = vadd.f32 %v2700_v26, %v2692_v54 }
0x101b   :  { %3009 = vrot.lane.b32.xlu0 %v5640_v44, %s5885_s30  ;;  %v5642_v5 = vpop.eup %5641 }
0x101c   :  { %5651 = vtanh.f32 %v6981_v58  ;;  %3013 = vrot.lane.b32.xlu1 %v5642_v5, %s5885_s30 }
0x101d   :  { %5653 = vtanh.f32 %v6984_v14 }
0x101e   :  { %v5644_v18 = vpop.eup %5643 }
0x101f   :  { %3015 = vrot.lane.b32.xlu0 %v5644_v18, %s5885_s30  ;;  %v5646_v20 = vpop.eup %5645 }
0x1020   :  { %3007 = vrot.lane.b32.xlu1 %v5646_v20, %s5885_s30 }
0x1022   :  { %v5648_v8 = vpop.eup %5647 }
0x1023   :  { %3017 = vrot.lane.b32.xlu0 %v5648_v8, %s5885_s30  ;;  %v5650_v16 = vpop.eup %5649 }
0x1024   :  { %3011 = vrot.lane.b32.xlu1 %v5650_v16, %s5885_s30 }
0x1026   :  { %v5652_v62 = vpop.eup %5651 }
0x1027   :  { %2705 = vrot.lane.b32.xlu0 %v5652_v62, %s5885_s30  ;;  %v5654_v60 = vpop.eup %5653 }
0x1028   :  { %3019 = vrot.lane.b32.xlu1 %v5654_v60, %s5885_s30 }
0x1089   :  { %v3006_v50 = vpop.permute.xlu0 %3005 }
0x108a   :  { %v3029_v24 = vmul.f32 %v6905_v28, %v3006_v50 }
0x108c   :  { %v3173_v38 = vrot.slane %v3029_v24, 4 }
0x108d   :  { %v3010_v51 = vpop.permute.xlu0 %3009 }
0x108e   :  { %v3014_v42 = vpop.permute.xlu1 %3013  ;;  %v3031_v29 = vmul.f32 %v6909_v39, %v3010_v51 }
0x108f   :  { %v3033_v46 = vmul.f32 %v6912_v19, %v3014_v42 }
0x1090   :  { %v3047_v30 = vrot.slane %v3031_v29, 6  ;;  %v3176_v21 = vrot.slane %v3031_v29, 2 }
0x1091   :  { %v3016_v31 = vpop.permute.xlu0 %3015  ;;  %v3051_v62 = vrot.slane %v3033_v46, 4 }
0x1092   :  { %v3008_v61 = vpop.permute.xlu1 %3007  ;;  %v3034_v53 = vmul.f32 %v6916_v57, %v3016_v31 }
0x1093   :  { %v3030_v34 = vmul.f32 %v6920_v48, %v3008_v61 }
0x1094   :  { %v3181_v13 = vrot.slane %v3034_v53, 7 }
0x1095   :  { %v3018_v12 = vpop.permute.xlu0 %3017  ;;  %v3045_v47 = vrot.slane %v3030_v34, 7  ;;  %v3174_v25 = vrot.slane %v3030_v34, 3 }
0x1096   :  { %v3012_v32 = vpop.permute.xlu1 %3011  ;;  %v3035_v49 = vmul.f32 %v6924_v63, %v3018_v12 }
0x1097   :  { %v3175_v37 = vsel %vm1208_vm9, %v3174_v25, %v3173_v38  ;;  %v3032_v39 = vmul.f32 %v6928_v56, %v3012_v32  ;;  %v3046_v28 = vsel %vm1220_vm13, %v3045_v47, %v3029_v24  ;;  %v3052_v56 = vrot.slane %v3034_v53, 3 }
0x1098   :  { %v3177_v48 = vsel %vm1211_vm10, %v3176_v21, %v3175_v37  ;;  %v3048_v2 = vsel %vm1223_vm14, %v3047_v30, %v3046_v28  ;;  %v3183_v41 = vrot.slane %v3035_v49, 6  ;;  %v3054_v20 = vrot.slane %v3035_v49, 2  ;;  %v7028_v30 = vld [vmem:[%s7523_s7] sm:$0xff] }
0x1099   :  { %v2706_v54 = vpop.permute.xlu0 %2705  ;;  %v3049_v26 = vrot.slane %v3032_v39, 5  ;;  %v3178_v44 = vrot.slane %v3032_v39, 1  ;;  %v3053_v42 = vsel %vm1208_vm9, %v3052_v56, %v3051_v62 }
0x109a   :  { %v7007_v57 = vmul.f32 %v6932_v55, %v2706_v54  ;;  %v3020_v63 = vpop.permute.xlu1 %3019 }
0x109b   :  { %v3179_v5 = vsel %vm1214_vm11, %v3178_v44, %v3177_v48  ;;  %v3036_v18 = vmul.f32 %v6936_v22, %v3020_v63  ;;  %v3050_v19 = vsel %vm1226_vm15, %v3049_v26, %v3048_v2  ;;  %v3055_v22 = vsel %vm1211_vm10, %v3054_v20, %v3053_v42 }
0x109c   :  { %3058 = vrot.lane.b32.xlu0 %v3050_v19, %s5891_s9  ;;  %v3065_v8 = vrot.slane %v7007_v57, 4  ;;  %v3180_v16 = vsel %vm1217_vm12, %v3033_v46, %v3179_v5 }
0x109d   :  { %v3185_v60 = vrot.slane %v3036_v18, 5  ;;  %v3182_v55 = vsel %vm1220_vm13, %v3181_v13, %v3180_v16  ;;  %v3056_v29 = vrot.slane %v3036_v18, 1  ;;  %v7054_v16 = vld [vmem:[%s7527_s10] ss:$0 sm:$0xff] }
0x109e   :  { %v3184_v50 = vsel %vm1223_vm14, %v3183_v41, %v3182_v55 }
0x109f   :  { %v3186_v51 = vsel %vm1226_vm15, %v3185_v60, %v3184_v50  ;;  %v3057_v31 = vsel %vm1214_vm11, %v3056_v29, %v3055_v22 }
0x10a0   :  { %3187 = vrot.lane.b32.xlu1 %v3186_v51, %s5891_s9  ;;  %3066 = vrot.lane.b32.xlu0 %v3065_v8, %s5889_s8 }
0x10a4   :  { %3060 = vrot.lane.b32.xlu1 %v3057_v31, %s5891_s9 }
0x110e   :  { %v3059_v24 = vpop.permute.xlu0 %3058 }
0x1112   :  { %v3188_v61 = vpop.permute.xlu1 %3187  ;;  %v3067_v34 = vpop.permute.xlu0 %3066 }
0x1113   :  { %5112 = vmatmul.mubr.msk.f32.vlgmr.msra.gmra.mrb[24].mxu0 %vm547_vm6, %v3188_v61  ;;  %v3069_v21 = vsel %vm547_vm6, %v3059_v24, %v3067_v34 }
0x1114   :  { %5122 = vmatpush3.msra.mxu0 %v7028_v30  ;;  %5123 = vmatprep.mubr.msk.f32.mxu0 %vm5888_vm8, %v5887_v11  ;;  %v3074_v47 = vrot.slane %v3069_v21, 4 }
0x1115   :  { %5133 = vmatprep.subr.mxu0 %v5887_v11 }
0x1116   :  { %v3061_v12 = vpop.permute.xlu1 %3060 }
0x1117   :  { %v3070_v38 = vsel %vm547_vm6, %v3061_v12, %v3067_v34 }
0x1118   :  { %v3075_v25 = vrot.slane %v3070_v38, 4 }
0x111a   :  { %v3076_v53 = vsel %vm3073_vm1, %v3074_v47, %v3075_v25 }
0x111b   :  { %5107 = vmatmul.mubr.msk.f32.vlgmr.msra.gmra.mrb[18].mxu1 %vm177_vm2, %v3076_v53 }
0x111c   :  { %5206 = vmatpush3.bf16.msra.mxu1 %v6389_v10  ;;  %5118 = vmatprep.mubr.msk.f32.mxu1 %vm5888_vm8, %v5887_v11 }
0x111d   :  { %5207 = vmatprep.subr.bf16.mxu1 %v5890_v4 }
0x11e6   :  { %v3257_v32 = vpop.f32.mrb[24].mxu0 }
0x11e7   :  { %v3262_v49 = vrot.slane %v3257_v32, 3  ;;  %v5113_v37 = vpop.f32.mrb[25].mxu0  ;;  %v3263_v28 = vrot.slane %v3257_v32, 4  ;;  %v3264_v46 = vrot.slane %v3257_v32, 5  ;;  %v3265_v54 = vrot.slane %v3257_v32, 6 }
0x11e8   :  { %v3266_v44 = vrot.slane %v3257_v32, 7  ;;  %v3267_v63 = vrot.slane %v3257_v32, 1  ;;  %v3268_v18 = vrot.slane %v3257_v32, 2  ;;  %v3282_v20 = vadd.f32 %v3257_v32, %v6292_v0 }
0x11e9   :  { %v3277_v39 = vadd.f32 %v3262_v49, %v6281_v6  ;;  %v3278_v26 = vadd.f32 %v3263_v28, %v6279_v3  ;;  %v3279_v13 = vadd.f32 %v3264_v46, %v6287_v17  ;;  %v3280_v41 = vadd.f32 %v3265_v54, %v6285_v15 }
0x11ea   :  { %v3281_v56 = vadd.f32 %v3266_v44, %v6294_v27  ;;  %v3283_v19 = vadd.f32 %v3267_v63, %v6302_v36  ;;  %v3284_v8 = vadd.f32 %v3268_v18, %v6300_v33  ;;  %v4874_v53 = vmul.f32 -1.442695, %v3282_v20 }
0x11eb   :  { %5655 = vtanh.f32 %v3277_v39  ;;  %v4869_v24 = vmul.f32 -1.442695, %v3277_v39  ;;  %v4870_v61 = vmul.f32 -1.442695, %v3278_v26  ;;  %v4871_v34 = vmul.f32 -1.442695, %v3279_v13 }
0x11ec   :  { %5657 = vtanh.f32 %v3278_v26  ;;  %v4872_v21 = vmul.f32 -1.442695, %v3280_v41  ;;  %v4873_v38 = vmul.f32 -1.442695, %v3281_v56  ;;  %v4875_v47 = vmul.f32 -1.442695, %v3283_v19 }
0x11ed   :  { %5659 = vtanh.f32 %v3279_v13  ;;  %v4876_v32 = vmul.f32 -1.442695, %v3284_v8 }
0x11ee   :  { %v3145_v48 = vpop.f32.mrb[18].mxu1  ;;  %5661 = vtanh.f32 %v3280_v41 }
0x11ef   :  { %v5108_v2 = vpop.f32.mrb[19].mxu1  ;;  %5663 = vtanh.f32 %v3281_v56  ;;  %v3146_v62 = vadd.f32 %v7054_v16, %v3145_v48 }
0x11f0   :  { %5665 = vtanh.f32 %v3283_v19 }
0x11f1   :  { %5667 = vtanh.f32 %v3282_v20  ;;  %v4867_v49 = vmul.f32 -1.442695, %v3146_v62 }
0x11f2   :  { %5669 = vtanh.f32 %v3284_v8 }
0x11f3   :  { %5671 = vtanh.f32 %v3146_v62 }
0x11f4   :  { %5673 = vpow2.f32 %v4869_v24 }
0x11f5   :  { %v5656_v5 = vpop.eup %5655  ;;  %5675 = vpow2.f32 %v4870_v61 }
0x11f6   :  { %3381 = vrot.lane.b32.xlu1 %v5656_v5, %s5889_s8  ;;  %v5658_v60 = vpop.eup %5657  ;;  %5677 = vpow2.f32 %v4871_v34 }
0x11f7   :  { %v5660_v55 = vpop.eup %5659  ;;  %3383 = vrot.lane.b32.xlu0 %v5658_v60, %s5889_s8  ;;  %5679 = vpow2.f32 %v4872_v21 }
0x11f8   :  { %v5662_v50 = vpop.eup %5661  ;;  %5681 = vpow2.f32 %v4873_v38 }
0x11f9   :  { %v5664_v51 = vpop.eup %5663  ;;  %5683 = vpow2.f32 %v4875_v47 }
0x11fa   :  { %3385 = vrot.lane.b32.xlu1 %v5660_v55, %s5889_s8  ;;  %v5666_v42 = vpop.eup %5665 }
0x11fb   :  { %3387 = vrot.lane.b32.xlu0 %v5662_v50, %s5889_s8  ;;  %v5668_v22 = vpop.eup %5667 }
0x11fc   :  { %v5670_v29 = vpop.eup %5669 }
0x11fd   :  { %v5672_v31 = vpop.eup %5671 }
0x11fe   :  { %3389 = vrot.lane.b32.xlu1 %v5664_v51, %s5889_s8  ;;  %v5674_v12 = vpop.eup %5673 }
0x11ff   :  { %3393 = vrot.lane.b32.xlu0 %v5666_v42, %s5889_s8  ;;  %v3309_v25 = vadd.f32 1.0, %v5674_v12  ;;  %v5676_v37 = vpop.eup %5675 }
0x1200   :  { %v5678_v39 = vpop.eup %5677  ;;  %v3310_v28 = vadd.f32 1.0, %v5676_v37 }
0x1201   :  { %5685 = vrcp.f32 %v3309_v25  ;;  %v5680_v46 = vpop.eup %5679  ;;  %v3311_v48 = vadd.f32 1.0, %v5678_v39 }
0x1202   :  { %3391 = vrot.lane.b32.xlu1 %v5668_v22, %s5889_s8  ;;  %5687 = vpow2.f32 %v4874_v53  ;;  %v5682_v2 = vpop.eup %5681  ;;  %v3312_v26 = vadd.f32 1.0, %v5680_v46 }
0x1203   :  { %3395 = vrot.lane.b32.xlu0 %v5670_v29, %s5889_s8  ;;  %5689 = vpow2.f32 %v4876_v32  ;;  %v5684_v54 = vpop.eup %5683  ;;  %v3313_v63 = vadd.f32 1.0, %v5682_v2  ;;  %v3349_v2 = vrot.slane %v6943_v35, 7 }
0x1204   :  { %5691 = vpow2.f32 %v4867_v49  ;;  %v3315_v56 = vadd.f32 1.0, %v5684_v54 }
0x1205   :  { %5693 = vrcp.f32 %v3310_v28 }
0x1206   :  { %3158 = vrot.lane.b32.xlu1 %v5672_v31, %s5889_s8  ;;  %5695 = vrcp.f32 %v3311_v48 }
0x1207   :  { %5697 = vrcp.f32 %v3312_v26 }
0x1208   :  { %5699 = vrcp.f32 %v3313_v63  ;;  %v3350_v63 = vrot.slane %v6965_v7, 7 }
0x1209   :  { %5701 = vrcp.f32 %v3315_v56 }
0x120b   :  { %v7065_v44 = vpop.eup %5685 }
0x120c   :  { %v5688_v41 = vpop.eup %5687  ;;  %v3365_v54 = vmul.f32 %v7065_v44, %v3349_v2 }
0x120d   :  { %v5690_v18 = vpop.eup %5689  ;;  %v3314_v19 = vadd.f32 1.0, %v5688_v41  ;;  %v3351_v41 = vrot.slane %v6951_v23, 7 }
0x120e   :  { %v5692_v20 = vpop.eup %5691  ;;  %v3316_v8 = vadd.f32 1.0, %v5690_v18 }
0x120f   :  { %v3152_v62 = vadd.f32 1.0, %v5692_v20  ;;  %5703 = vrcp.f32 %v3314_v19  ;;  %v7069_v60 = vpop.eup %5693  ;;  %v3352_v19 = vrot.slane %v6974_v40, 7 }
0x1210   :  { %v7071_v50 = vpop.eup %5695  ;;  %5705 = vrcp.f32 %v3316_v8  ;;  %v3353_v8 = vrot.slane %v6954_v45, 7  ;;  %v3354_v45 = vrot.slane %v6962_v59, 7 }
0x1211   :  { %5707 = vrcp.f32 %v3152_v62  ;;  %v7076_v29 = vpop.eup %5697  ;;  %v3367_v18 = vmul.f32 %v7071_v50, %v3351_v41 }
0x1212   :  { %v7079_v24 = vpop.eup %5699  ;;  %v3368_v7 = vmul.f32 %v7076_v29, %v3352_v19 }
0x1213   :  { %v7084_v12 = vpop.eup %5701 }
0x1219   :  { %v7087_v47 = vpop.eup %5703 }
0x121a   :  { %v7092_v49 = vpop.eup %5705 }
0x121b   :  { %v7095_v39 = vpop.eup %5707 }
0x1268   :  { %v3382_v13 = vpop.permute.xlu1 %3381 }
0x1269   :  { %v3405_v5 = vmul.f32 %v7065_v44, %v3382_v13  ;;  %v3384_v55 = vpop.permute.xlu0 %3383 }
0x126a   :  { %v3406_v51 = vmul.f32 %v7069_v60, %v3384_v55 }
0x126b   :  { %3421 = vrot.lane.b32.xlu0 %v3405_v5, %s5886_s4  ;;  %v3366_v5 = vmul.f32 %v7069_v60, %v3350_v63 }
0x126c   :  { %v3386_v42 = vpop.permute.xlu1 %3385  ;;  %3423 = vrot.lane.b32.xlu1 %v3406_v51, %s5886_s4  ;;  %v3369_v51 = vmul.f32 %v7079_v24, %v3353_v8 }
0x126d   :  { %v3407_v22 = vmul.f32 %v7071_v50, %v3386_v42  ;;  %v3388_v31 = vpop.permute.xlu0 %3387  ;;  %v3355_v42 = vrot.slane %v6971_v43, 7  ;;  %v3356_v43 = vrot.slane %v6984_v14, 7 }
0x126e   :  { %v3408_v61 = vmul.f32 %v7076_v29, %v3388_v31 }
0x126f   :  { %3425 = vrot.lane.b32.xlu0 %v3407_v22, %s5886_s4  ;;  %v3372_v59 = vmul.f32 %v7092_v49, %v3356_v43 }
0x1270   :  { %v3390_v34 = vpop.permute.xlu1 %3389  ;;  %3427 = vrot.lane.b32.xlu1 %v3408_v61, %s5886_s4  ;;  %v3371_v61 = vmul.f32 %v7084_v12, %v3355_v42 }
0x1271   :  { %v3409_v21 = vmul.f32 %v7079_v24, %v3390_v34  ;;  %v3394_v38 = vpop.permute.xlu0 %3393 }
0x1272   :  { %v3411_v25 = vmul.f32 %v7084_v12, %v3394_v38 }
0x1273   :  { %3429 = vrot.lane.b32.xlu0 %v3409_v21, %s5886_s4  ;;  %v3370_v21 = vmul.f32 %v7087_v47, %v3354_v45 }
0x1274   :  { %v3392_v53 = vpop.permute.xlu1 %3391  ;;  %3433 = vrot.lane.b32.xlu1 %v3411_v25, %s5886_s4 }
0x1275   :  { %v3410_v32 = vmul.f32 %v7087_v47, %v3392_v53  ;;  %v3396_v37 = vpop.permute.xlu0 %3395 }
0x1276   :  { %v3412_v28 = vmul.f32 %v7092_v49, %v3396_v37  ;;  %v3156_v37 = vmul.f32 %v7095_v39, %v6981_v58 }
0x1277   :  { %3431 = vrot.lane.b32.xlu0 %v3410_v32, %s5886_s4 }
0x1278   :  { %v3159_v46 = vpop.permute.xlu1 %3158  ;;  %3435 = vrot.lane.b32.xlu1 %v3412_v28, %s5886_s4 }
0x1279   :  { %v3161_v48 = vmul.f32 %v7095_v39, %v3159_v46 }
0x127b   :  { %3163 = vrot.lane.b32.xlu0 %v3161_v48, %s5886_s4 }
0x12dd   :  { %v3422_v26 = vpop.permute.xlu0 %3421 }
0x12de   :  { %v7103_v13 = vadd.f32 %v3422_v26, %v3365_v54  ;;  %v3424_v56 = vpop.permute.xlu1 %3423 }
0x12df   :  { %v7111_v20 = vadd.f32 %v3424_v56, %v3366_v5 }
0x12e0   :  { %5709 = vtanh.f32 %v7103_v13 }
0x12e1   :  { %v3426_v35 = vpop.permute.xlu0 %3425  ;;  %5711 = vtanh.f32 %v7111_v20 }
0x12e2   :  { %v7114_v62 = vadd.f32 %v3426_v35, %v3367_v18  ;;  %v3428_v23 = vpop.permute.xlu1 %3427 }
0x12e3   :  { %v7121_v40 = vadd.f32 %v3428_v23, %v3368_v7 }
0x12e4   :  { %5713 = vtanh.f32 %v7114_v62 }
0x12e5   :  { %v3430_v22 = vpop.permute.xlu0 %3429  ;;  %5715 = vtanh.f32 %v7121_v40 }
0x12e6   :  { %v7125_v31 = vadd.f32 %v3430_v22, %v3369_v51  ;;  %v3434_v34 = vpop.permute.xlu1 %3433 }
0x12e7   :  { %v7132_v38 = vadd.f32 %v3434_v34, %v3371_v61 }
0x12e8   :  { %5717 = vtanh.f32 %v7125_v31 }
0x12e9   :  { %v3432_v25 = vpop.permute.xlu0 %3431  ;;  %5719 = vtanh.f32 %v7132_v38 }
0x12ea   :  { %v5710_v55 = vpop.eup %5709  ;;  %v7134_v53 = vadd.f32 %v3432_v25, %v3370_v21  ;;  %v3436_v32 = vpop.permute.xlu1 %3435 }
0x12eb   :  { %3469 = vrot.lane.b32.xlu1 %v5710_v55, %s5885_s30  ;;  %v5712_v28 = vpop.eup %5711  ;;  %v7141_v46 = vadd.f32 %v3436_v32, %v3372_v59 }
0x12ec   :  { %5721 = vtanh.f32 %v7134_v53  ;;  %3471 = vrot.lane.b32.xlu0 %v5712_v28, %s5885_s30 }
0x12ed   :  { %v3164_v48 = vpop.permute.xlu0 %3163  ;;  %5723 = vtanh.f32 %v7141_v46 }
0x12ee   :  { %v5714_v14 = vpop.eup %5713  ;;  %v7144_v2 = vadd.f32 %v3164_v48, %v3156_v37 }
0x12ef   :  { %3473 = vrot.lane.b32.xlu1 %v5714_v14, %s5885_s30  ;;  %v5716_v54 = vpop.eup %5715 }
0x12f0   :  { %5725 = vtanh.f32 %v7144_v2  ;;  %3475 = vrot.lane.b32.xlu0 %v5716_v54, %s5885_s30 }
0x12f2   :  { %v5718_v26 = vpop.eup %5717 }
0x12f3   :  { %3477 = vrot.lane.b32.xlu1 %v5718_v26, %s5885_s30  ;;  %v5720_v58 = vpop.eup %5719 }
0x12f4   :  { %3481 = vrot.lane.b32.xlu0 %v5720_v58, %s5885_s30 }
0x12f6   :  { %v5722_v63 = vpop.eup %5721 }
0x12f7   :  { %3479 = vrot.lane.b32.xlu1 %v5722_v63, %s5885_s30  ;;  %v5724_v41 = vpop.eup %5723 }
0x12f8   :  { %3483 = vrot.lane.b32.xlu0 %v5724_v41, %s5885_s30 }
0x12fa   :  { %v5726_v5 = vpop.eup %5725 }
0x12fb   :  { %3169 = vrot.lane.b32.xlu1 %v5726_v5, %s5885_s30 }
0x135d   :  { %v3470_v56 = vpop.permute.xlu1 %3469 }
0x135e   :  { %v3493_v18 = vmul.f32 %v7065_v44, %v3470_v56  ;;  %v3472_v19 = vpop.permute.xlu0 %3471 }
0x135f   :  { %v3494_v35 = vmul.f32 %v7069_v60, %v3472_v19 }
0x1360   :  { %v3637_v8 = vrot.slane %v3493_v18, 5 }
0x1361   :  { %v3474_v7 = vpop.permute.xlu1 %3473  ;;  %v3509_v23 = vrot.slane %v3494_v35, 7  ;;  %v3638_v51 = vrot.slane %v3494_v35, 4 }
0x1362   :  { %v3495_v55 = vmul.f32 %v7071_v50, %v3474_v7  ;;  %v3476_v42 = vpop.permute.xlu0 %3475 }
0x1363   :  { %v3510_v61 = vsel %vm1223_vm14, %v3509_v23, %v3493_v18  ;;  %v3639_v34 = vsel %vm1208_vm9, %v3638_v51, %v3637_v8  ;;  %v3496_v21 = vmul.f32 %v7076_v29, %v3476_v42 }
0x1364   :  { %v3511_v22 = vrot.slane %v3495_v55, 6  ;;  %v3640_v45 = vrot.slane %v3495_v55, 3 }
0x1365   :  { %v3478_v43 = vpop.permute.xlu1 %3477  ;;  %v3642_v59 = vrot.slane %v3496_v21, 2  ;;  %v3513_v26 = vrot.slane %v3496_v21, 5 }
0x1366   :  { %v3641_v44 = vsel %vm1211_vm10, %v3640_v45, %v3639_v34  ;;  %v3497_v60 = vmul.f32 %v7079_v24, %v3478_v43  ;;  %v3512_v25 = vsel %vm1226_vm15, %v3511_v22, %v3510_v61  ;;  %v3482_v50 = vpop.permute.xlu0 %3481 }
0x1367   :  { %3522 = vrot.lane.b32.xlu1 %v3512_v25, %s5891_s9  ;;  %v3499_v37 = vmul.f32 %v7084_v12, %v3482_v50  ;;  %v3643_v28 = vsel %vm1214_vm11, %v3642_v59, %v3641_v44 }
0x1368   :  { %v3644_v32 = vrot.slane %v3497_v60, 1  ;;  %v3514_v14 = vrot.slane %v3497_v60, 4 }
0x1369   :  { %v3480_v48 = vpop.permute.xlu1 %3479  ;;  %v3647_v58 = vrot.slane %v3499_v37, 7 }
0x136a   :  { %v3645_v29 = vsel %vm1217_vm12, %v3644_v32, %v3643_v28  ;;  %v3498_v54 = vmul.f32 %v7087_v47, %v3480_v48  ;;  %v3484_v24 = vpop.permute.xlu0 %3483  ;;  %v3515_v18 = vsel %vm1208_vm9, %v3514_v14, %v3513_v26  ;;  %v3518_v47 = vrot.slane %v3499_v37, 2 }
0x136b   :  { %v3500_v5 = vmul.f32 %v7092_v49, %v3484_v24 }
0x136c   :  { %v3516_v63 = vrot.slane %v3498_v54, 3  ;;  %v3646_v41 = vsel %vm1220_vm13, %v3498_v54, %v3645_v29 }
0x136d   :  { %v3170_v56 = vpop.permute.xlu1 %3169  ;;  %v3648_v19 = vsel %vm1223_vm14, %v3647_v58, %v3646_v41  ;;  %v3649_v35 = vrot.slane %v3500_v5, 6  ;;  %v3520_v23 = vrot.slane %v3500_v5, 1 }
0x136e   :  { %v7173_v12 = vmul.f32 %v7095_v39, %v3170_v56  ;;  %v3517_v8 = vsel %vm1211_vm10, %v3516_v63, %v3515_v18 }
0x136f   :  { %v3650_v55 = vsel %vm1226_vm15, %v3649_v35, %v3648_v19  ;;  %v3519_v49 = vsel %vm1214_vm11, %v3518_v47, %v3517_v8 }
0x1370   :  { %v3529_v7 = vrot.slane %v7173_v12, 3  ;;  %3651 = vrot.lane.b32.xlu0 %v3650_v55, %s5891_s9  ;;  %v3521_v39 = vsel %vm1217_vm12, %v3520_v23, %v3519_v49 }
0x1372   :  { %3530 = vrot.lane.b32.xlu1 %v3529_v7, %s5889_s8 }
0x1374   :  { %3524 = vrot.lane.b32.xlu0 %v3521_v39, %s5891_s9 }
0x13d9   :  { %v3523_v51 = vpop.permute.xlu1 %3522 }
0x13e2   :  { %v3652_v42 = vpop.permute.xlu0 %3651 }
0x13e3   :  { %5124 = vmatmul.mubr.msk.f32.vlgmr.msra.gmra.mrb[26].mxu0 %vm547_vm6, %v3652_v42 }
0x13e4   :  { %v3531_v22 = vpop.permute.xlu1 %3530  ;;  %5134 = vmatpush3.msra.mxu0 %v7028_v30  ;;  %5135 = vmatprep.mubr.msk.f32.mxu0 %vm5888_vm8, %v5887_v11 }
0x13e5   :  { %v3533_v45 = vsel %vm547_vm6, %v3523_v51, %v3531_v22  ;;  %5145 = vmatprep.subr.mxu0 %v5887_v11 }
0x13e6   :  { %v3538_v61 = vrot.slane %v3533_v45, 5  ;;  %v3525_v34 = vpop.permute.xlu0 %3524 }
0x13e7   :  { %v3534_v21 = vsel %vm547_vm6, %v3525_v34, %v3531_v22 }
0x13e8   :  { %v3539_v43 = vrot.slane %v3534_v21, 5 }
0x13ea   :  { %v3540_v44 = vsel %vm3537_vm0, %v3538_v61, %v3539_v43 }
0x13eb   :  { %5119 = vmatmul.mubr.msk.f32.vlgmr.msra.gmra.mrb[20].mxu1 %vm177_vm2, %v3540_v44 }
0x13ec   :  { %5209 = vmatpush3.bf16.msra.mxu1 %v6389_v10  ;;  %5130 = vmatprep.mubr.msk.f32.mxu1 %vm5888_vm8, %v5887_v11 }
0x13ed   :  { %5210 = vmatprep.subr.bf16.mxu1 %v5890_v4 }
0x14b6   :  { %v3721_v30 = vpop.f32.mrb[26].mxu0 }
0x14b7   :  { %v3726_v60 = vrot.slane %v3721_v30, 2  ;;  %v5125_v25 = vpop.f32.mrb[27].mxu0  ;;  %v3727_v50 = vrot.slane %v3721_v30, 3  ;;  %v3728_v32 = vrot.slane %v3721_v30, 4  ;;  %v3729_v48 = vrot.slane %v3721_v30, 5 }
0x14b8   :  { %v3730_v29 = vrot.slane %v3721_v30, 6  ;;  %v3731_v26 = vrot.slane %v3721_v30, 7  ;;  %v3732_v63 = vrot.slane %v3721_v30, 1  ;;  %v3747_v18 = vadd.f32 %v3721_v30, %v6302_v36 }
0x14b9   :  { %v3741_v59 = vadd.f32 %v3726_v60, %v6281_v6  ;;  %v3742_v14 = vadd.f32 %v3727_v50, %v6279_v3  ;;  %v3743_v54 = vadd.f32 %v3728_v32, %v6287_v17  ;;  %v3744_v58 = vadd.f32 %v3729_v48, %v6285_v15 }
0x14ba   :  { %v3745_v41 = vadd.f32 %v3730_v29, %v6294_v27  ;;  %v3746_v5 = vadd.f32 %v3731_v26, %v6292_v0  ;;  %v3748_v56 = vadd.f32 %v3732_v63, %v6300_v33  ;;  %v4886_v30 = vmul.f32 -1.442695, %v3747_v18 }
0x14bb   :  { %5727 = vtanh.f32 %v3741_v59  ;;  %v4880_v51 = vmul.f32 -1.442695, %v3741_v59  ;;  %v4881_v42 = vmul.f32 -1.442695, %v3742_v14  ;;  %v4882_v22 = vmul.f32 -1.442695, %v3743_v54 }
0x14bc   :  { %5729 = vtanh.f32 %v3742_v14  ;;  %v4883_v45 = vmul.f32 -1.442695, %v3744_v58  ;;  %v4884_v34 = vmul.f32 -1.442695, %v3745_v41  ;;  %v4885_v21 = vmul.f32 -1.442695, %v3746_v5 }
0x14bd   :  { %5731 = vtanh.f32 %v3743_v54  ;;  %v4887_v44 = vmul.f32 -1.442695, %v3748_v56 }
0x14be   :  { %v3609_v37 = vpop.f32.mrb[20].mxu1  ;;  %5733 = vtanh.f32 %v3744_v58 }
0x14bf   :  { %v5120_v28 = vpop.f32.mrb[21].mxu1  ;;  %5735 = vtanh.f32 %v3745_v41  ;;  %v3610_v19 = vadd.f32 %v7054_v16, %v3609_v37 }
0x14c0   :  { %5737 = vtanh.f32 %v3746_v5 }
0x14c1   :  { %5739 = vtanh.f32 %v3748_v56  ;;  %v4878_v60 = vmul.f32 -1.442695, %v3610_v19 }
0x14c2   :  { %5741 = vtanh.f32 %v3747_v18 }
0x14c3   :  { %5743 = vtanh.f32 %v3610_v19 }
0x14c4   :  { %5745 = vpow2.f32 %v4880_v51 }
0x14c5   :  { %v5728_v24 = vpop.eup %5727  ;;  %5747 = vpow2.f32 %v4881_v42 }
0x14c6   :  { %3845 = vrot.lane.b32.xlu0 %v5728_v24, %s5889_s8  ;;  %v5730_v35 = vpop.eup %5729  ;;  %5749 = vpow2.f32 %v4882_v22 }
0x14c7   :  { %v5732_v8 = vpop.eup %5731  ;;  %3847 = vrot.lane.b32.xlu1 %v5730_v35, %s5889_s8  ;;  %5751 = vpow2.f32 %v4883_v45 }
0x14c8   :  { %v5734_v47 = vpop.eup %5733  ;;  %5753 = vpow2.f32 %v4884_v34 }
0x14c9   :  { %v5736_v7 = vpop.eup %5735  ;;  %5755 = vpow2.f32 %v4885_v21 }
0x14ca   :  { %3849 = vrot.lane.b32.xlu0 %v5732_v8, %s5889_s8  ;;  %v5738_v55 = vpop.eup %5737 }
0x14cb   :  { %3851 = vrot.lane.b32.xlu1 %v5734_v47, %s5889_s8  ;;  %v5740_v49 = vpop.eup %5739 }
0x14cc   :  { %v5742_v23 = vpop.eup %5741 }
0x14cd   :  { %v5744_v39 = vpop.eup %5743 }
0x14ce   :  { %3853 = vrot.lane.b32.xlu0 %v5736_v7, %s5889_s8  ;;  %v5746_v61 = vpop.eup %5745 }
0x14cf   :  { %3855 = vrot.lane.b32.xlu1 %v5738_v55, %s5889_s8  ;;  %v3773_v43 = vadd.f32 1.0, %v5746_v61  ;;  %v5748_v25 = vpop.eup %5747 }
0x14d0   :  { %v5750_v59 = vpop.eup %5749  ;;  %v3774_v50 = vadd.f32 1.0, %v5748_v25 }
0x14d1   :  { %5757 = vrcp.f32 %v3773_v43  ;;  %v5752_v32 = vpop.eup %5751  ;;  %v3775_v37 = vadd.f32 1.0, %v5750_v59 }
0x14d2   :  { %3859 = vrot.lane.b32.xlu0 %v5740_v49, %s5889_s8  ;;  %5759 = vpow2.f32 %v4887_v44  ;;  %v5754_v28 = vpop.eup %5753  ;;  %v3776_v14 = vadd.f32 1.0, %v5752_v32 }
0x14d3   :  { %3857 = vrot.lane.b32.xlu1 %v5742_v23, %s5889_s8  ;;  %5761 = vpow2.f32 %v4886_v30  ;;  %v5756_v48 = vpop.eup %5755  ;;  %v3777_v26 = vadd.f32 1.0, %v5754_v28  ;;  %v3813_v28 = vrot.slane %v7103_v13, 7 }
0x14d4   :  { %5763 = vpow2.f32 %v4878_v60  ;;  %v3778_v63 = vadd.f32 1.0, %v5756_v48 }
0x14d5   :  { %5765 = vrcp.f32 %v3774_v50 }
0x14d6   :  { %3622 = vrot.lane.b32.xlu0 %v5744_v39, %s5889_s8  ;;  %5767 = vrcp.f32 %v3775_v37 }
0x14d7   :  { %5769 = vrcp.f32 %v3776_v14 }
0x14d8   :  { %5771 = vrcp.f32 %v3777_v26  ;;  %v3814_v26 = vrot.slane %v7111_v20, 7 }
0x14d9   :  { %5773 = vrcp.f32 %v3778_v63 }
0x14db   :  { %v7214_v29 = vpop.eup %5757 }
0x14dc   :  { %v5760_v58 = vpop.eup %5759  ;;  %v3829_v48 = vmul.f32 %v7214_v29, %v3813_v28 }
0x14dd   :  { %v5762_v41 = vpop.eup %5761  ;;  %v3780_v5 = vadd.f32 1.0, %v5760_v58  ;;  %v3815_v58 = vrot.slane %v7114_v62, 7 }
0x14de   :  { %v5764_v56 = vpop.eup %5763  ;;  %v3779_v18 = vadd.f32 1.0, %v5762_v41 }
0x14df   :  { %v3616_v19 = vadd.f32 1.0, %v5764_v56  ;;  %5775 = vrcp.f32 %v3780_v5  ;;  %v7218_v35 = vpop.eup %5765  ;;  %v3816_v5 = vrot.slane %v7121_v40, 7 }
0x14e0   :  { %v7220_v47 = vpop.eup %5767  ;;  %5777 = vrcp.f32 %v3779_v18  ;;  %v3817_v18 = vrot.slane %v7125_v31, 7  ;;  %v3820_v31 = vrot.slane %v7141_v46, 7 }
0x14e1   :  { %5779 = vrcp.f32 %v3616_v19  ;;  %v7225_v23 = vpop.eup %5769  ;;  %v3831_v41 = vmul.f32 %v7220_v47, %v3815_v58 }
0x14e2   :  { %v7228_v51 = vpop.eup %5771  ;;  %v3832_v20 = vmul.f32 %v7225_v23, %v3816_v5 }
0x14e3   :  { %v7233_v61 = vpop.eup %5773 }
0x14e9   :  { %v7236_v21 = vpop.eup %5775 }
0x14ea   :  { %v7241_v60 = vpop.eup %5777 }
0x14eb   :  { %v7244_v59 = vpop.eup %5779 }
0x1538   :  { %v3846_v54 = vpop.permute.xlu0 %3845 }
0x1539   :  { %v3869_v24 = vmul.f32 %v7214_v29, %v3846_v54  ;;  %v3848_v8 = vpop.permute.xlu1 %3847 }
0x153a   :  { %v3870_v7 = vmul.f32 %v7218_v35, %v3848_v8 }
0x153b   :  { %3885 = vrot.lane.b32.xlu1 %v3869_v24, %s5886_s4  ;;  %v3830_v24 = vmul.f32 %v7218_v35, %v3814_v26 }
0x153c   :  { %v3850_v55 = vpop.permute.xlu0 %3849  ;;  %3887 = vrot.lane.b32.xlu0 %v3870_v7, %s5886_s4  ;;  %v3833_v7 = vmul.f32 %v7228_v51, %v3817_v18 }
0x153d   :  { %v3871_v49 = vmul.f32 %v7220_v47, %v3850_v55  ;;  %v3852_v39 = vpop.permute.xlu1 %3851  ;;  %v3818_v55 = vrot.slane %v7134_v53, 7  ;;  %v3819_v53 = vrot.slane %v7132_v38, 7 }
0x153e   :  { %v3872_v42 = vmul.f32 %v7225_v23, %v3852_v39 }
0x153f   :  { %3889 = vrot.lane.b32.xlu1 %v3871_v49, %s5886_s4  ;;  %v3835_v46 = vmul.f32 %v7241_v60, %v3819_v53 }
0x1540   :  { %v3854_v22 = vpop.permute.xlu0 %3853  ;;  %3891 = vrot.lane.b32.xlu0 %v3872_v42, %s5886_s4  ;;  %v3834_v42 = vmul.f32 %v7233_v61, %v3818_v55 }
0x1541   :  { %v3873_v45 = vmul.f32 %v7228_v51, %v3854_v22  ;;  %v3856_v34 = vpop.permute.xlu1 %3855 }
0x1542   :  { %v3874_v43 = vmul.f32 %v7233_v61, %v3856_v34 }
0x1543   :  { %3893 = vrot.lane.b32.xlu1 %v3873_v45, %s5886_s4  ;;  %v3836_v45 = vmul.f32 %v7236_v21, %v3820_v31 }
0x1544   :  { %v3860_v44 = vpop.permute.xlu0 %3859  ;;  %3895 = vrot.lane.b32.xlu0 %v3874_v43, %s5886_s4 }
0x1545   :  { %v3876_v30 = vmul.f32 %v7236_v21, %v3860_v44  ;;  %v3858_v25 = vpop.permute.xlu1 %3857 }
0x1546   :  { %v3875_v50 = vmul.f32 %v7241_v60, %v3858_v25  ;;  %v3620_v25 = vmul.f32 %v7244_v59, %v7144_v2 }
0x1547   :  { %3899 = vrot.lane.b32.xlu1 %v3876_v30, %s5886_s4 }
0x1548   :  { %v3623_v32 = vpop.permute.xlu0 %3622  ;;  %3897 = vrot.lane.b32.xlu0 %v3875_v50, %s5886_s4 }
0x1549   :  { %v3625_v37 = vmul.f32 %v7244_v59, %v3623_v32 }
0x154b   :  { %3627 = vrot.lane.b32.xlu1 %v3625_v37, %s5886_s4 }
0x15ad   :  { %v3886_v14 = vpop.permute.xlu1 %3885 }
0x15ae   :  { %v7252_v54 = vadd.f32 %v3886_v14, %v3829_v48  ;;  %v3888_v63 = vpop.permute.xlu0 %3887 }
0x15af   :  { %v7260_v56 = vadd.f32 %v3888_v63, %v3830_v24 }
0x15b0   :  { %5781 = vtanh.f32 %v7252_v54 }
0x15b1   :  { %v3890_v13 = vpop.permute.xlu1 %3889  ;;  %5783 = vtanh.f32 %v7260_v56 }
0x15b2   :  { %v7263_v19 = vadd.f32 %v3890_v13, %v3831_v41  ;;  %v3892_v62 = vpop.permute.xlu0 %3891 }
0x15b3   :  { %v7270_v40 = vadd.f32 %v3892_v62, %v3832_v20 }
0x15b4   :  { %5785 = vtanh.f32 %v7263_v19 }
0x15b5   :  { %v3894_v49 = vpop.permute.xlu1 %3893  ;;  %5787 = vtanh.f32 %v7270_v40 }
0x15b6   :  { %v7274_v39 = vadd.f32 %v3894_v49, %v3833_v7  ;;  %v3896_v22 = vpop.permute.xlu0 %3895 }
0x15b7   :  { %v7281_v34 = vadd.f32 %v3896_v22, %v3834_v42 }
0x15b8   :  { %5789 = vtanh.f32 %v7274_v39 }
0x15b9   :  { %v3900_v43 = vpop.permute.xlu1 %3899  ;;  %5791 = vtanh.f32 %v7281_v34 }
0x15ba   :  { %v5782_v8 = vpop.eup %5781  ;;  %v7283_v44 = vadd.f32 %v3900_v43, %v3836_v45  ;;  %v3898_v30 = vpop.permute.xlu0 %3897 }
0x15bb   :  { %3933 = vrot.lane.b32.xlu0 %v5782_v8, %s5885_s30  ;;  %v5784_v50 = vpop.eup %5783  ;;  %v7290_v32 = vadd.f32 %v3898_v30, %v3835_v46 }
0x15bc   :  { %5793 = vtanh.f32 %v7283_v44  ;;  %3935 = vrot.lane.b32.xlu1 %v5784_v50, %s5885_s30 }
0x15bd   :  { %v3628_v37 = vpop.permute.xlu1 %3627  ;;  %5795 = vtanh.f32 %v7290_v32 }
0x15be   :  { %v5786_v38 = vpop.eup %5785  ;;  %v7293_v28 = vadd.f32 %v3628_v37, %v3620_v25 }
0x15bf   :  { %3937 = vrot.lane.b32.xlu0 %v5786_v38, %s5885_s30  ;;  %v5788_v48 = vpop.eup %5787 }
0x15c0   :  { %5797 = vtanh.f32 %v7293_v28  ;;  %3939 = vrot.lane.b32.xlu1 %v5788_v48, %s5885_s30 }
0x15c2   :  { %v5790_v14 = vpop.eup %5789 }
0x15c3   :  { %3941 = vrot.lane.b32.xlu0 %v5790_v14, %s5885_s30  ;;  %v5792_v2 = vpop.eup %5791 }
0x15c4   :  { %3943 = vrot.lane.b32.xlu1 %v5792_v2, %s5885_s30 }
0x15c6   :  { %v5794_v26 = vpop.eup %5793 }
0x15c7   :  { %3947 = vrot.lane.b32.xlu0 %v5794_v26, %s5885_s30  ;;  %v5796_v58 = vpop.eup %5795 }
0x15c8   :  { %3945 = vrot.lane.b32.xlu1 %v5796_v58, %s5885_s30 }
0x15ca   :  { %v5798_v24 = vpop.eup %5797 }
0x15cb   :  { %3633 = vrot.lane.b32.xlu0 %v5798_v24, %s5885_s30 }
0x162d   :  { %v3934_v63 = vpop.permute.xlu0 %3933 }
0x162e   :  { %v3957_v41 = vmul.f32 %v7214_v29, %v3934_v63  ;;  %v3936_v5 = vpop.permute.xlu1 %3935 }
0x162f   :  { %v3958_v13 = vmul.f32 %v7218_v35, %v3936_v5 }
0x1630   :  { %v4101_v18 = vrot.slane %v3957_v41, 6 }
0x1631   :  { %v3938_v20 = vpop.permute.xlu0 %3937  ;;  %v3973_v62 = vrot.slane %v3958_v13, 7  ;;  %v4102_v7 = vrot.slane %v3958_v13, 5 }
0x1632   :  { %v3959_v8 = vmul.f32 %v7220_v47, %v3938_v20  ;;  %v3940_v55 = vpop.permute.xlu1 %3939 }
0x1633   :  { %v4103_v31 = vsel %vm1208_vm9, %v4102_v7, %v4101_v18  ;;  %v3960_v42 = vmul.f32 %v7225_v23, %v3940_v55  ;;  %v3974_v22 = vsel %vm1226_vm15, %v3973_v62, %v3957_v41 }
0x1634   :  { %v4104_v49 = vrot.slane %v3959_v8, 4  ;;  %3986 = vrot.lane.b32.xlu0 %v3974_v22, %s5891_s9  ;;  %v3975_v47 = vrot.slane %v3959_v8, 6 }
0x1635   :  { %v3942_v45 = vpop.permute.xlu0 %3941  ;;  %v4106_v53 = vrot.slane %v3960_v42, 3  ;;  %v3976_v43 = vrot.slane %v3960_v42, 5 }
0x1636   :  { %v4105_v29 = vsel %vm1211_vm10, %v4104_v49, %v4103_v31  ;;  %v3961_v35 = vmul.f32 %v7228_v51, %v3942_v45  ;;  %v3944_v46 = vpop.permute.xlu1 %3943 }
0x1637   :  { %v3962_v25 = vmul.f32 %v7233_v61, %v3944_v46  ;;  %v4107_v50 = vsel %vm1214_vm11, %v4106_v53, %v4105_v29  ;;  %v3977_v2 = vsel %vm1208_vm9, %v3976_v43, %v3975_v47 }
0x1638   :  { %v4108_v30 = vrot.slane %v3961_v35, 2  ;;  %v3978_v37 = vrot.slane %v3961_v35, 4 }
0x1639   :  { %v3948_v23 = vpop.permute.xlu0 %3947  ;;  %v4110_v14 = vrot.slane %v3962_v25, 1  ;;  %v3980_v26 = vrot.slane %v3962_v25, 3 }
0x163a   :  { %v4109_v38 = vsel %vm1217_vm12, %v4108_v30, %v4107_v50  ;;  %v3964_v48 = vmul.f32 %v7236_v21, %v3948_v23  ;;  %v3946_v51 = vpop.permute.xlu1 %3945  ;;  %v3979_v24 = vsel %vm1211_vm10, %v3978_v37, %v3977_v2 }
0x163b   :  { %v3963_v63 = vmul.f32 %v7241_v60, %v3946_v51  ;;  %v4111_v61 = vsel %vm1220_vm13, %v4110_v14, %v4109_v38  ;;  %v3981_v62 = vsel %vm1214_vm11, %v3980_v26, %v3979_v24 }
0x163c   :  { %v4113_v58 = vrot.slane %v3964_v48, 7  ;;  %v3984_v21 = vrot.slane %v3964_v48, 1 }
0x163d   :  { %v3634_v41 = vpop.permute.xlu0 %3633  ;;  %v3982_v13 = vrot.slane %v3963_v63, 2  ;;  %v4112_v18 = vsel %vm1223_vm14, %v3963_v63, %v4111_v61 }
0x163e   :  { %v7322_v5 = vmul.f32 %v7244_v59, %v3634_v41  ;;  %v4114_v8 = vsel %vm1226_vm15, %v4113_v58, %v4112_v18  ;;  %vm4001_vm15 = vcmask 1041408  }
0x163f   :  { %4115 = vrot.lane.b32.xlu1 %v4114_v8, %s5891_s9  ;;  %v3983_v60 = vsel %vm1217_vm12, %v3982_v13, %v3981_v62 }
0x1640   :  { %v3993_v20 = vrot.slane %v7322_v5, 2  ;;  %v3985_v7 = vsel %vm1220_vm13, %v3984_v21, %v3983_v60 }
0x1642   :  { %3994 = vrot.lane.b32.xlu0 %v3993_v20, %s5889_s8 }
0x1643   :  { %3988 = vrot.lane.b32.xlu1 %v3985_v7, %s5891_s9 }
0x16a6   :  { %v3987_v59 = vpop.permute.xlu0 %3986 }
0x16b1   :  { %v4116_v55 = vpop.permute.xlu1 %4115 }
0x16b2   :  { %5136 = vmatmul.mubr.msk.f32.vlgmr.msra.gmra.mrb[28].mxu0 %vm547_vm6, %v4116_v55 }
0x16b3   :  { %5147 = vmatprep.mubr.msk.f32.mxu0 %vm5888_vm8, %v5887_v11 }
0x16b4   :  { %v3995_v49 = vpop.permute.xlu0 %3994 }
0x16b5   :  { %v3997_v31 = vsel %vm547_vm6, %v3987_v59, %v3995_v49  ;;  %v3989_v22 = vpop.permute.xlu1 %3988 }
0x16b6   :  { %v4002_v42 = vrot.slane %v3997_v31, 6  ;;  %v3998_v45 = vsel %vm547_vm6, %v3989_v22, %v3995_v49 }
0x16b7   :  { %v4003_v29 = vrot.slane %v3998_v45, 6 }
0x16b9   :  { %v4004_v35 = vsel %vm4001_vm15, %v4002_v42, %v4003_v29 }
0x16ba   :  { %5131 = vmatmul.mubr.msk.f32.vlgmr.msra.gmra.mrb[22].mxu1 %vm177_vm2, %v4004_v35 }
0x16bb   :  { %5212 = vmatpush3.bf16.msra.mxu1 %v6389_v10  ;;  %5142 = vmatprep.mubr.msk.f32.mxu1 %vm5888_vm8, %v5887_v11 }
0x16bc   :  { %5213 = vmatprep.subr.bf16.mxu1 %v5890_v4 }
0x1785   :  { %v4185_v53 = vpop.f32.mrb[28].mxu0 }
0x1786   :  { %v5137_v43 = vpop.f32.mrb[29].mxu0  ;;  %v4191_v47 = vrot.slane %v4185_v53, 2  ;;  %v4192_v46 = vrot.slane %v4185_v53, 3  ;;  %v4193_v50 = vrot.slane %v4185_v53, 4  ;;  %v4194_v23 = vrot.slane %v4185_v53, 5 }
0x1787   :  { %v4195_v48 = vrot.slane %v4185_v53, 6  ;;  %v4196_v14 = vrot.slane %v4185_v53, 7  ;;  %v4190_v58 = vrot.slane %v4185_v53, 1 }
0x1788   :  { %v4206_v37 = vadd.f32 %v4191_v47, %v6279_v3  ;;  %v4207_v38 = vadd.f32 %v4192_v46, %v6287_v17  ;;  %v4208_v10 = vadd.f32 %v4193_v50, %v6285_v15  ;;  %v4209_v2 = vadd.f32 %v4194_v23, %v6294_v27 }
0x1789   :  { %v4210_v26 = vadd.f32 %v4195_v48, %v6292_v0  ;;  %v4211_v51 = vadd.f32 %v4196_v14, %v6302_v36  ;;  %v4212_v3 = vadd.f32 %v4185_v53, %v6300_v33  ;;  %v4205_v27 = vadd.f32 %v4190_v58, %v6281_v6 }
0x178a   :  { %5799 = vtanh.f32 %v4206_v37  ;;  %v4892_v41 = vmul.f32 -1.442695, %v4206_v37  ;;  %v4893_v13 = vmul.f32 -1.442695, %v4207_v38  ;;  %v4894_v18 = vmul.f32 -1.442695, %v4208_v10 }
0x178b   :  { %5801 = vtanh.f32 %v4207_v38  ;;  %v4895_v21 = vmul.f32 -1.442695, %v4209_v2  ;;  %v4896_v20 = vmul.f32 -1.442695, %v4210_v26  ;;  %v4897_v8 = vmul.f32 -1.442695, %v4211_v51 }
0x178c   :  { %5803 = vtanh.f32 %v4208_v10  ;;  %v4898_v62 = vmul.f32 -1.442695, %v4212_v3  ;;  %v4891_v55 = vmul.f32 -1.442695, %v4205_v27 }
0x178d   :  { %v4073_v30 = vpop.f32.mrb[22].mxu1  ;;  %5805 = vtanh.f32 %v4209_v2 }
0x178e   :  { %v5132_v25 = vpop.f32.mrb[23].mxu1  ;;  %5807 = vtanh.f32 %v4210_v26  ;;  %v4074_v17 = vadd.f32 %v7054_v16, %v4073_v30 }
0x178f   :  { %5809 = vtanh.f32 %v4211_v51 }
0x1790   :  { %5811 = vtanh.f32 %v4212_v3  ;;  %v4889_v60 = vmul.f32 -1.442695, %v4074_v17 }
0x1791   :  { %5813 = vtanh.f32 %v4074_v17 }
0x1792   :  { %5815 = vtanh.f32 %v4205_v27 }
0x1793   :  { %5817 = vpow2.f32 %v4892_v41 }
0x1794   :  { %v5800_v24 = vpop.eup %5799  ;;  %5819 = vpow2.f32 %v4893_v13 }
0x1795   :  { %v5802_v15 = vpop.eup %5801  ;;  %4311 = vrot.lane.b32.xlu1 %v5800_v24, %s5889_s8  ;;  %5821 = vpow2.f32 %v4894_v18 }
0x1796   :  { %4313 = vrot.lane.b32.xlu0 %v5802_v15, %s5889_s8  ;;  %v5804_v0 = vpop.eup %5803  ;;  %5823 = vpow2.f32 %v4895_v21 }
0x1797   :  { %v5806_v36 = vpop.eup %5805  ;;  %5825 = vpow2.f32 %v4896_v20 }
0x1798   :  { %v5808_v33 = vpop.eup %5807  ;;  %5827 = vpow2.f32 %v4897_v8 }
0x1799   :  { %4315 = vrot.lane.b32.xlu1 %v5804_v0, %s5889_s8  ;;  %v5810_v63 = vpop.eup %5809  ;;  %5829 = vpow2.f32 %v4898_v62 }
0x179a   :  { %4317 = vrot.lane.b32.xlu0 %v5806_v36, %s5889_s8  ;;  %v5812_v16 = vpop.eup %5811  ;;  %5831 = vpow2.f32 %v4889_v60  ;;  %v4278_v60 = vrot.slane %v7260_v56, 7 }
0x179b   :  { %v5814_v61 = vpop.eup %5813  ;;  %5833 = vpow2.f32 %v4891_v55 }
0x179c   :  { %v5816_v6 = vpop.eup %5815 }
0x179d   :  { %4319 = vrot.lane.b32.xlu1 %v5808_v33, %s5889_s8  ;;  %v5818_v7 = vpop.eup %5817 }
0x179e   :  { %4321 = vrot.lane.b32.xlu0 %v5810_v63, %s5889_s8  ;;  %v5820_v59 = vpop.eup %5819  ;;  %v4238_v49 = vadd.f32 1.0, %v5818_v7  ;;  %v4279_v7 = vrot.slane %v7263_v19, 7  ;;  %v4282_v19 = vrot.slane %v7281_v34, 7 }
0x179f   :  { %v5822_v31 = vpop.eup %5821  ;;  %v4239_v42 = vadd.f32 1.0, %v5820_v59 }
0x17a0   :  { %v5824_v22 = vpop.eup %5823  ;;  %5835 = vrcp.f32 %v4238_v49  ;;  %v4240_v45 = vadd.f32 1.0, %v5822_v31  ;;  %v4280_v31 = vrot.slane %v7270_v40, 7 }
0x17a1   :  { %4323 = vrot.lane.b32.xlu1 %v5812_v16, %s5889_s8  ;;  %v5826_v29 = vpop.eup %5825  ;;  %5837 = vrcp.f32 %v4239_v42  ;;  %v4241_v35 = vadd.f32 1.0, %v5824_v22 }
0x17a2   :  { %4086 = vrot.lane.b32.xlu0 %v5814_v61, %s5889_s8  ;;  %v5828_v53 = vpop.eup %5827  ;;  %5839 = vrcp.f32 %v4240_v45  ;;  %v4242_v43 = vadd.f32 1.0, %v5826_v29  ;;  %v4281_v45 = vrot.slane %v7274_v39, 7 }
0x17a3   :  { %v5830_v47 = vpop.eup %5829  ;;  %5841 = vrcp.f32 %v4241_v35  ;;  %v4243_v46 = vadd.f32 1.0, %v5828_v53 }
0x17a4   :  { %v5832_v30 = vpop.eup %5831  ;;  %v4244_v25 = vadd.f32 1.0, %v5830_v47  ;;  %5843 = vrcp.f32 %v4242_v43 }
0x17a5   :  { %4309 = vrot.lane.b32.xlu1 %v5816_v6, %s5889_s8  ;;  %v5834_v50 = vpop.eup %5833  ;;  %v4080_v37 = vadd.f32 1.0, %v5832_v30  ;;  %5845 = vrcp.f32 %v4243_v46  ;;  %v4283_v46 = vrot.slane %v7290_v32, 7 }
0x17a6   :  { %5847 = vrcp.f32 %v4244_v25  ;;  %v4237_v26 = vadd.f32 1.0, %v5834_v50  ;;  %v4284_v50 = vrot.slane %v7283_v44, 7 }
0x17a7   :  { %5849 = vrcp.f32 %v4080_v37 }
0x17a8   :  { %5851 = vrcp.f32 %v4237_v26  ;;  %v4277_v26 = vrot.slane %v7252_v54, 7 }
0x17aa   :  { %v7361_v23 = vpop.eup %5835 }
0x17ab   :  { %v7363_v48 = vpop.eup %5837  ;;  %v4294_v59 = vmul.f32 %v7361_v23, %v4278_v60 }
0x17ac   :  { %v7368_v51 = vpop.eup %5839  ;;  %v4295_v49 = vmul.f32 %v7363_v48, %v4279_v7 }
0x17ad   :  { %v7371_v3 = vpop.eup %5841  ;;  %v4296_v35 = vmul.f32 %v7368_v51, %v4280_v31 }
0x17ae   :  { %v7376_v27 = vpop.eup %5843  ;;  %v4297_v56 = vmul.f32 %v7371_v3, %v4281_v45 }
0x17af   :  { %v7379_v36 = vpop.eup %5845  ;;  %v4298_v40 = vmul.f32 %v7376_v27, %v4282_v19 }
0x17b0   :  { %v7384_v61 = vpop.eup %5847  ;;  %v4299_v25 = vmul.f32 %v7379_v36, %v4283_v46 }
0x17b1   :  { %v7387_v41 = vpop.eup %5849  ;;  %v4300_v34 = vmul.f32 %v7384_v61, %v4284_v50 }
0x17b2   :  { %v7392_v20 = vpop.eup %5851  ;;  %v4084_v32 = vmul.f32 %v7387_v41, %v7293_v28 }
0x17b3   :  { %v4293_v44 = vmul.f32 %v7392_v20, %v4277_v26  ;;  %v5883_v26 = vld [vmem:[%s7527_s10] ss:$0 sm:$0xff]  ;;  %s5892_s10 = smov 120  }
0x1807   :  { %v4312_v38 = vpop.permute.xlu1 %4311 }
0x1808   :  { %v4314_v10 = vpop.permute.xlu0 %4313  ;;  %v4334_v14 = vmul.f32 %v7361_v23, %v4312_v38 }
0x1809   :  { %v4335_v2 = vmul.f32 %v7363_v48, %v4314_v10 }
0x180a   :  { %4351 = vrot.lane.b32.xlu0 %v4334_v14, %s5886_s4 }
0x180b   :  { %4353 = vrot.lane.b32.xlu1 %v4335_v2, %s5886_s4  ;;  %v4316_v58 = vpop.permute.xlu1 %4315 }
0x180c   :  { %v4318_v17 = vpop.permute.xlu0 %4317  ;;  %v4336_v24 = vmul.f32 %v7368_v51, %v4316_v58 }
0x180d   :  { %v4337_v15 = vmul.f32 %v7371_v3, %v4318_v17 }
0x180e   :  { %4355 = vrot.lane.b32.xlu0 %v4336_v24, %s5886_s4 }
0x180f   :  { %4357 = vrot.lane.b32.xlu1 %v4337_v15, %s5886_s4  ;;  %v4320_v0 = vpop.permute.xlu1 %4319 }
0x1810   :  { %v4322_v33 = vpop.permute.xlu0 %4321  ;;  %v4338_v63 = vmul.f32 %v7376_v27, %v4320_v0 }
0x1811   :  { %v4339_v16 = vmul.f32 %v7379_v36, %v4322_v33 }
0x1812   :  { %4359 = vrot.lane.b32.xlu0 %v4338_v63, %s5886_s4 }
0x1813   :  { %4361 = vrot.lane.b32.xlu1 %v4339_v16, %s5886_s4  ;;  %v4324_v6 = vpop.permute.xlu1 %4323 }
0x1814   :  { %v4087_v13 = vpop.permute.xlu0 %4086  ;;  %v4340_v18 = vmul.f32 %v7384_v61, %v4324_v6 }
0x1815   :  { %v4089_v21 = vmul.f32 %v7387_v41, %v4087_v13 }
0x1816   :  { %4363 = vrot.lane.b32.xlu0 %v4340_v18, %s5886_s4 }
0x1817   :  { %4091 = vrot.lane.b32.xlu1 %v4089_v21, %s5886_s4  ;;  %v4310_v8 = vpop.permute.xlu1 %4309 }
0x1818   :  { %v4333_v62 = vmul.f32 %v7392_v20, %v4310_v8 }
0x181a   :  { %4349 = vrot.lane.b32.xlu0 %v4333_v62, %s5886_s4 }
0x187c   :  { %v4352_v55 = vpop.permute.xlu0 %4351 }
0x187d   :  { %v4374_v42 = vadd.f32 %v4352_v55, %v4294_v59  ;;  %v4354_v22 = vpop.permute.xlu1 %4353 }
0x187e   :  { %v4375_v29 = vadd.f32 %v4354_v22, %v4295_v49 }
0x187f   :  { %5853 = vtanh.f32 %v4374_v42 }
0x1880   :  { %5855 = vtanh.f32 %v4375_v29  ;;  %v4356_v53 = vpop.permute.xlu0 %4355 }
0x1881   :  { %v4376_v43 = vadd.f32 %v4356_v53, %v4296_v35  ;;  %v4358_v47 = vpop.permute.xlu1 %4357 }
0x1882   :  { %v4377_v30 = vadd.f32 %v4358_v47, %v4297_v56 }
0x1883   :  { %5857 = vtanh.f32 %v4376_v43 }
0x1884   :  { %5859 = vtanh.f32 %v4377_v30  ;;  %v4360_v39 = vpop.permute.xlu0 %4359 }
0x1885   :  { %v4378_v37 = vadd.f32 %v4360_v39, %v4298_v40  ;;  %v4362_v38 = vpop.permute.xlu1 %4361 }
0x1886   :  { %v4379_v10 = vadd.f32 %v4362_v38, %v4299_v25 }
0x1887   :  { %5861 = vtanh.f32 %v4378_v37 }
0x1888   :  { %5863 = vtanh.f32 %v4379_v10  ;;  %v4364_v14 = vpop.permute.xlu0 %4363 }
0x1889   :  { %v5854_v2 = vpop.eup %5853  ;;  %v4380_v58 = vadd.f32 %v4364_v14, %v4300_v34  ;;  %v4092_v17 = vpop.permute.xlu1 %4091 }
0x188a   :  { %v5856_v24 = vpop.eup %5855  ;;  %v7414_v15 = vadd.f32 %v4092_v17, %v4084_v32  ;;  %4399 = vrot.lane.b32.xlu1 %v5854_v2, %s5885_s30 }
0x188b   :  { %5865 = vtanh.f32 %v4380_v58  ;;  %4401 = vrot.lane.b32.xlu0 %v5856_v24, %s5885_s30 }
0x188c   :  { %5867 = vtanh.f32 %v7414_v15  ;;  %v4350_v0 = vpop.permute.xlu0 %4349 }
0x188d   :  { %v5858_v33 = vpop.eup %5857  ;;  %v4373_v28 = vadd.f32 %v4350_v0, %v4293_v44 }
0x188e   :  { %v5860_v63 = vpop.eup %5859  ;;  %4403 = vrot.lane.b32.xlu1 %v5858_v33, %s5885_s30 }
0x188f   :  { %5869 = vtanh.f32 %v4373_v28  ;;  %4405 = vrot.lane.b32.xlu0 %v5860_v63, %s5885_s30 }
0x1891   :  { %v5862_v54 = vpop.eup %5861 }
0x1892   :  { %v5864_v16 = vpop.eup %5863  ;;  %4407 = vrot.lane.b32.xlu1 %v5862_v54, %s5885_s30 }
0x1893   :  { %4409 = vrot.lane.b32.xlu0 %v5864_v16, %s5885_s30 }
0x1895   :  { %v5866_v6 = vpop.eup %5865 }
0x1896   :  { %v5868_v13 = vpop.eup %5867  ;;  %4411 = vrot.lane.b32.xlu1 %v5866_v6, %s5885_s30 }
0x1897   :  { %4097 = vrot.lane.b32.xlu0 %v5868_v13, %s5885_s30 }
0x1899   :  { %v5870_v18 = vpop.eup %5869 }
0x189a   :  { %4397 = vrot.lane.b32.xlu1 %v5870_v18, %s5885_s30  ;;  %v4595_v18 = vld [vmem:[%s7528_s11] sm:$0xff] }
0x18fc   :  { %v4400_v21 = vpop.permute.xlu1 %4399 }
0x18fd   :  { %v4422_v8 = vmul.f32 %v7361_v23, %v4400_v21  ;;  %v4402_v62 = vpop.permute.xlu0 %4401  ;;  %v4604_v21 = vld [vmem:[%s7529_s12] sm:$0xf] }
0x18fe   :  { %v4423_v60 = vmul.f32 %v7363_v48, %v4402_v62  ;;  %5146 = vmatpush3.msk.msra.mxu0 %vm3073_vm1, %v4604_v21  ;;  %v4599_v62 = vld [vmem:[%s7528_s11 + $0x20] sm:$0xff] }
0x18ff   :  { %v4437_v7 = vrot.slane %v4422_v8, 7 }
0x1900   :  { %v4438_v59 = vrot.slane %v4423_v60, 6  ;;  %v4404_v55 = vpop.permute.xlu1 %4403  ;;  %v4600_v60 = vld [vmem:[%s7528_s11 + $0x28] sm:$0xff] }
0x1901   :  { %v4424_v49 = vmul.f32 %v7368_v51, %v4404_v55  ;;  %v4406_v31 = vpop.permute.xlu0 %4405 }
0x1902   :  { %v4425_v42 = vmul.f32 %v7371_v3, %v4406_v31  ;;  %v4439_v45 = vsel %vm1208_vm9, %v4438_v59, %v4437_v7  ;;  %v5220_v7 = vpack.c.bf16 %v4600_v60, %v4599_v62  ;;  %v4602_v59 = vld [vmem:[%s7528_s11 + $0x38] sm:$0xff]  ;;  %vm4593_vm9 = vcmask 457728  }
0x1903   :  { %v4440_v22 = vrot.slane %v4424_v49, 5 }
0x1904   :  { %v4442_v29 = vrot.slane %v4425_v42, 4  ;;  %v4408_v35 = vpop.permute.xlu1 %4407 }
0x1905   :  { %v4441_v53 = vsel %vm1211_vm10, %v4440_v22, %v4439_v45  ;;  %v4426_v23 = vmul.f32 %v7376_v27, %v4408_v35  ;;  %v4410_v56 = vpop.permute.xlu0 %4409  ;;  %vm4682_vm10 = vcmask 523264  }
0x1906   :  { %v4427_v48 = vmul.f32 %v7379_v36, %v4410_v56  ;;  %v4443_v43 = vsel %vm1214_vm11, %v4442_v29, %v4441_v53 }
0x1907   :  { %v4444_v19 = vrot.slane %v4426_v23, 3 }
0x1908   :  { %v4446_v47 = vrot.slane %v4427_v48, 2  ;;  %v4412_v51 = vpop.permute.xlu1 %4411 }
0x1909   :  { %v4445_v46 = vsel %vm1217_vm12, %v4444_v19, %v4443_v43  ;;  %v4428_v3 = vmul.f32 %v7384_v61, %v4412_v51  ;;  %v4098_v30 = vpop.permute.xlu0 %4097 }
0x190a   :  { %v4447_v39 = vsel %vm1220_vm13, %v4446_v47, %v4445_v46  ;;  %v7440_v50 = vmul.f32 %v7387_v41, %v4098_v30 }
0x190b   :  { %v4448_v40 = vrot.slane %v4428_v3, 1 }
0x190c   :  { %v4398_v25 = vpop.permute.xlu1 %4397  ;;  %v4457_v37 = vrot.slane %v7440_v50, 1 }
0x190d   :  { %v4421_v27 = vmul.f32 %v7392_v20, %v4398_v25  ;;  %v4449_v36 = vsel %vm1223_vm14, %v4448_v40, %v4447_v39 }
0x190e   :  { %4452 = vrot.lane.b32.xlu1 %v4449_v36, %s5891_s9 }
0x190f   :  { %4450 = vrot.lane.b32.xlu0 %v4421_v27, %s5891_s9 }
0x1913   :  { %4458 = vrot.lane.b32.xlu0 %v4457_v37, %s5889_s8 }
0x1980   :  { %v4453_v38 = vpop.permute.xlu1 %4452 }
0x1981   :  { %v4451_v61 = vpop.permute.xlu0 %4450 }
0x1985   :  { %v4459_v10 = vpop.permute.xlu0 %4458 }
0x1986   :  { %v4461_v34 = vsel %vm547_vm6, %v4451_v61, %v4459_v10  ;;  %v4462_v41 = vsel %vm547_vm6, %v4453_v38, %v4459_v10 }
0x1987   :  { %v4465_v14 = vrot.slane %v4461_v34, 7  ;;  %v4466_v32 = vrot.slane %v4462_v41, 7 }
0x1989   :  { %v4467_v20 = vsel %vm418_vm5, %v4465_v14, %v4466_v32  ;;  %vm4605_vm5 = vcmask 31744  }
0x198a   :  { %5143 = vmatmul.mubr.msk.f32.vlgmr.msra.gmra.mrb[24].mxu1 %vm177_vm2, %v4467_v20 }
0x198b   :  { %5166 = vmatprep.mubr.msk.f32.mxu1 %vm5888_vm8, %v5887_v11  ;;  %vm4590_vm8 = vcmask 326656  }
0x1a5d   :  { %v4536_v2 = vpop.f32.mrb[24].mxu1 }
0x1a5e   :  { %v4537_v58 = vadd.f32 %v5883_v26, %v4536_v2  ;;  %v5144_v17 = vpop.f32.mrb[25].mxu1 }
0x1a60   :  { %5871 = vtanh.f32 %v4537_v58  ;;  %v4900_v44 = vmul.f32 -1.442695, %v4537_v58 }
0x1a62   :  { %5873 = vpow2.f32 %v4900_v44 }
0x1a6a   :  { %v5872_v24 = vpop.eup %5871 }
0x1a6b   :  { %4549 = vrot.lane.b32.xlu1 %v5872_v24, %s5889_s8 }
0x1a6c   :  { %v5874_v0 = vpop.eup %5873 }
0x1a6d   :  { %v4543_v33 = vadd.f32 1.0, %v5874_v0 }
0x1a6f   :  { %5875 = vrcp.f32 %v4543_v33 }
0x1a79   :  { %v5876_v28 = vpop.eup %5875 }
0x1a7a   :  { %v4547_v11 = vmul.f32 %v5876_v28, %v7414_v15  ;;  %v4598_v15 = vld [vmem:[%s7528_s11 + $0x18] sm:$0xff] }
0x1add   :  { %v4550_v63 = vpop.permute.xlu1 %4549 }
0x1ade   :  { %v4552_v54 = vmul.f32 %v5876_v28, %v4550_v63 }
0x1ae0   :  { %4554 = vrot.lane.b32.xlu0 %v4552_v54, %s5886_s4 }
0x1ae4   :  { %4564 = vrot.lane.b32.xlu0 %v6553_v52, %s5891_s9  ;;  %v4596_v52 = vld [vmem:[%s7528_s11 + $0x8] sm:$0xff] }
0x1ae8   :  { %4570 = vrot.lane.b32.xlu0 %v6865_v1, %s5892_s10  ;;  %v4597_v1 = vld [vmem:[%s7528_s11 + $0x10] sm:$0xff] }
0x1ae9   :  { %v5217_v8 = vpack.c.bf16 %v4598_v15, %v4597_v1 }
0x1aec   :  { %4576 = vrot.lane.b32.xlu0 %v7322_v5, %s5885_s30  ;;  %v5214_v5 = vpack.c.bf16 %v4596_v52, %v4595_v18 }
0x1aee   :  { %5215 = vmatpush3.bf16.msra.mxu1 %v5214_v5 }
0x1aef   :  { %5216 = vmatprep.subr.bf16.mxu1 %v5890_v4 }
0x1af2   :  { %5218 = vmatpush3.bf16.msra.mxu1 %v5217_v8 }
0x1af3   :  { %5219 = vmatprep.subr.bf16.mxu1 %v5890_v4 }
0x1af6   :  { %5221 = vmatpush3.bf16.msra.mxu1 %v5220_v7 }
0x1af7   :  { %5222 = vmatprep.subr.bf16.mxu1 %v5890_v4 }
0x1b52   :  { %v4555_v16 = vpop.permute.xlu0 %4554 }
0x1b53   :  { %v4557_v6 = vadd.f32 %v4555_v16, %v4547_v11 }
0x1b55   :  { %5877 = vtanh.f32 %v4557_v6 }
0x1b56   :  { %v4565_v42 = vpop.permute.xlu0 %4564 }
0x1b5a   :  { %v4571_v29 = vpop.permute.xlu0 %4570 }
0x1b5e   :  { %v4577_v23 = vpop.permute.xlu0 %4576 }
0x1b5f   :  { %v5878_v13 = vpop.eup %5877 }
0x1b60   :  { %4560 = vrot.lane.b32.xlu1 %v5878_v13, %s5885_s30 }
0x1b64   :  { %4567 = vrot.lane.b32.xlu1 %v6711_v9, %s5889_s8  ;;  %v4601_v9 = vld [vmem:[%s7528_s11 + $0x30] sm:$0xff] }
0x1b65   :  { %v5223_v55 = vpack.c.bf16 %v4602_v59, %v4601_v9 }
0x1b67   :  { %5224 = vmatpush3.bf16.msra.mxu1 %v5223_v55 }
0x1b68   :  { %4573 = vrot.lane.b32.xlu1 %v7173_v12, %s5886_s4  ;;  %v4603_v12 = vld [vmem:[%s7530_s1] sm:$0xff] }
0x1b69   :  { %5148 = vmatmul.mubr.msk.f32.vlgmr.msra.gmra.mrb[30].mxu0 %vm4605_vm5, %v4603_v12 }
0x1b6c   :  { %4579 = vrot.lane.b32.xlu1 %v7440_v50, %s5893_s21 }
0x1bd2   :  { %v4561_v49 = vpop.permute.xlu1 %4560 }
0x1bd3   :  { %v4563_v31 = vmul.f32 %v5876_v28, %v4561_v49 }
0x1bd5   :  { %4583 = vrot.lane.b32.xlu0 %v4563_v31, %s5884_s29 }
0x1bd6   :  { %v4568_v22 = vpop.permute.xlu1 %4567 }
0x1bd7   :  { %v4586_v45 = vsel %vm547_vm6, %v4565_v42, %v4568_v22 }
0x1bd8   :  { %v4587_v35 = vsel %vm177_vm2, %v4586_v45, %v4571_v29  ;;  %vm4764_vm2 = vcmask 15360  }
0x1bd9   :  { %v4588_v4 = vsel %vm567_vm7, %v4587_v35, %v7007_v57  ;;  %v4904_v57 = vld [vmem:[%s7531_s13] ss:$0 sm:$0xff] }
0x1bda   :  { %v4574_v53 = vpop.permute.xlu1 %4573 }
0x1bdb   :  { %v4589_v56 = vsel %vm186_vm3, %v4588_v4, %v4574_v53 }
0x1bdc   :  { %v4591_v19 = vsel %vm4590_vm8, %v4589_v56, %v4577_v23 }
0x1bde   :  { %v4580_v48 = vpop.permute.xlu1 %4579 }
0x1bdf   :  { %v4592_v43 = vsel %vm201_vm4, %v4591_v19, %v4580_v48 }
0x1c3c   :  { %v4678_v46 = vpop.f32.mrb[30].mxu0 }
0x1c3d   :  { %v5149_v3 = vpop.f32.mrb[31].mxu0 }
0x1c47   :  { %v4584_v47 = vpop.permute.xlu0 %4583 }
0x1c48   :  { %v4594_v51 = vsel %vm4593_vm9, %v4592_v43, %v4584_v47 }
0x1c49   :  { %5167 = vmatmul.mubr.msk.f32.vlgmr.msra.gmra.mrb[26].mxu1 %vm4682_vm10, %v4594_v51 }
0x1d1c   :  { %v4752_v30 = vpop.f32.mrb[26].mxu1 }
0x1d1d   :  { %v4753_v40 = vadd.f32 %v4752_v30, %v4678_v46  ;;  %v5168_v39 = vpop.f32.mrb[27].mxu1 }
0x1d1f   :  { %v4763_v25 = vadd.f32 %v4904_v57, %v4753_v40 }
0x1d21   :  { %4765 = vst.msk [vmem:[%s7532_s14] sm:$0xff] %vm4764_vm2, %v4763_v25 }

</bundles_post_ra>
